<compile_context>
chip_gen: v7x
topology: tpu7x:2x2x1
jax: 0.10.0
libtpu: 0.0.40
codegen_flags: <defaults>
</compile_context>

<pallas_src>
import functools

import jax
import jax.numpy as jnp
from jax.experimental import pallas as pl
from jax.experimental.pallas import tpu as pltpu

H_PAD = 128                                   # lane-dense padded feature width
VMEM_SPEC = pl.BlockSpec(memory_space=pltpu.MemorySpace.VMEM)
_BF16 = jnp.bfloat16


def _mxu_dot(a, b):
    """MXU matmul with bf16 operands and f32 accumulation."""
    return jnp.dot(a.astype(_BF16), b.astype(_BF16),
                   preferred_element_type=jnp.float32)


# ----------------------------------------------------------------------------
# Fused GATv2 kernels
# ----------------------------------------------------------------------------
def _gat_core(xl, xr, eproj, adj, att, bias):
    """GATv2 attention + masked softmax + aggregation (all in VMEM).

    xl: (Ns, H) projected source feats   xr: (Nd, H) projected dest feats
    eproj: (Nd, Ns, H) projected edge attrs or None
    adj: (Nd, Ns) 0/1 mask   att: (1, 1, H)   bias: (1, H)
    """
    z = xr[:, None, :] + xl[None, :, :]
    if eproj is not None:
        z = z + eproj
    z = jnp.where(z > 0, z, 0.2 * z)                        # leaky_relu(0.2)
    scores = jnp.sum(z * att, axis=-1)                      # (Nd, Ns)

    mask = adj > 0
    neg = jnp.float32(-1e30)
    s = jnp.where(mask, scores, neg)
    m = jnp.max(s, axis=-1, keepdims=True)
    p = jnp.where(mask, jnp.exp(s - m), 0.0)                # unnormalized alpha
    denom = jnp.sum(p, axis=-1, keepdims=True)

    acc = _mxu_dot(p, xl)                                   # (Nd, H)
    inv = pl.reciprocal(jnp.maximum(denom, jnp.float32(1e-12)), approx=True)
    return acc * inv + bias                                 # fold 1/denom post-matmul


def _gat_shared_kernel(x_ref, wlr_ref, blr_ref, adj_ref, att_ref, bias_ref,
                       *rest, h, post):
    """Fused GATv2 layer where x_src is x_dst (merged [Wl|Wr] projection)."""
    if post:
        pw_ref, pb_ref, o_ref = rest
    else:
        (o_ref,) = rest
    xlr = _mxu_dot(x_ref[...], wlr_ref[...]) + blr_ref[...]   # (N, 2H)
    xl, xr = xlr[:, :h], xlr[:, h:]
    out = _gat_core(xl, xr, None, adj_ref[...], att_ref[...], bias_ref[...])
    out = jnp.maximum(out, 0.0)                               # .relu() after conv
    if post:                                                  # fused trailing Linear
        out = _mxu_dot(out, pw_ref[...]) + pb_ref[...]
    o_ref[...] = out


def _gat_bipartite_kernel(xs_ref, xd_ref, wl_ref, bl_ref, wr_ref, br_ref,
                          we_ref, ea_ref, adj_ref, att_ref, bias_ref,
                          *rest, ec, post):
    """Fused bipartite GATv2 layer with edge attributes."""
    if post:
        pw_ref, pb_ref, o_ref = rest
    else:
        (o_ref,) = rest
    xl = _mxu_dot(xs_ref[...], wl_ref[...]) + bl_ref[...]     # (Ns, H)
    xr = _mxu_dot(xd_ref[...], wr_ref[...]) + br_ref[...]     # (Nd, H)

    ea = ea_ref[...]                                          # (Nd, Ns, Ec)
    we = we_ref[...]                                          # (Ec, H)
    eproj = None                                              # built in VMEM only
    for c in range(ec):                                       # static small Ec
        term = ea[:, :, c:c + 1] * we[c:c + 1, :][None, :, :]
        eproj = term if eproj is None else eproj + term

    out = _gat_core(xl, xr, eproj, adj_ref[...], att_ref[...], bias_ref[...])
    out = jnp.maximum(out, 0.0)
    if post:
        out = _mxu_dot(out, pw_ref[...]) + pb_ref[...]
    o_ref[...] = out


def _decoder_kernel(zs_ref, zd_ref, w1a_ref, w1b_ref, b1_ref, w2_ref, b2_ref,
                    o_ref):
    """EdgeDecoder: relu(zs@W1a + zd@W1b + b1) @ W2 + b2 (concat-free)."""
    h = (_mxu_dot(zs_ref[...], w1a_ref[...])
         + _mxu_dot(zd_ref[...], w1b_ref[...]) + b1_ref[...])
    h = jnp.maximum(h, 0.0)
    o_ref[...] = _mxu_dot(h, w2_ref[...]) + b2_ref[...]


# ----------------------------------------------------------------------------
# Kernel wrappers
# ----------------------------------------------------------------------------
def gat_shared(p, x, adj, post=None):
    n = x.shape[0]
    refs = [x, p["wlr"], p["blr"], adj, p["att"], p["bias"]]
    if post is not None:
        refs += [post[0], post[1]]
    return pl.pallas_call(
        functools.partial(_gat_shared_kernel, h=H_PAD, post=post is not None),
        out_shape=jax.ShapeDtypeStruct((n, H_PAD), jnp.float32),
        in_specs=[VMEM_SPEC] * len(refs),
        out_specs=VMEM_SPEC,
    )(*refs)


def gat_bipartite(p, x_src, x_dst, adj, ea, post=None):
    nd = x_dst.shape[0]
    ec = ea.shape[-1]
    refs = [x_src, x_dst, p["wl"], p["bl"], p["wr"], p["br"], p["we"], ea, adj,
            p["att"], p["bias"]]
    if post is not None:
        refs += [post[0], post[1]]
    return pl.pallas_call(
        functools.partial(_gat_bipartite_kernel, ec=ec, post=post is not None),
        out_shape=jax.ShapeDtypeStruct((nd, H_PAD), jnp.float32),
        in_specs=[VMEM_SPEC] * len(refs),
        out_specs=VMEM_SPEC,
    )(*refs)


def edge_decoder(p, z_src, z_dst, edge_label_index):
    row, col = edge_label_index[0], edge_label_index[1]
    zs, zd = z_src[row], z_dst[col]                 # gathers: JAX glue
    e = zs.shape[0]
    out = pl.pallas_call(
        _decoder_kernel,
        out_shape=jax.ShapeDtypeStruct((e, H_PAD), jnp.float32),
        in_specs=[VMEM_SPEC] * 7,
        out_specs=VMEM_SPEC,
    )(zs, zd, p["w1a"], p["w1b"], p["b1"], p["w2"], p["b2"])
    return out[:, :1]                               # real output lives in column 0


# ----------------------------------------------------------------------------
# Graph densification (built once, reused by all layers)
# ----------------------------------------------------------------------------
def build_adj(edge_index, nd, ns, add_self_loops):
    src, dst = edge_index[0], edge_index[1]
    adj = jnp.zeros((nd, ns), jnp.float32).at[dst, src].set(1.0)
    if add_self_loops:
        adj = jnp.maximum(adj, jnp.eye(nd, ns, dtype=jnp.float32))
    return adj


def build_dense_edge_attr(edge_index, edge_attr, nd, ns):
    src, dst = edge_index[0], edge_index[1]
    ea = jnp.zeros((nd, ns, edge_attr.shape[1]), jnp.float32)
    return ea.at[dst, src, :].set(edge_attr)


# ----------------------------------------------------------------------------
# Parameter init (deterministic, synthetic, zero-padded to H_PAD lanes)
# ----------------------------------------------------------------------------
def _embed(a, rows, cols):
    out = jnp.zeros((rows, cols), jnp.float32)
    return out.at[:a.shape[0], :a.shape[1]].set(a)


def _init_gat_shared(key, in_width, in_logical, hidden):
    k = jax.random.split(key, 6)
    wl = jax.random.normal(k[0], (in_logical, hidden), jnp.float32) * 0.1
    wr = jax.random.normal(k[1], (in_logical, hidden), jnp.float32) * 0.1
    bl = jax.random.normal(k[2], (1, hidden), jnp.float32) * 0.01
    br = jax.random.normal(k[3], (1, hidden), jnp.float32) * 0.01
    att = jax.random.normal(k[4], (hidden,), jnp.float32) * 0.1
    bias = jax.random.normal(k[5], (1, hidden), jnp.float32) * 0.01
    return dict(
        wlr=jnp.concatenate([_embed(wl, in_width, H_PAD),
                             _embed(wr, in_width, H_PAD)], axis=1),
        blr=jnp.concatenate([_embed(bl, 1, H_PAD),
                             _embed(br, 1, H_PAD)], axis=1),
        att=jnp.zeros((1, 1, H_PAD), jnp.float32).at[0, 0, :hidden].set(att),
        bias=_embed(bias, 1, H_PAD),
    )


def _init_gat_bipartite(key, src_width, src_logical, dst_width, dst_logical,
                        hidden, ec):
    k = jax.random.split(key, 7)
    return dict(
        wl=_embed(jax.random.normal(k[0], (src_logical, hidden), jnp.float32) * 0.1,
                  src_width, H_PAD),
        bl=_embed(jax.random.normal(k[1], (1, hidden), jnp.float32) * 0.01, 1, H_PAD),
        wr=_embed(jax.random.normal(k[2], (dst_logical, hidden), jnp.float32) * 0.1,
                  dst_width, H_PAD),
        br=_embed(jax.random.normal(k[3], (1, hidden), jnp.float32) * 0.01, 1, H_PAD),
        we=_embed(jax.random.normal(k[4], (ec, hidden), jnp.float32) * 0.1, ec, H_PAD),
        att=jnp.zeros((1, 1, H_PAD), jnp.float32).at[0, 0, :hidden].set(
            jax.random.normal(k[5], (hidden,), jnp.float32) * 0.1),
        bias=_embed(jax.random.normal(k[6], (1, hidden), jnp.float32) * 0.01, 1, H_PAD),
    )


def _init_linear_padded(key, in_logical, out_logical, in_width):
    k1, k2 = jax.random.split(key)
    w = jax.random.normal(k1, (in_logical, out_logical), jnp.float32) * 0.1
    b = jax.random.normal(k2, (1, out_logical), jnp.float32) * 0.01
    return _embed(w, in_width, H_PAD), _embed(b, 1, H_PAD)


def _init_decoder(key, out_ch):
    k = jax.random.split(key, 4)
    w1 = jax.random.normal(k[0], (2 * out_ch, out_ch), jnp.float32) * 0.1
    b1 = jax.random.normal(k[1], (1, out_ch), jnp.float32) * 0.01
    w2 = jax.random.normal(k[2], (out_ch, 1), jnp.float32) * 0.1
    b2 = jax.random.normal(k[3], (1, 1), jnp.float32) * 0.01
    return dict(
        w1a=_embed(w1[:out_ch], H_PAD, H_PAD),     # rows acting on z_src
        w1b=_embed(w1[out_ch:], H_PAD, H_PAD),     # rows acting on z_dst
        b1=_embed(b1, 1, H_PAD),
        w2=_embed(w2, H_PAD, H_PAD),               # real output in column 0
        b2=_embed(b2, 1, H_PAD),
    )


def init_params(key, f_prod, f_cust, hidden, out, edge_channels):
    ks = jax.random.split(key, 8)
    item = dict(
        conv1=_init_gat_shared(ks[0], f_prod, f_prod, hidden),
        conv2=_init_gat_shared(ks[1], H_PAD, hidden, hidden),
    )
    item["lin_w"], item["lin_b"] = _init_linear_padded(ks[2], hidden, out, H_PAD)
    user = dict(
        conv1=_init_gat_shared(ks[3], f_prod, f_prod, hidden),
        conv2=_init_gat_bipartite(ks[4], f_prod, f_prod, f_cust, f_cust,
                                  hidden, edge_channels),
        conv3=_init_gat_bipartite(ks[5], H_PAD, hidden, H_PAD, hidden,
                                  hidden, edge_channels),
    )
    user["lin_w"], user["lin_b"] = _init_linear_padded(ks[6], hidden, out, H_PAD)
    dec = _init_decoder(ks[7], out)
    return dict(item_encoder=item, customer_encoder=user, decoder=dec)


# ----------------------------------------------------------------------------
# Model forward (mirrors MetaGATv2.forward)
# ----------------------------------------------------------------------------
def item_encoder_forward(p, x_prod, adj_pp):
    x = gat_shared(p["conv1"], x_prod, adj_pp)
    return gat_shared(p["conv2"], x, adj_pp, post=(p["lin_w"], p["lin_b"]))


def user_encoder_forward(p, x_prod, x_cust, adj_pp, adj_rev, ea_rev):
    product_x = gat_shared(p["conv1"], x_prod, adj_pp)
    customer_x = gat_bipartite(p["conv2"], x_prod, x_cust, adj_rev, ea_rev)
    return gat_bipartite(p["conv3"], product_x, customer_x, adj_rev, ea_rev,
                         post=(p["lin_w"], p["lin_b"]))


@jax.jit
def meta_gatv2_forward(params, x_dict, edge_index_dict, edge_label_index,
                       edge_label):
    x_prod, x_cust = x_dict["product"], x_dict["customer"]
    n_prod, n_cust = x_prod.shape[0], x_cust.shape[0]
    # Graph structure densified ONCE and reused by every layer.
    adj_pp = build_adj(edge_index_dict["pp"], n_prod, n_prod, add_self_loops=True)
    adj_rev = build_adj(edge_index_dict["rev"], n_cust, n_prod, add_self_loops=False)
    ea_rev = build_dense_edge_attr(edge_index_dict["rev"], edge_label,
                                   n_cust, n_prod)
    z_cust = user_encoder_forward(params["customer_encoder"], x_prod, x_cust,
                                  adj_pp, adj_rev, ea_rev)
    z_prod = item_encoder_forward(params["item_encoder"], x_prod, adj_pp)
    return edge_decoder(params["decoder"], z_cust, z_prod, edge_label_index)


# ----------------------------------------------------------------------------
if __name__ == "__main__":
    NP, FP = 16, 8          # products, product feature dim
    NC, FC = 12, 32         # customers, customer feature dim
    HIDDEN, OUT = 32, 32
    EDGE_CH = 1
    E_PP, E_REV, E_LBL = 40, 30, 10

    key = jax.random.PRNGKey(0)
    kx1, kx2, ke1, ke2, kl, kli1, kli2, kp = jax.random.split(key, 8)

    x_dict = {
        "product": jax.random.normal(kx1, (NP, FP), jnp.float32),
        "customer": jax.random.normal(kx2, (NC, FC), jnp.float32),
    }

    # unique product->product edges (dense scatter assumes uniqueness)
    pp_flat = jax.random.choice(ke1, NP * NP, shape=(E_PP,), replace=False)
    edge_pp = jnp.stack([pp_flat // NP, pp_flat % NP]).astype(jnp.int32)
    # unique product->customer (rev_buys) edges
    rev_flat = jax.random.choice(ke2, NP * NC, shape=(E_REV,), replace=False)
    edge_rev = jnp.stack([rev_flat // NC, rev_flat % NC]).astype(jnp.int32)
    edge_index_dict = {"pp": edge_pp, "rev": edge_rev}

    edge_label = jax.random.uniform(kl, (E_REV, EDGE_CH), jnp.float32)
    edge_label_index = jnp.stack([
        jax.random.randint(kli1, (E_LBL,), 0, NC),   # rows -> customers
        jax.random.randint(kli2, (E_LBL,), 0, NP),   # cols -> products
    ]).astype(jnp.int32)

    params = init_params(kp, FP, FC, HIDDEN, OUT, EDGE_CH)

    out = meta_gatv2_forward(params, x_dict, edge_index_dict,
                             edge_label_index, edge_label)
    out = jax.block_until_ready(out)
    assert out.shape == (E_LBL, 1)
    assert jnp.all(jnp.isfinite(out))
    print("KERNEL_OK")
</pallas_src>

<mosaic_0001>
module attributes {stable_mosaic.version = 11 : i64} {
  func.func @_gat_shared_kernel(%arg0: memref<16x128xf32, #tpu.memory_space<vmem>>, %arg1: memref<128x256xf32, #tpu.memory_space<vmem>>, %arg2: memref<1x256xf32, #tpu.memory_space<vmem>>, %arg3: memref<16x16xf32, #tpu.memory_space<vmem>>, %arg4: memref<1x1x128xf32, #tpu.memory_space<vmem>>, %arg5: memref<1x128xf32, #tpu.memory_space<vmem>>, %arg6: memref<128x128xf32, #tpu.memory_space<vmem>>, %arg7: memref<1x128xf32, #tpu.memory_space<vmem>>, %arg8: memref<16x128xf32, #tpu.memory_space<vmem>>) attributes {dimension_semantics = [], scalar_prefetch = 0 : i64, scratch_operands = 0 : i64, tpu.core_type = #tpu.core_type<tc>} {
    %c0 = arith.constant 0 : index
    %c0_0 = arith.constant 0 : index
    %0 = vector.load %arg0[%c0, %c0_0] : memref<16x128xf32, #tpu.memory_space<vmem>>, vector<16x128xf32>
    %c0_1 = arith.constant 0 : index
    %c0_2 = arith.constant 0 : index
    %1 = vector.load %arg1[%c0_1, %c0_2] : memref<128x256xf32, #tpu.memory_space<vmem>>, vector<128x256xf32>
    %2 = arith.truncf %0 : vector<16x128xf32> to vector<16x128xbf16>
    %3 = arith.truncf %1 : vector<128x256xf32> to vector<128x256xbf16>
    %cst = arith.constant dense<0.000000e+00> : vector<16x256xf32>
    %4 = tpu.matmul %2, %3, %cst {dimension_numbers = #tpu.dot_dimension_numbers<[1], [0], [0], [1], [0, 0, 1, 1], [], []>} : vector<16x128xbf16>, vector<128x256xbf16>, vector<16x256xf32> -> vector<16x256xf32>
    %c0_3 = arith.constant 0 : index
    %c0_4 = arith.constant 0 : index
    %5 = vector.load %arg2[%c0_3, %c0_4] : memref<1x256xf32, #tpu.memory_space<vmem>>, vector<1x256xf32>
    %6 = vector.broadcast %5 : vector<1x256xf32> to vector<16x256xf32>
    %7 = arith.addf %4, %6 : vector<16x256xf32>
    %8 = vector.extract_strided_slice %7 {offsets = [0, 0], sizes = [16, 128], strides = [1, 1]} : vector<16x256xf32> to vector<16x128xf32>
    %9 = vector.extract_strided_slice %7 {offsets = [0, 128], sizes = [16, 128], strides = [1, 1]} : vector<16x256xf32> to vector<16x128xf32>
    %c0_5 = arith.constant 0 : index
    %c0_6 = arith.constant 0 : index
    %10 = vector.load %arg3[%c0_5, %c0_6] : memref<16x16xf32, #tpu.memory_space<vmem>>, vector<16x16xf32>
    %c0_7 = arith.constant 0 : index
    %c0_8 = arith.constant 0 : index
    %c0_9 = arith.constant 0 : index
    %11 = vector.load %arg4[%c0_7, %c0_8, %c0_9] : memref<1x1x128xf32, #tpu.memory_space<vmem>>, vector<1x1x128xf32>
    %c0_10 = arith.constant 0 : index
    %c0_11 = arith.constant 0 : index
    %12 = vector.load %arg5[%c0_10, %c0_11] : memref<1x128xf32, #tpu.memory_space<vmem>>, vector<1x128xf32>
    %13 = vector.shape_cast %9 : vector<16x128xf32> to vector<16x1x128xf32>
    %14 = vector.shape_cast %8 : vector<16x128xf32> to vector<1x16x128xf32>
    %15 = vector.broadcast %13 : vector<16x1x128xf32> to vector<16x16x128xf32>
    %16 = vector.broadcast %14 : vector<1x16x128xf32> to vector<16x16x128xf32>
    %17 = arith.addf %15, %16 : vector<16x16x128xf32>
    %cst_12 = arith.constant 0.000000e+00 : f32
    %18 = vector.broadcast %cst_12 : f32 to vector<16x16x128xf32>
    %19 = arith.cmpf ogt, %17, %18 : vector<16x16x128xf32>
    %cst_13 = arith.constant 2.000000e-01 : f32
    %20 = vector.broadcast %cst_13 : f32 to vector<16x16x128xf32>
    %21 = arith.mulf %20, %17 : vector<16x16x128xf32>
    %22 = arith.select %19, %17, %21 : vector<16x16x128xi1>, vector<16x16x128xf32>
    %23 = vector.broadcast %11 : vector<1x1x128xf32> to vector<16x16x128xf32>
    %24 = arith.mulf %22, %23 : vector<16x16x128xf32>
    %cst_14 = arith.constant dense<0.000000e+00> : vector<16x16xf32>
    %25 = vector.multi_reduction <add>, %24, %cst_14 [2] : vector<16x16x128xf32> to vector<16x16xf32>
    %cst_15 = arith.constant 0.000000e+00 : f32
    %26 = vector.broadcast %cst_15 : f32 to vector<16x16xf32>
    %27 = arith.cmpf ogt, %10, %26 : vector<16x16xf32>
    %cst_16 = arith.constant -1.000000e+30 : f32
    %28 = vector.broadcast %cst_16 : f32 to vector<16x16xf32>
    %29 = arith.select %27, %25, %28 : vector<16x16xi1>, vector<16x16xf32>
    %cst_17 = arith.constant dense<0xFF800000> : vector<16xf32>
    %30 = vector.multi_reduction <maximumf>, %29, %cst_17 [1] : vector<16x16xf32> to vector<16xf32>
    %31 = vector.shape_cast %30 : vector<16xf32> to vector<16x1xf32>
    %32 = vector.broadcast %31 : vector<16x1xf32> to vector<16x16xf32>
    %33 = arith.subf %29, %32 : vector<16x16xf32>
    %34 = math.exp %33 : vector<16x16xf32>
    %cst_18 = arith.constant 0.000000e+00 : f32
    %35 = vector.broadcast %cst_18 : f32 to vector<16x16xf32>
    %36 = arith.select %27, %34, %35 : vector<16x16xi1>, vector<16x16xf32>
    %cst_19 = arith.constant dense<0.000000e+00> : vector<16xf32>
    %37 = vector.multi_reduction <add>, %36, %cst_19 [1] : vector<16x16xf32> to vector<16xf32>
    %38 = vector.shape_cast %37 : vector<16xf32> to vector<16x1xf32>
    %39 = arith.truncf %36 : vector<16x16xf32> to vector<16x16xbf16>
    %40 = arith.truncf %8 : vector<16x128xf32> to vector<16x128xbf16>
    %cst_20 = arith.constant dense<0.000000e+00> : vector<16x128xf32>
    %41 = tpu.matmul %39, %40, %cst_20 {dimension_numbers = #tpu.dot_dimension_numbers<[1], [0], [0], [1], [0, 0, 1, 1], [], []>} : vector<16x16xbf16>, vector<16x128xbf16>, vector<16x128xf32> -> vector<16x128xf32>
    %cst_21 = arith.constant 9.99999996E-13 : f32
    %42 = vector.broadcast %cst_21 : f32 to vector<16x1xf32>
    %43 = arith.maximumf %38, %42 : vector<16x1xf32>
    %44 = tpu.reciprocal %43 {approx = true} : vector<16x1xf32> -> vector<16x1xf32>
    %45 = vector.broadcast %44 : vector<16x1xf32> to vector<16x128xf32>
    %46 = arith.mulf %41, %45 : vector<16x128xf32>
    %47 = vector.broadcast %12 : vector<1x128xf32> to vector<16x128xf32>
    %48 = arith.addf %46, %47 : vector<16x128xf32>
    %cst_22 = arith.constant 0.000000e+00 : f32
    %49 = vector.broadcast %cst_22 : f32 to vector<16x128xf32>
    %50 = arith.maximumf %48, %49 : vector<16x128xf32>
    %c0_23 = arith.constant 0 : index
    %c0_24 = arith.constant 0 : index
    %51 = vector.load %arg6[%c0_23, %c0_24] : memref<128x128xf32, #tpu.memory_space<vmem>>, vector<128x128xf32>
    %52 = arith.truncf %50 : vector<16x128xf32> to vector<16x128xbf16>
    %53 = arith.truncf %51 : vector<128x128xf32> to vector<128x128xbf16>
    %cst_25 = arith.constant dense<0.000000e+00> : vector<16x128xf32>
    %54 = tpu.matmul %52, %53, %cst_25 {dimension_numbers = #tpu.dot_dimension_numbers<[1], [0], [0], [1], [0, 0, 1, 1], [], []>} : vector<16x128xbf16>, vector<128x128xbf16>, vector<16x128xf32> -> vector<16x128xf32>
    %c0_26 = arith.constant 0 : index
    %c0_27 = arith.constant 0 : index
    %55 = vector.load %arg7[%c0_26, %c0_27] : memref<1x128xf32, #tpu.memory_space<vmem>>, vector<1x128xf32>
    %56 = vector.broadcast %55 : vector<1x128xf32> to vector<16x128xf32>
    %57 = arith.addf %54, %56 : vector<16x128xf32>
    %c0_28 = arith.constant 0 : index
    %c0_29 = arith.constant 0 : index
    %58 = vector.load %arg8[%c0_28, %c0_29] : memref<16x128xf32, #tpu.memory_space<vmem>>, vector<16x128xf32>
    tpu.vector_store %arg8[%c0_28, %c0_29], %57 {strides = array<i32>} : memref<16x128xf32, #tpu.memory_space<vmem>>, vector<16x128xf32>,
    return
  }
}

module attributes {stable_mosaic.version = 11 : i64} {
  func.func @_gat_shared_kernel(%arg0: memref<16x8xf32, #tpu.memory_space<vmem>>, %arg1: memref<8x256xf32, #tpu.memory_space<vmem>>, %arg2: memref<1x256xf32, #tpu.memory_space<vmem>>, %arg3: memref<16x16xf32, #tpu.memory_space<vmem>>, %arg4: memref<1x1x128xf32, #tpu.memory_space<vmem>>, %arg5: memref<1x128xf32, #tpu.memory_space<vmem>>, %arg6: memref<16x128xf32, #tpu.memory_space<vmem>>) attributes {dimension_semantics = [], scalar_prefetch = 0 : i64, scratch_operands = 0 : i64, tpu.core_type = #tpu.core_type<tc>} {
    %c0 = arith.constant 0 : index
    %c0_0 = arith.constant 0 : index
    %0 = vector.load %arg0[%c0, %c0_0] : memref<16x8xf32, #tpu.memory_space<vmem>>, vector<16x8xf32>
    %c0_1 = arith.constant 0 : index
    %c0_2 = arith.constant 0 : index
    %1 = vector.load %arg1[%c0_1, %c0_2] : memref<8x256xf32, #tpu.memory_space<vmem>>, vector<8x256xf32>
    %2 = arith.truncf %0 : vector<16x8xf32> to vector<16x8xbf16>
    %3 = arith.truncf %1 : vector<8x256xf32> to vector<8x256xbf16>
    %cst = arith.constant dense<0.000000e+00> : vector<16x256xf32>
    %4 = tpu.matmul %2, %3, %cst {dimension_numbers = #tpu.dot_dimension_numbers<[1], [0], [0], [1], [0, 0, 1, 1], [], []>} : vector<16x8xbf16>, vector<8x256xbf16>, vector<16x256xf32> -> vector<16x256xf32>
    %c0_3 = arith.constant 0 : index
    %c0_4 = arith.constant 0 : index
    %5 = vector.load %arg2[%c0_3, %c0_4] : memref<1x256xf32, #tpu.memory_space<vmem>>, vector<1x256xf32>
    %6 = vector.broadcast %5 : vector<1x256xf32> to vector<16x256xf32>
    %7 = arith.addf %4, %6 : vector<16x256xf32>
    %8 = vector.extract_strided_slice %7 {offsets = [0, 0], sizes = [16, 128], strides = [1, 1]} : vector<16x256xf32> to vector<16x128xf32>
    %9 = vector.extract_strided_slice %7 {offsets = [0, 128], sizes = [16, 128], strides = [1, 1]} : vector<16x256xf32> to vector<16x128xf32>
    %c0_5 = arith.constant 0 : index
    %c0_6 = arith.constant 0 : index
    %10 = vector.load %arg3[%c0_5, %c0_6] : memref<16x16xf32, #tpu.memory_space<vmem>>, vector<16x16xf32>
    %c0_7 = arith.constant 0 : index
    %c0_8 = arith.constant 0 : index
    %c0_9 = arith.constant 0 : index
    %11 = vector.load %arg4[%c0_7, %c0_8, %c0_9] : memref<1x1x128xf32, #tpu.memory_space<vmem>>, vector<1x1x128xf32>
    %c0_10 = arith.constant 0 : index
    %c0_11 = arith.constant 0 : index
    %12 = vector.load %arg5[%c0_10, %c0_11] : memref<1x128xf32, #tpu.memory_space<vmem>>, vector<1x128xf32>
    %13 = vector.shape_cast %9 : vector<16x128xf32> to vector<16x1x128xf32>
    %14 = vector.shape_cast %8 : vector<16x128xf32> to vector<1x16x128xf32>
    %15 = vector.broadcast %13 : vector<16x1x128xf32> to vector<16x16x128xf32>
    %16 = vector.broadcast %14 : vector<1x16x128xf32> to vector<16x16x128xf32>
    %17 = arith.addf %15, %16 : vector<16x16x128xf32>
    %cst_12 = arith.constant 0.000000e+00 : f32
    %18 = vector.broadcast %cst_12 : f32 to vector<16x16x128xf32>
    %19 = arith.cmpf ogt, %17, %18 : vector<16x16x128xf32>
    %cst_13 = arith.constant 2.000000e-01 : f32
    %20 = vector.broadcast %cst_13 : f32 to vector<16x16x128xf32>
    %21 = arith.mulf %20, %17 : vector<16x16x128xf32>
    %22 = arith.select %19, %17, %21 : vector<16x16x128xi1>, vector<16x16x128xf32>
    %23 = vector.broadcast %11 : vector<1x1x128xf32> to vector<16x16x128xf32>
    %24 = arith.mulf %22, %23 : vector<16x16x128xf32>
    %cst_14 = arith.constant dense<0.000000e+00> : vector<16x16xf32>
    %25 = vector.multi_reduction <add>, %24, %cst_14 [2] : vector<16x16x128xf32> to vector<16x16xf32>
    %cst_15 = arith.constant 0.000000e+00 : f32
    %26 = vector.broadcast %cst_15 : f32 to vector<16x16xf32>
    %27 = arith.cmpf ogt, %10, %26 : vector<16x16xf32>
    %cst_16 = arith.constant -1.000000e+30 : f32
    %28 = vector.broadcast %cst_16 : f32 to vector<16x16xf32>
    %29 = arith.select %27, %25, %28 : vector<16x16xi1>, vector<16x16xf32>
    %cst_17 = arith.constant dense<0xFF800000> : vector<16xf32>
    %30 = vector.multi_reduction <maximumf>, %29, %cst_17 [1] : vector<16x16xf32> to vector<16xf32>
    %31 = vector.shape_cast %30 : vector<16xf32> to vector<16x1xf32>
    %32 = vector.broadcast %31 : vector<16x1xf32> to vector<16x16xf32>
    %33 = arith.subf %29, %32 : vector<16x16xf32>
    %34 = math.exp %33 : vector<16x16xf32>
    %cst_18 = arith.constant 0.000000e+00 : f32
    %35 = vector.broadcast %cst_18 : f32 to vector<16x16xf32>
    %36 = arith.select %27, %34, %35 : vector<16x16xi1>, vector<16x16xf32>
    %cst_19 = arith.constant dense<0.000000e+00> : vector<16xf32>
    %37 = vector.multi_reduction <add>, %36, %cst_19 [1] : vector<16x16xf32> to vector<16xf32>
    %38 = vector.shape_cast %37 : vector<16xf32> to vector<16x1xf32>
    %39 = arith.truncf %36 : vector<16x16xf32> to vector<16x16xbf16>
    %40 = arith.truncf %8 : vector<16x128xf32> to vector<16x128xbf16>
    %cst_20 = arith.constant dense<0.000000e+00> : vector<16x128xf32>
    %41 = tpu.matmul %39, %40, %cst_20 {dimension_numbers = #tpu.dot_dimension_numbers<[1], [0], [0], [1], [0, 0, 1, 1], [], []>} : vector<16x16xbf16>, vector<16x128xbf16>, vector<16x128xf32> -> vector<16x128xf32>
    %cst_21 = arith.constant 9.99999996E-13 : f32
    %42 = vector.broadcast %cst_21 : f32 to vector<16x1xf32>
    %43 = arith.maximumf %38, %42 : vector<16x1xf32>
    %44 = tpu.reciprocal %43 {approx = true} : vector<16x1xf32> -> vector<16x1xf32>
    %45 = vector.broadcast %44 : vector<16x1xf32> to vector<16x128xf32>
    %46 = arith.mulf %41, %45 : vector<16x128xf32>
    %47 = vector.broadcast %12 : vector<1x128xf32> to vector<16x128xf32>
    %48 = arith.addf %46, %47 : vector<16x128xf32>
    %cst_22 = arith.constant 0.000000e+00 : f32
    %49 = vector.broadcast %cst_22 : f32 to vector<16x128xf32>
    %50 = arith.maximumf %48, %49 : vector<16x128xf32>
    %c0_23 = arith.constant 0 : index
    %c0_24 = arith.constant 0 : index
    %51 = vector.load %arg6[%c0_23, %c0_24] : memref<16x128xf32, #tpu.memory_space<vmem>>, vector<16x128xf32>
    tpu.vector_store %arg6[%c0_23, %c0_24], %50 {strides = array<i32>} : memref<16x128xf32, #tpu.memory_space<vmem>>, vector<16x128xf32>,
    return
  }
}

module attributes {stable_mosaic.version = 11 : i64} {
  func.func @_gat_bipartite_kernel(%arg0: memref<16x8xf32, #tpu.memory_space<vmem>>, %arg1: memref<12x32xf32, #tpu.memory_space<vmem>>, %arg2: memref<8x128xf32, #tpu.memory_space<vmem>>, %arg3: memref<1x128xf32, #tpu.memory_space<vmem>>, %arg4: memref<32x128xf32, #tpu.memory_space<vmem>>, %arg5: memref<1x128xf32, #tpu.memory_space<vmem>>, %arg6: memref<1x128xf32, #tpu.memory_space<vmem>>, %arg7: memref<12x16x1xf32, #tpu.memory_space<vmem>>, %arg8: memref<12x16xf32, #tpu.memory_space<vmem>>, %arg9: memref<1x1x128xf32, #tpu.memory_space<vmem>>, %arg10: memref<1x128xf32, #tpu.memory_space<vmem>>, %arg11: memref<12x128xf32, #tpu.memory_space<vmem>>) attributes {dimension_semantics = [], scalar_prefetch = 0 : i64, scratch_operands = 0 : i64, tpu.core_type = #tpu.core_type<tc>} {
    %c0 = arith.constant 0 : index
    %c0_0 = arith.constant 0 : index
    %0 = vector.load %arg0[%c0, %c0_0] : memref<16x8xf32, #tpu.memory_space<vmem>>, vector<16x8xf32>
    %c0_1 = arith.constant 0 : index
    %c0_2 = arith.constant 0 : index
    %1 = vector.load %arg2[%c0_1, %c0_2] : memref<8x128xf32, #tpu.memory_space<vmem>>, vector<8x128xf32>
    %2 = arith.truncf %0 : vector<16x8xf32> to vector<16x8xbf16>
    %3 = arith.truncf %1 : vector<8x128xf32> to vector<8x128xbf16>
    %cst = arith.constant dense<0.000000e+00> : vector<16x128xf32>
    %4 = tpu.matmul %2, %3, %cst {dimension_numbers = #tpu.dot_dimension_numbers<[1], [0], [0], [1], [0, 0, 1, 1], [], []>} : vector<16x8xbf16>, vector<8x128xbf16>, vector<16x128xf32> -> vector<16x128xf32>
    %c0_3 = arith.constant 0 : index
    %c0_4 = arith.constant 0 : index
    %5 = vector.load %arg3[%c0_3, %c0_4] : memref<1x128xf32, #tpu.memory_space<vmem>>, vector<1x128xf32>
    %6 = vector.broadcast %5 : vector<1x128xf32> to vector<16x128xf32>
    %7 = arith.addf %4, %6 : vector<16x128xf32>
    %c0_5 = arith.constant 0 : index
    %c0_6 = arith.constant 0 : index
    %8 = vector.load %arg1[%c0_5, %c0_6] : memref<12x32xf32, #tpu.memory_space<vmem>>, vector<12x32xf32>
    %c0_7 = arith.constant 0 : index
    %c0_8 = arith.constant 0 : index
    %9 = vector.load %arg4[%c0_7, %c0_8] : memref<32x128xf32, #tpu.memory_space<vmem>>, vector<32x128xf32>
    %10 = arith.truncf %8 : vector<12x32xf32> to vector<12x32xbf16>
    %11 = arith.truncf %9 : vector<32x128xf32> to vector<32x128xbf16>
    %cst_9 = arith.constant dense<0.000000e+00> : vector<12x128xf32>
    %12 = tpu.matmul %10, %11, %cst_9 {dimension_numbers = #tpu.dot_dimension_numbers<[1], [0], [0], [1], [0, 0, 1, 1], [], []>} : vector<12x32xbf16>, vector<32x128xbf16>, vector<12x128xf32> -> vector<12x128xf32>
    %c0_10 = arith.constant 0 : index
    %c0_11 = arith.constant 0 : index
    %13 = vector.load %arg5[%c0_10, %c0_11] : memref<1x128xf32, #tpu.memory_space<vmem>>, vector<1x128xf32>
    %14 = vector.broadcast %13 : vector<1x128xf32> to vector<12x128xf32>
    %15 = arith.addf %12, %14 : vector<12x128xf32>
    %c0_12 = arith.constant 0 : index
    %c0_13 = arith.constant 0 : index
    %c0_14 = arith.constant 0 : index
    %16 = vector.load %arg7[%c0_12, %c0_13, %c0_14] : memref<12x16x1xf32, #tpu.memory_space<vmem>>, vector<12x16x1xf32>
    %c0_15 = arith.constant 0 : index
    %c0_16 = arith.constant 0 : index
    %17 = vector.load %arg6[%c0_15, %c0_16] : memref<1x128xf32, #tpu.memory_space<vmem>>, vector<1x128xf32>
    %18 = vector.shape_cast %17 : vector<1x128xf32> to vector<1x1x128xf32>
    %19 = vector.broadcast %16 : vector<12x16x1xf32> to vector<12x16x128xf32>
    %20 = vector.broadcast %18 : vector<1x1x128xf32> to vector<12x16x128xf32>
    %21 = arith.mulf %19, %20 : vector<12x16x128xf32>
    %c0_17 = arith.constant 0 : index
    %c0_18 = arith.constant 0 : index
    %22 = vector.load %arg8[%c0_17, %c0_18] : memref<12x16xf32, #tpu.memory_space<vmem>>, vector<12x16xf32>
    %c0_19 = arith.constant 0 : index
    %c0_20 = arith.constant 0 : index
    %c0_21 = arith.constant 0 : index
    %23 = vector.load %arg9[%c0_19, %c0_20, %c0_21] : memref<1x1x128xf32, #tpu.memory_space<vmem>>, vector<1x1x128xf32>
    %c0_22 = arith.constant 0 : index
    %c0_23 = arith.constant 0 : index
    %24 = vector.load %arg10[%c0_22, %c0_23] : memref<1x128xf32, #tpu.memory_space<vmem>>, vector<1x128xf32>
    %25 = vector.shape_cast %15 : vector<12x128xf32> to vector<12x1x128xf32>
    %26 = vector.shape_cast %7 : vector<16x128xf32> to vector<1x16x128xf32>
    %27 = vector.broadcast %25 : vector<12x1x128xf32> to vector<12x16x128xf32>
    %28 = vector.broadcast %26 : vector<1x16x128xf32> to vector<12x16x128xf32>
    %29 = arith.addf %27, %28 : vector<12x16x128xf32>
    %30 = arith.addf %29, %21 : vector<12x16x128xf32>
    %cst_24 = arith.constant 0.000000e+00 : f32
    %31 = vector.broadcast %cst_24 : f32 to vector<12x16x128xf32>
    %32 = arith.cmpf ogt, %30, %31 : vector<12x16x128xf32>
    %cst_25 = arith.constant 2.000000e-01 : f32
    %33 = vector.broadcast %cst_25 : f32 to vector<12x16x128xf32>
    %34 = arith.mulf %33, %30 : vector<12x16x128xf32>
    %35 = arith.select %32, %30, %34 : vector<12x16x128xi1>, vector<12x16x128xf32>
    %36 = vector.broadcast %23 : vector<1x1x128xf32> to vector<12x16x128xf32>
    %37 = arith.mulf %35, %36 : vector<12x16x128xf32>
    %cst_26 = arith.constant dense<0.000000e+00> : vector<12x16xf32>
    %38 = vector.multi_reduction <add>, %37, %cst_26 [2] : vector<12x16x128xf32> to vector<12x16xf32>
    %cst_27 = arith.constant 0.000000e+00 : f32
    %39 = vector.broadcast %cst_27 : f32 to vector<12x16xf32>
    %40 = arith.cmpf ogt, %22, %39 : vector<12x16xf32>
    %cst_28 = arith.constant -1.000000e+30 : f32
    %41 = vector.broadcast %cst_28 : f32 to vector<12x16xf32>
    %42 = arith.select %40, %38, %41 : vector<12x16xi1>, vector<12x16xf32>
    %cst_29 = arith.constant dense<0xFF800000> : vector<12xf32>
    %43 = vector.multi_reduction <maximumf>, %42, %cst_29 [1] : vector<12x16xf32> to vector<12xf32>
    %44 = vector.shape_cast %43 : vector<12xf32> to vector<12x1xf32>
    %45 = vector.broadcast %44 : vector<12x1xf32> to vector<12x16xf32>
    %46 = arith.subf %42, %45 : vector<12x16xf32>
    %47 = math.exp %46 : vector<12x16xf32>
    %cst_30 = arith.constant 0.000000e+00 : f32
    %48 = vector.broadcast %cst_30 : f32 to vector<12x16xf32>
    %49 = arith.select %40, %47, %48 : vector<12x16xi1>, vector<12x16xf32>
    %cst_31 = arith.constant dense<0.000000e+00> : vector<12xf32>
    %50 = vector.multi_reduction <add>, %49, %cst_31 [1] : vector<12x16xf32> to vector<12xf32>
    %51 = vector.shape_cast %50 : vector<12xf32> to vector<12x1xf32>
    %52 = arith.truncf %49 : vector<12x16xf32> to vector<12x16xbf16>
    %53 = arith.truncf %7 : vector<16x128xf32> to vector<16x128xbf16>
    %cst_32 = arith.constant dense<0.000000e+00> : vector<12x128xf32>
    %54 = tpu.matmul %52, %53, %cst_32 {dimension_numbers = #tpu.dot_dimension_numbers<[1], [0], [0], [1], [0, 0, 1, 1], [], []>} : vector<12x16xbf16>, vector<16x128xbf16>, vector<12x128xf32> -> vector<12x128xf32>
    %cst_33 = arith.constant 9.99999996E-13 : f32
    %55 = vector.broadcast %cst_33 : f32 to vector<12x1xf32>
    %56 = arith.maximumf %51, %55 : vector<12x1xf32>
    %57 = tpu.reciprocal %56 {approx = true} : vector<12x1xf32> -> vector<12x1xf32>
    %58 = vector.broadcast %57 : vector<12x1xf32> to vector<12x128xf32>
    %59 = arith.mulf %54, %58 : vector<12x128xf32>
    %60 = vector.broadcast %24 : vector<1x128xf32> to vector<12x128xf32>
    %61 = arith.addf %59, %60 : vector<12x128xf32>
    %cst_34 = arith.constant 0.000000e+00 : f32
    %62 = vector.broadcast %cst_34 : f32 to vector<12x128xf32>
    %63 = arith.maximumf %61, %62 : vector<12x128xf32>
    %c0_35 = arith.constant 0 : index
    %c0_36 = arith.constant 0 : index
    %64 = vector.load %arg11[%c0_35, %c0_36] : memref<12x128xf32, #tpu.memory_space<vmem>>, vector<12x128xf32>
    tpu.vector_store %arg11[%c0_35, %c0_36], %63 {strides = array<i32>} : memref<12x128xf32, #tpu.memory_space<vmem>>, vector<12x128xf32>,
    return
  }
}

module attributes {stable_mosaic.version = 11 : i64} {
  func.func @_gat_bipartite_kernel(%arg0: memref<16x128xf32, #tpu.memory_space<vmem>>, %arg1: memref<12x128xf32, #tpu.memory_space<vmem>>, %arg2: memref<128x128xf32, #tpu.memory_space<vmem>>, %arg3: memref<1x128xf32, #tpu.memory_space<vmem>>, %arg4: memref<128x128xf32, #tpu.memory_space<vmem>>, %arg5: memref<1x128xf32, #tpu.memory_space<vmem>>, %arg6: memref<1x128xf32, #tpu.memory_space<vmem>>, %arg7: memref<12x16x1xf32, #tpu.memory_space<vmem>>, %arg8: memref<12x16xf32, #tpu.memory_space<vmem>>, %arg9: memref<1x1x128xf32, #tpu.memory_space<vmem>>, %arg10: memref<1x128xf32, #tpu.memory_space<vmem>>, %arg11: memref<128x128xf32, #tpu.memory_space<vmem>>, %arg12: memref<1x128xf32, #tpu.memory_space<vmem>>, %arg13: memref<12x128xf32, #tpu.memory_space<vmem>>) attributes {dimension_semantics = [], scalar_prefetch = 0 : i64, scratch_operands = 0 : i64, tpu.core_type = #tpu.core_type<tc>} {
    %c0 = arith.constant 0 : index
    %c0_0 = arith.constant 0 : index
    %0 = vector.load %arg0[%c0, %c0_0] : memref<16x128xf32, #tpu.memory_space<vmem>>, vector<16x128xf32>
    %c0_1 = arith.constant 0 : index
    %c0_2 = arith.constant 0 : index
    %1 = vector.load %arg2[%c0_1, %c0_2] : memref<128x128xf32, #tpu.memory_space<vmem>>, vector<128x128xf32>
    %2 = arith.truncf %0 : vector<16x128xf32> to vector<16x128xbf16>
    %3 = arith.truncf %1 : vector<128x128xf32> to vector<128x128xbf16>
    %cst = arith.constant dense<0.000000e+00> : vector<16x128xf32>
    %4 = tpu.matmul %2, %3, %cst {dimension_numbers = #tpu.dot_dimension_numbers<[1], [0], [0], [1], [0, 0, 1, 1], [], []>} : vector<16x128xbf16>, vector<128x128xbf16>, vector<16x128xf32> -> vector<16x128xf32>
    %c0_3 = arith.constant 0 : index
    %c0_4 = arith.constant 0 : index
    %5 = vector.load %arg3[%c0_3, %c0_4] : memref<1x128xf32, #tpu.memory_space<vmem>>, vector<1x128xf32>
    %6 = vector.broadcast %5 : vector<1x128xf32> to vector<16x128xf32>
    %7 = arith.addf %4, %6 : vector<16x128xf32>
    %c0_5 = arith.constant 0 : index
    %c0_6 = arith.constant 0 : index
    %8 = vector.load %arg1[%c0_5, %c0_6] : memref<12x128xf32, #tpu.memory_space<vmem>>, vector<12x128xf32>
    %c0_7 = arith.constant 0 : index
    %c0_8 = arith.constant 0 : index
    %9 = vector.load %arg4[%c0_7, %c0_8] : memref<128x128xf32, #tpu.memory_space<vmem>>, vector<128x128xf32>
    %10 = arith.truncf %8 : vector<12x128xf32> to vector<12x128xbf16>
    %11 = arith.truncf %9 : vector<128x128xf32> to vector<128x128xbf16>
    %cst_9 = arith.constant dense<0.000000e+00> : vector<12x128xf32>
    %12 = tpu.matmul %10, %11, %cst_9 {dimension_numbers = #tpu.dot_dimension_numbers<[1], [0], [0], [1], [0, 0, 1, 1], [], []>} : vector<12x128xbf16>, vector<128x128xbf16>, vector<12x128xf32> -> vector<12x128xf32>
    %c0_10 = arith.constant 0 : index
    %c0_11 = arith.constant 0 : index
    %13 = vector.load %arg5[%c0_10, %c0_11] : memref<1x128xf32, #tpu.memory_space<vmem>>, vector<1x128xf32>
    %14 = vector.broadcast %13 : vector<1x128xf32> to vector<12x128xf32>
    %15 = arith.addf %12, %14 : vector<12x128xf32>
    %c0_12 = arith.constant 0 : index
    %c0_13 = arith.constant 0 : index
    %c0_14 = arith.constant 0 : index
    %16 = vector.load %arg7[%c0_12, %c0_13, %c0_14] : memref<12x16x1xf32, #tpu.memory_space<vmem>>, vector<12x16x1xf32>
    %c0_15 = arith.constant 0 : index
    %c0_16 = arith.constant 0 : index
    %17 = vector.load %arg6[%c0_15, %c0_16] : memref<1x128xf32, #tpu.memory_space<vmem>>, vector<1x128xf32>
    %18 = vector.shape_cast %17 : vector<1x128xf32> to vector<1x1x128xf32>
    %19 = vector.broadcast %16 : vector<12x16x1xf32> to vector<12x16x128xf32>
    %20 = vector.broadcast %18 : vector<1x1x128xf32> to vector<12x16x128xf32>
    %21 = arith.mulf %19, %20 : vector<12x16x128xf32>
    %c0_17 = arith.constant 0 : index
    %c0_18 = arith.constant 0 : index
    %22 = vector.load %arg8[%c0_17, %c0_18] : memref<12x16xf32, #tpu.memory_space<vmem>>, vector<12x16xf32>
    %c0_19 = arith.constant 0 : index
    %c0_20 = arith.constant 0 : index
    %c0_21 = arith.constant 0 : index
    %23 = vector.load %arg9[%c0_19, %c0_20, %c0_21] : memref<1x1x128xf32, #tpu.memory_space<vmem>>, vector<1x1x128xf32>
    %c0_22 = arith.constant 0 : index
    %c0_23 = arith.constant 0 : index
    %24 = vector.load %arg10[%c0_22, %c0_23] : memref<1x128xf32, #tpu.memory_space<vmem>>, vector<1x128xf32>
    %25 = vector.shape_cast %15 : vector<12x128xf32> to vector<12x1x128xf32>
    %26 = vector.shape_cast %7 : vector<16x128xf32> to vector<1x16x128xf32>
    %27 = vector.broadcast %25 : vector<12x1x128xf32> to vector<12x16x128xf32>
    %28 = vector.broadcast %26 : vector<1x16x128xf32> to vector<12x16x128xf32>
    %29 = arith.addf %27, %28 : vector<12x16x128xf32>
    %30 = arith.addf %29, %21 : vector<12x16x128xf32>
    %cst_24 = arith.constant 0.000000e+00 : f32
    %31 = vector.broadcast %cst_24 : f32 to vector<12x16x128xf32>
    %32 = arith.cmpf ogt, %30, %31 : vector<12x16x128xf32>
    %cst_25 = arith.constant 2.000000e-01 : f32
    %33 = vector.broadcast %cst_25 : f32 to vector<12x16x128xf32>
    %34 = arith.mulf %33, %30 : vector<12x16x128xf32>
    %35 = arith.select %32, %30, %34 : vector<12x16x128xi1>, vector<12x16x128xf32>
    %36 = vector.broadcast %23 : vector<1x1x128xf32> to vector<12x16x128xf32>
    %37 = arith.mulf %35, %36 : vector<12x16x128xf32>
    %cst_26 = arith.constant dense<0.000000e+00> : vector<12x16xf32>
    %38 = vector.multi_reduction <add>, %37, %cst_26 [2] : vector<12x16x128xf32> to vector<12x16xf32>
    %cst_27 = arith.constant 0.000000e+00 : f32
    %39 = vector.broadcast %cst_27 : f32 to vector<12x16xf32>
    %40 = arith.cmpf ogt, %22, %39 : vector<12x16xf32>
    %cst_28 = arith.constant -1.000000e+30 : f32
    %41 = vector.broadcast %cst_28 : f32 to vector<12x16xf32>
    %42 = arith.select %40, %38, %41 : vector<12x16xi1>, vector<12x16xf32>
    %cst_29 = arith.constant dense<0xFF800000> : vector<12xf32>
    %43 = vector.multi_reduction <maximumf>, %42, %cst_29 [1] : vector<12x16xf32> to vector<12xf32>
    %44 = vector.shape_cast %43 : vector<12xf32> to vector<12x1xf32>
    %45 = vector.broadcast %44 : vector<12x1xf32> to vector<12x16xf32>
    %46 = arith.subf %42, %45 : vector<12x16xf32>
    %47 = math.exp %46 : vector<12x16xf32>
    %cst_30 = arith.constant 0.000000e+00 : f32
    %48 = vector.broadcast %cst_30 : f32 to vector<12x16xf32>
    %49 = arith.select %40, %47, %48 : vector<12x16xi1>, vector<12x16xf32>
    %cst_31 = arith.constant dense<0.000000e+00> : vector<12xf32>
    %50 = vector.multi_reduction <add>, %49, %cst_31 [1] : vector<12x16xf32> to vector<12xf32>
    %51 = vector.shape_cast %50 : vector<12xf32> to vector<12x1xf32>
    %52 = arith.truncf %49 : vector<12x16xf32> to vector<12x16xbf16>
    %53 = arith.truncf %7 : vector<16x128xf32> to vector<16x128xbf16>
    %cst_32 = arith.constant dense<0.000000e+00> : vector<12x128xf32>
    %54 = tpu.matmul %52, %53, %cst_32 {dimension_numbers = #tpu.dot_dimension_numbers<[1], [0], [0], [1], [0, 0, 1, 1], [], []>} : vector<12x16xbf16>, vector<16x128xbf16>, vector<12x128xf32> -> vector<12x128xf32>
    %cst_33 = arith.constant 9.99999996E-13 : f32
    %55 = vector.broadcast %cst_33 : f32 to vector<12x1xf32>
    %56 = arith.maximumf %51, %55 : vector<12x1xf32>
    %57 = tpu.reciprocal %56 {approx = true} : vector<12x1xf32> -> vector<12x1xf32>
    %58 = vector.broadcast %57 : vector<12x1xf32> to vector<12x128xf32>
    %59 = arith.mulf %54, %58 : vector<12x128xf32>
    %60 = vector.broadcast %24 : vector<1x128xf32> to vector<12x128xf32>
    %61 = arith.addf %59, %60 : vector<12x128xf32>
    %cst_34 = arith.constant 0.000000e+00 : f32
    %62 = vector.broadcast %cst_34 : f32 to vector<12x128xf32>
    %63 = arith.maximumf %61, %62 : vector<12x128xf32>
    %c0_35 = arith.constant 0 : index
    %c0_36 = arith.constant 0 : index
    %64 = vector.load %arg11[%c0_35, %c0_36] : memref<128x128xf32, #tpu.memory_space<vmem>>, vector<128x128xf32>
    %65 = arith.truncf %63 : vector<12x128xf32> to vector<12x128xbf16>
    %66 = arith.truncf %64 : vector<128x128xf32> to vector<128x128xbf16>
    %cst_37 = arith.constant dense<0.000000e+00> : vector<12x128xf32>
    %67 = tpu.matmul %65, %66, %cst_37 {dimension_numbers = #tpu.dot_dimension_numbers<[1], [0], [0], [1], [0, 0, 1, 1], [], []>} : vector<12x128xbf16>, vector<128x128xbf16>, vector<12x128xf32> -> vector<12x128xf32>
    %c0_38 = arith.constant 0 : index
    %c0_39 = arith.constant 0 : index
    %68 = vector.load %arg12[%c0_38, %c0_39] : memref<1x128xf32, #tpu.memory_space<vmem>>, vector<1x128xf32>
    %69 = vector.broadcast %68 : vector<1x128xf32> to vector<12x128xf32>
    %70 = arith.addf %67, %69 : vector<12x128xf32>
    %c0_40 = arith.constant 0 : index
    %c0_41 = arith.constant 0 : index
    %71 = vector.load %arg13[%c0_40, %c0_41] : memref<12x128xf32, #tpu.memory_space<vmem>>, vector<12x128xf32>
    tpu.vector_store %arg13[%c0_40, %c0_41], %70 {strides = array<i32>} : memref<12x128xf32, #tpu.memory_space<vmem>>, vector<12x128xf32>,
    return
  }
}

module attributes {stable_mosaic.version = 11 : i64} {
  func.func @_decoder_kernel(%arg0: memref<10x128xf32, #tpu.memory_space<vmem>>, %arg1: memref<10x128xf32, #tpu.memory_space<vmem>>, %arg2: memref<128x128xf32, #tpu.memory_space<vmem>>, %arg3: memref<128x128xf32, #tpu.memory_space<vmem>>, %arg4: memref<1x128xf32, #tpu.memory_space<vmem>>, %arg5: memref<128x128xf32, #tpu.memory_space<vmem>>, %arg6: memref<1x128xf32, #tpu.memory_space<vmem>>, %arg7: memref<10x128xf32, #tpu.memory_space<vmem>>) attributes {dimension_semantics = [], scalar_prefetch = 0 : i64, scratch_operands = 0 : i64, tpu.core_type = #tpu.core_type<tc>} {
    %c0 = arith.constant 0 : index
    %c0_0 = arith.constant 0 : index
    %0 = vector.load %arg0[%c0, %c0_0] : memref<10x128xf32, #tpu.memory_space<vmem>>, vector<10x128xf32>
    %c0_1 = arith.constant 0 : index
    %c0_2 = arith.constant 0 : index
    %1 = vector.load %arg2[%c0_1, %c0_2] : memref<128x128xf32, #tpu.memory_space<vmem>>, vector<128x128xf32>
    %2 = arith.truncf %0 : vector<10x128xf32> to vector<10x128xbf16>
    %3 = arith.truncf %1 : vector<128x128xf32> to vector<128x128xbf16>
    %cst = arith.constant dense<0.000000e+00> : vector<10x128xf32>
    %4 = tpu.matmul %2, %3, %cst {dimension_numbers = #tpu.dot_dimension_numbers<[1], [0], [0], [1], [0, 0, 1, 1], [], []>} : vector<10x128xbf16>, vector<128x128xbf16>, vector<10x128xf32> -> vector<10x128xf32>
    %c0_3 = arith.constant 0 : index
    %c0_4 = arith.constant 0 : index
    %5 = vector.load %arg1[%c0_3, %c0_4] : memref<10x128xf32, #tpu.memory_space<vmem>>, vector<10x128xf32>
    %c0_5 = arith.constant 0 : index
    %c0_6 = arith.constant 0 : index
    %6 = vector.load %arg3[%c0_5, %c0_6] : memref<128x128xf32, #tpu.memory_space<vmem>>, vector<128x128xf32>
    %7 = arith.truncf %5 : vector<10x128xf32> to vector<10x128xbf16>
    %8 = arith.truncf %6 : vector<128x128xf32> to vector<128x128xbf16>
    %cst_7 = arith.constant dense<0.000000e+00> : vector<10x128xf32>
    %9 = tpu.matmul %7, %8, %cst_7 {dimension_numbers = #tpu.dot_dimension_numbers<[1], [0], [0], [1], [0, 0, 1, 1], [], []>} : vector<10x128xbf16>, vector<128x128xbf16>, vector<10x128xf32> -> vector<10x128xf32>
    %10 = arith.addf %4, %9 : vector<10x128xf32>
    %c0_8 = arith.constant 0 : index
    %c0_9 = arith.constant 0 : index
    %11 = vector.load %arg4[%c0_8, %c0_9] : memref<1x128xf32, #tpu.memory_space<vmem>>, vector<1x128xf32>
    %12 = vector.broadcast %11 : vector<1x128xf32> to vector<10x128xf32>
    %13 = arith.addf %10, %12 : vector<10x128xf32>
    %cst_10 = arith.constant 0.000000e+00 : f32
    %14 = vector.broadcast %cst_10 : f32 to vector<10x128xf32>
    %15 = arith.maximumf %13, %14 : vector<10x128xf32>
    %c0_11 = arith.constant 0 : index
    %c0_12 = arith.constant 0 : index
    %16 = vector.load %arg5[%c0_11, %c0_12] : memref<128x128xf32, #tpu.memory_space<vmem>>, vector<128x128xf32>
    %17 = arith.truncf %15 : vector<10x128xf32> to vector<10x128xbf16>
    %18 = arith.truncf %16 : vector<128x128xf32> to vector<128x128xbf16>
    %cst_13 = arith.constant dense<0.000000e+00> : vector<10x128xf32>
    %19 = tpu.matmul %17, %18, %cst_13 {dimension_numbers = #tpu.dot_dimension_numbers<[1], [0], [0], [1], [0, 0, 1, 1], [], []>} : vector<10x128xbf16>, vector<128x128xbf16>, vector<10x128xf32> -> vector<10x128xf32>
    %c0_14 = arith.constant 0 : index
    %c0_15 = arith.constant 0 : index
    %20 = vector.load %arg6[%c0_14, %c0_15] : memref<1x128xf32, #tpu.memory_space<vmem>>, vector<1x128xf32>
    %21 = vector.broadcast %20 : vector<1x128xf32> to vector<10x128xf32>
    %22 = arith.addf %19, %21 : vector<10x128xf32>
    %c0_16 = arith.constant 0 : index
    %c0_17 = arith.constant 0 : index
    %23 = vector.load %arg7[%c0_16, %c0_17] : memref<10x128xf32, #tpu.memory_space<vmem>>, vector<10x128xf32>
    tpu.vector_store %arg7[%c0_16, %c0_17], %22 {strides = array<i32>} : memref<10x128xf32, #tpu.memory_space<vmem>>, vector<10x128xf32>,
    return
  }
}

</mosaic_0001>

<bundles_post_ra>
// kernel: meta_gatv2_forward.10
= control target key start
LH: loop header
LB: loop body
LE: loop exit
PB: predicated region body
PF: predicated region fallthrough
CT: control target
= control target key end

     0   :  { %v972_v3 = vmov 0   ;;  %v973_v52 = vmov 0.0   ;;  %v83_v53 = vlaneseq  ;;  %v974_v55 = vmov 1966171168   ;;  %s1503_s1 = inlined_call_operand.vmem [shape: f32[128,256], index: 1, kind: input, shape index: {}]   ;;  %s1504_s0 = inlined_call_operand.vmem [shape: f32[16,128], index: 0, kind: input, shape index: {}]   ;;  %s1505_s2 = inlined_call_operand.vmem [shape: f32[1,256], index: 2, kind: input, shape index: {}]   ;;  %s1506_s4 = inlined_call_operand.vmem [shape: f32[1,1,128], index: 4, kind: input, shape index: {}]   ;;  %s1507_s3 = inlined_call_operand.vmem [shape: f32[16,16], index: 3, kind: input, shape index: {}]   ;;  %s1508_s6 = inlined_call_operand.vmem [shape: f32[128,128], index: 6, kind: input, shape index: {}]   ;;  %s1509_s5 = inlined_call_operand.vmem [shape: f32[1,128], index: 5, kind: input, shape index: {}]   ;;  %s1510_s7 = inlined_call_operand.vmem [shape: f32[1,128], index: 7, kind: input, shape index: {}]   ;;  %s1511_s8 = inlined_call_operand.vmem [shape: f32[16,128], index: 8, kind: output, shape index: {}]  }
   0x1   :  { %v33_v0 = vld [vmem:[%s1503_s1 + $0x8] sm:$0xff]  ;;  %v35_v1 = vld [vmem:[%s1503_s1 + $0x18] sm:$0xff]  ;;  %v32_v2 = vld [vmem:[%s1503_s1] sm:$0xff]  ;;  %125 = vmatprep.mubr.bf16.mxu0 %v972_v3  ;;  %934 = vmatprep.subr.bf16.mxu1 %v973_v52  ;;  %v144_v56 = vunpack.c.l.s4 %v974_v55 }
   0x2   :  { %v66_v4 = vpack.c.bf16 %v35_v1, %v33_v0  ;;  %v34_v5 = vld [vmem:[%s1503_s1 + $0x10] sm:$0xff]  ;;  %v37_v6 = vld [vmem:[%s1503_s1 + $0x28] sm:$0xff]  ;;  %v39_v7 = vld [vmem:[%s1503_s1 + $0x38] sm:$0xff]  ;;  %v1125_v54 = vshrl.u32 %v83_v53, 7 }
   0x3   :  { %v65_v8 = vpack.c.bf16 %v34_v5, %v32_v2  ;;  %v68_v9 = vpack.c.bf16 %v39_v7, %v37_v6  ;;  %v36_v10 = vld [vmem:[%s1503_s1 + $0x20] sm:$0xff]  ;;  %v38_v11 = vld [vmem:[%s1503_s1 + $0x30] sm:$0xff]  ;;  %v41_v12 = vld [vmem:[%s1503_s1 + $0x48] sm:$0xff]  ;;  %v145_v60 = vunpack.c.0.s8 %v144_v56 }
   0x4   :  { %93 = vmatprep.subr.bf16.mxu0 %v66_v4  ;;  %v43_v13 = vld [vmem:[%s1503_s1 + $0x58] sm:$0xff]  ;;  %v67_v14 = vpack.c.bf16 %v38_v11, %v36_v10  ;;  %v40_v16 = vld [vmem:[%s1503_s1 + $0x40] sm:$0xff]  ;;  %v42_v17 = vld [vmem:[%s1503_s1 + $0x50] sm:$0xff]  ;;  %v89_v57 = vsub.s32 1, %v1125_v54  ;;  %v1132_v59 = vsub.s32 0, %v1125_v54 }
   0x5   :  { %94 = vmatpush1.bf16.msra.mxu0 %v65_v8  ;;  %v70_v15 = vpack.c.bf16 %v43_v13, %v41_v12  ;;  %v45_v18 = vld [vmem:[%s1503_s1 + $0x68] sm:$0xff]  ;;  %v47_v19 = vld [vmem:[%s1503_s1 + $0x78] sm:$0xff]  ;;  %v69_v20 = vpack.c.bf16 %v42_v17, %v40_v16  ;;  %v44_v22 = vld [vmem:[%s1503_s1 + $0x60] sm:$0xff]  ;;  %v1136_v0 = vsub.s32 %v145_v60, %v1125_v54 }
   0x6   :  { %95 = vmatprep.subr.bf16.mxu0 %v68_v9  ;;  %v72_v21 = vpack.c.bf16 %v47_v19, %v45_v18  ;;  %v46_v23 = vld [vmem:[%s1503_s1 + $0x70] sm:$0xff]  ;;  %v49_v24 = vld [vmem:[%s1503_s1 + $0x88] sm:$0xff]  ;;  %v51_v25 = vld [vmem:[%s1503_s1 + $0x98] sm:$0xff] }
   0x7   :  { %v71_v26 = vpack.c.bf16 %v46_v23, %v44_v22  ;;  %v74_v27 = vpack.c.bf16 %v51_v25, %v49_v24  ;;  %v48_v28 = vld [vmem:[%s1503_s1 + $0x80] sm:$0xff]  ;;  %v50_v29 = vld [vmem:[%s1503_s1 + $0x90] sm:$0xff]  ;;  %v53_v30 = vld [vmem:[%s1503_s1 + $0xa8] sm:$0xff] }
   0x8   :  { %v55_v31 = vld [vmem:[%s1503_s1 + $0xb8] sm:$0xff]  ;;  %v73_v32 = vpack.c.bf16 %v50_v29, %v48_v28  ;;  %v52_v34 = vld [vmem:[%s1503_s1 + $0xa0] sm:$0xff]  ;;  %v54_v35 = vld [vmem:[%s1503_s1 + $0xb0] sm:$0xff] }
   0x9   :  { %96 = vmatpush1.bf16.msra.mxu0 %v67_v14  ;;  %v76_v33 = vpack.c.bf16 %v55_v31, %v53_v30  ;;  %v57_v36 = vld [vmem:[%s1503_s1 + $0xc8] sm:$0xff]  ;;  %v59_v37 = vld [vmem:[%s1503_s1 + $0xd8] sm:$0xff]  ;;  %v75_v38 = vpack.c.bf16 %v54_v35, %v52_v34  ;;  %v56_v40 = vld [vmem:[%s1503_s1 + $0xc0] sm:$0xff] }
   0xa   :  { %97 = vmatprep.subr.bf16.mxu0 %v70_v15  ;;  %v78_v39 = vpack.c.bf16 %v59_v37, %v57_v36  ;;  %v58_v41 = vld [vmem:[%s1503_s1 + $0xd0] sm:$0xff]  ;;  %v61_v42 = vld [vmem:[%s1503_s1 + $0xe8] sm:$0xff]  ;;  %v63_v43 = vld [vmem:[%s1503_s1 + $0xf8] sm:$0xff] }
   0xb   :  { %v77_v44 = vpack.c.bf16 %v58_v41, %v56_v40  ;;  %v80_v45 = vpack.c.bf16 %v63_v43, %v61_v42  ;;  %v60_v46 = vld [vmem:[%s1503_s1 + $0xe0] sm:$0xff]  ;;  %v62_v47 = vld [vmem:[%s1503_s1 + $0xf0] sm:$0xff]  ;;  %v31_v50 = vld [vmem:[%s1504_s0 + $0x8] sm:$0xff] }
   0xc   :  { %v79_v48 = vpack.c.bf16 %v62_v47, %v60_v46  ;;  %v30_v49 = vld [vmem:[%s1504_s0] sm:$0xff] }
   0xd   :  { %98 = vmatpush1.bf16.msra.mxu0 %v69_v20  ;;  %v64_v51 = vpack.c.bf16 %v31_v50, %v30_v49  ;;  %v81_v58 = vld [vmem:[%s1505_s2] sm:$0x3] }
   0xe   :  { %99 = vmatprep.subr.bf16.mxu0 %v72_v21  ;;  %v90_v61 = vrot.slane %v81_v58, %v89_v57  ;;  %v86_v62 = vrot.slane %v81_v58, %v1132_v59 }
  0x11   :  { %100 = vmatpush1.bf16.msra.mxu0 %v71_v26  ;;  %v1169_v26 = vld [vmem:[%s1506_s4] ss:$0 sm:$0xff] }
  0x12   :  { %101 = vmatprep.subr.bf16.mxu0 %v74_v27 }
  0x15   :  { %102 = vmatpush1.bf16.msra.mxu0 %v73_v32 }
  0x16   :  { %103 = vmatprep.subr.bf16.mxu0 %v76_v33 }
  0x19   :  { %104 = vmatpush1.bf16.msra.mxu0 %v75_v38 }
  0x1a   :  { %105 = vmatprep.subr.bf16.mxu0 %v78_v39 }
  0x1d   :  { %106 = vmatpush1.bf16.msra.mxu0 %v77_v44 }
  0x1e   :  { %107 = vmatprep.subr.bf16.mxu0 %v80_v45 }
  0x21   :  { %108 = vmatpush1.bf16.msra.mxu0 %v79_v48 }
  0x24   :  { %126 = vmatmul.mubr.bf16.vlgmr.msra.gmra.mrb[0].mxu0 %v64_v51 }
  0xf7   :  { %v127_v63 = vpop.f32.mrb[0].mxu0 }
  0xf8   :  { %v129_v1 = vpop.f32.mrb[1].mxu0  ;;  %v1138_v4 = vadd.f32 %v127_v63, %v86_v62 }
  0xf9   :  { %v130_v2 = vadd.f32 %v129_v1, %v90_v61  ;;  %v131_v3 = vpop.f32.mrb[2].mxu0 }
  0xfa   :  { %v1140_v5 = vadd.f32 %v131_v3, %v86_v62  ;;  %v133_v6 = vpop.f32.mrb[3].mxu0 }
  0xfb   :  { %v149_v7 = vrot.slane %v130_v2, %v1136_v0  ;;  %v134_v8 = vadd.f32 %v133_v6, %v90_v61  ;;  %v142_v10 = vcombine.high %v130_v2, %v130_v2 }
  0xfc   :  { %v779_v9 = vpack.c.bf16 %v1140_v5, %v1138_v4 }
  0xfd   :  { %v165_v11 = vrot.slane %v149_v7, %v1136_v0  ;;  %v157_v12 = vcombine.high %v149_v7, %v149_v7  ;;  %v198_v13 = vrot.slane %v134_v8, %v1136_v0  ;;  %v1151_v17 = vrot.slane %v142_v10, %v1136_v0 }
  0xfe   :  { %935 = vmatpush3.bf16.msra.mxu1 %v779_v9  ;;  %v191_v18 = vcombine.high %v134_v8, %v134_v8 }
  0xff   :  { %v187_v14 = vcombine.high %v165_v11, %v165_v11  ;;  %940 = vmatprep.subr.bf16.mxu1 %v973_v52  ;;  %v243_v15 = vrot.slane %v165_v11, %v1132_v59  ;;  %v214_v16 = vrot.slane %v198_v13, %v1136_v0  ;;  %v1154_v19 = vrot.slane %v157_v12, %v1136_v0 }
 0x100   :  { %v206_v20 = vcombine.high %v198_v13, %v198_v13  ;;  %v1161_v24 = vrot.slane %v1151_v17, %v1136_v0  ;;  %v1164_v25 = vrot.slane %v191_v18, %v1136_v0  ;;  %v158_v47 = vcombine.high %v1151_v17, %v1151_v17 }
 0x101   :  { %v251_v21 = vrot.slane %v187_v14, %v1132_v59  ;;  %v275_v22 = vrot.slane %v214_v16, %v1132_v59  ;;  %v320_v23 = vadd.f32 %v243_v15, %v1138_v4  ;;  %v247_v29 = vrot.slane %v1154_v19, %v1132_v59 }
 0x102   :  { %v1172_v28 = vrot.slane %v206_v20, %v1136_v0  ;;  %v321_v30 = vadd.f32 %v243_v15, %v1140_v5  ;;  %v259_v39 = vrot.slane %v1161_v24, %v1132_v59  ;;  %v236_v40 = vcombine.high %v214_v16, %v214_v16 }
 0x103   :  { %vm352_vm0 = vcmp.gt.f32.partialorder %v320_v23, 0.0  ;;  %v384_v27 = vmul.f32 0.2, %v320_v23  ;;  %v336_v31 = vadd.f32 %v275_v22, %v1138_v4  ;;  %v337_v33 = vadd.f32 %v275_v22, %v1140_v5 }
 0x104   :  { %v324_v34 = vadd.f32 %v251_v21, %v1138_v4  ;;  %v325_v35 = vadd.f32 %v251_v21, %v1140_v5  ;;  %v322_v37 = vadd.f32 %v247_v29, %v1138_v4  ;;  %vm353_vm1 = vcmp.gt.f32.partialorder %v321_v30, 0.0 }
 0x105   :  { %v416_v32 = vsel %vm352_vm0, %v320_v23, %v384_v27  ;;  %v385_v38 = vmul.f32 0.2, %v321_v30  ;;  %v323_v41 = vadd.f32 %v247_v29, %v1140_v5  ;;  %v400_v42 = vmul.f32 0.2, %v336_v31 }
 0x106   :  { %v454_v36 = vmul.f32 %v1169_v26, %v416_v32  ;;  %vm354_vm2 = vcmp.gt.f32.partialorder %v322_v37, 0.0  ;;  %v386_v43 = vmul.f32 0.2, %v322_v37  ;;  %vm368_vm3 = vcmp.gt.f32.partialorder %v336_v31, 0.0 }
 0x107   :  { %v417_v44 = vsel %vm353_vm1, %v321_v30, %v385_v38  ;;  %v279_v45 = vrot.slane %v1172_v28, %v1132_v59  ;;  %vm355_vm4 = vcmp.gt.f32.partialorder %v323_v41, 0.0  ;;  %v387_v46 = vmul.f32 0.2, %v323_v41 }
 0x108   :  { %486 = vadd.xlane.f32.xlu0 %v454_v36  ;;  %v1192_v48 = vrot.slane %v1164_v25, %v1136_v0  ;;  %v418_v49 = vsel %vm354_vm2, %v322_v37, %v386_v43  ;;  %v455_v50 = vmul.f32 %v1169_v26, %v417_v44  ;;  %v283_v51 = vrot.slane %v236_v40, %v1132_v59 }
 0x109   :  { %v456_v55 = vmul.f32 %v1169_v26, %v418_v49  ;;  %v432_v56 = vsel %vm368_vm3, %v336_v31, %v400_v42  ;;  %v388_v57 = vmul.f32 0.2, %v324_v34  ;;  %v419_v58 = vsel %vm355_vm4, %v323_v41, %v387_v46 }
 0x10a   :  { %v401_v60 = vmul.f32 0.2, %v337_v33  ;;  %vm356_vm5 = vcmp.gt.f32.partialorder %v324_v34, 0.0  ;;  %v328_v61 = vadd.f32 %v259_v39, %v1138_v4  ;;  %vm369_vm6 = vcmp.gt.f32.partialorder %v337_v33, 0.0 }
 0x10b   :  { %490 = vadd.xlane.f32.xlu1 %v456_v55  ;;  %v329_v62 = vadd.f32 %v259_v39, %v1140_v5  ;;  %v338_v63 = vadd.f32 %v279_v45, %v1138_v4  ;;  %v339_v1 = vadd.f32 %v279_v45, %v1140_v5  ;;  %v189_v2 = vcombine.high %v1154_v19, %v1154_v19 }
 0x10c   :  { %488 = vadd.xlane.f32.xlu0 %v455_v50  ;;  %v470_v3 = vmul.f32 %v1169_v26, %v432_v56  ;;  %v457_v6 = vmul.f32 %v1169_v26, %v419_v58  ;;  %v420_v7 = vsel %vm356_vm5, %v324_v34, %v388_v57  ;;  %v389_v8 = vmul.f32 0.2, %v325_v35 }
 0x10d   :  { %v392_v9 = vmul.f32 0.2, %v328_v61  ;;  %v433_v10 = vsel %vm369_vm6, %v337_v33, %v401_v60  ;;  %vm357_vm7 = vcmp.gt.f32.partialorder %v325_v35, 0.0  ;;  %vm360_vm8 = vcmp.gt.f32.partialorder %v328_v61, 0.0 }
 0x10e   :  { %v1206_v11 = vrot.slane %v158_v47, %v1136_v0  ;;  %v291_v12 = vrot.slane %v1192_v48, %v1132_v59  ;;  %v340_v13 = vadd.f32 %v283_v51, %v1138_v4  ;;  %v341_v14 = vadd.f32 %v283_v51, %v1140_v5 }
 0x10f   :  { %492 = vadd.xlane.f32.xlu1 %v457_v6  ;;  %v207_v15 = vcombine.high %v1164_v25, %v1164_v25  ;;  %v458_v16 = vmul.f32 %v1169_v26, %v420_v7  ;;  %v255_v17 = vrot.slane %v189_v2, %v1132_v59  ;;  %v471_v18 = vmul.f32 %v1169_v26, %v433_v10 }
 0x110   :  { %518 = vadd.xlane.f32.xlu0 %v470_v3  ;;  %v421_v19 = vsel %vm357_vm7, %v325_v35, %v389_v8  ;;  %v424_v20 = vsel %vm360_vm8, %v328_v61, %v392_v9  ;;  %v402_v21 = vmul.f32 0.2, %v338_v63  ;;  %v393_v22 = vmul.f32 0.2, %v329_v62 }
 0x111   :  { %vm370_vm9 = vcmp.gt.f32.partialorder %v338_v63, 0.0  ;;  %v326_v23 = vadd.f32 %v255_v17, %v1138_v4  ;;  %v327_v27 = vadd.f32 %v255_v17, %v1140_v5  ;;  %vm361_vm10 = vcmp.gt.f32.partialorder %v329_v62, 0.0 }
 0x112   :  { %v344_v25 = vadd.f32 %v291_v12, %v1138_v4  ;;  %v1221_v29 = vadd.f32 %v291_v12, %v1140_v5  ;;  %v263_v30 = vrot.slane %v1206_v11, %v1132_v59  ;;  %v188_v31 = vcombine.high %v1161_v24, %v1161_v24 }
 0x113   :  { %520 = vadd.xlane.f32.xlu1 %v471_v18  ;;  %v462_v32 = vmul.f32 %v1169_v26, %v424_v20  ;;  %v403_v33 = vmul.f32 0.2, %v339_v1  ;;  %v459_v34 = vmul.f32 %v1169_v26, %v421_v19  ;;  %v434_v35 = vsel %vm370_vm9, %v338_v63, %v402_v21 }
 0x114   :  { %494 = vadd.xlane.f32.xlu0 %v458_v16  ;;  %vm371_vm11 = vcmp.gt.f32.partialorder %v339_v1, 0.0  ;;  %v404_v36 = vmul.f32 0.2, %v340_v13  ;;  %v425_v37 = vsel %vm361_vm10, %v329_v62, %v393_v22  ;;  %vm372_vm12 = vcmp.gt.f32.partialorder %v340_v13, 0.0 }
 0x115   :  { %v235_v38 = vrot.slane %v207_v15, %v1136_v0  ;;  %v238_v39 = vcombine.high %v1172_v28, %v1172_v28  ;;  %v330_v40 = vadd.f32 %v263_v30, %v1138_v4  ;;  %v1234_v24 = vadd.f32 %v263_v30, %v1140_v5 }
 0x116   :  { %v472_v41 = vmul.f32 %v1169_v26, %v434_v35  ;;  %v435_v42 = vsel %vm371_vm11, %v339_v1, %v403_v33  ;;  %v405_v43 = vmul.f32 0.2, %v341_v14  ;;  %v267_v44 = vrot.slane %v188_v31, %v1132_v59 }
 0x117   :  { %496 = vadd.xlane.f32.xlu1 %v459_v34  ;;  %v463_v45 = vmul.f32 %v1169_v26, %v425_v37  ;;  %v436_v46 = vsel %vm372_vm12, %v340_v13, %v404_v36  ;;  %vm373_vm13 = vcmp.gt.f32.partialorder %v341_v14, 0.0  ;;  %v390_v0 = vmul.f32 0.2, %v326_v23 }
 0x118   :  { %502 = vadd.xlane.f32.xlu0 %v462_v32  ;;  %v237_v28 = vcombine.high %v1192_v48, %v1192_v48  ;;  %vm358_vm14 = vcmp.gt.f32.partialorder %v326_v23, 0.0  ;;  %v332_v47 = vadd.f32 %v267_v44, %v1138_v4  ;;  %v1243_v49 = vadd.f32 %v267_v44, %v1140_v5 }
 0x119   :  { %v473_v50 = vmul.f32 %v1169_v26, %v435_v42  ;;  %v287_v51 = vrot.slane %v238_v39, %v1132_v59  ;;  %v295_v55 = vrot.slane %v235_v38, %v1132_v59  ;;  %v474_v56 = vmul.f32 %v1169_v26, %v436_v46 }
 0x11a   :  { %v437_v57 = vsel %vm373_vm13, %v341_v14, %v405_v43  ;;  %vm359_vm15 = vcmp.gt.f32.partialorder %v327_v27, 0.0  ;;  %v391_v58 = vmul.f32 0.2, %v327_v27  ;;  %v422_v48 = vsel %vm358_vm14, %v326_v23, %v390_v0 }
 0x11b   :  { %504 = vadd.xlane.f32.xlu1 %v463_v45  ;;  %vm376_vm0 = vcmp.gt.f32.partialorder %v344_v25, 0.0  ;;  %v408_v60 = vmul.f32 0.2, %v344_v25  ;;  %v342_v61 = vadd.f32 %v287_v51, %v1138_v4  ;;  %v1251_v62 = vadd.f32 %v287_v51, %v1140_v5 }
 0x11c   :  { %522 = vadd.xlane.f32.xlu0 %v472_v41  ;;  %v346_v63 = vadd.f32 %v295_v55, %v1138_v4  ;;  %v1255_v1 = vadd.f32 %v295_v55, %v1140_v5  ;;  %v299_v2 = vrot.slane %v237_v28, %v1132_v59  ;;  %v190_v3 = vcombine.high %v1206_v11, %v1206_v11 }
 0x11d   :  { %v239_v6 = vcombine.high %v235_v38, %v235_v38  ;;  %v460_v7 = vmul.f32 %v1169_v26, %v422_v48  ;;  %v475_v8 = vmul.f32 %v1169_v26, %v437_v57  ;;  %v423_v9 = vsel %vm359_vm15, %v327_v27, %v391_v58 }
 0x11e   :  { %v440_v10 = vsel %vm376_vm0, %v344_v25, %v408_v60  ;;  %v394_v12 = vmul.f32 0.2, %v330_v40  ;;  %v409_v13 = vmul.f32 0.2, %v1221_v29  ;;  %vm362_vm1 = vcmp.gt.f32.partialorder %v330_v40, 0.0 }
 0x11f   :  { %524 = vadd.xlane.f32.xlu1 %v473_v50  ;;  %v348_v14 = vadd.f32 %v299_v2, %v1138_v4  ;;  %v1266_v15 = vadd.f32 %v299_v2, %v1140_v5  ;;  %vm377_vm2 = vcmp.gt.f32.partialorder %v1221_v29, 0.0  ;;  %v271_v11 = vrot.slane %v190_v3, %v1132_v59 }
 0x120   :  { %526 = vadd.xlane.f32.xlu0 %v474_v56  ;;  %v461_v16 = vmul.f32 %v1169_v26, %v423_v9  ;;  %v478_v17 = vmul.f32 %v1169_v26, %v440_v10  ;;  %v426_v18 = vsel %vm362_vm1, %v330_v40, %v394_v12  ;;  %v396_v19 = vmul.f32 0.2, %v332_v47 }
 0x121   :  { %v334_v20 = vadd.f32 %v271_v11, %v1138_v4  ;;  %v1274_v21 = vadd.f32 %v271_v11, %v1140_v5  ;;  %v441_v22 = vsel %vm377_vm2, %v1221_v29, %v409_v13  ;;  %v395_v23 = vmul.f32 0.2, %v1234_v24 }
 0x122   :  { %vm364_vm3 = vcmp.gt.f32.partialorder %v332_v47, 0.0  ;;  %v303_v27 = vrot.slane %v239_v6, %v1132_v59  ;;  %vm363_vm4 = vcmp.gt.f32.partialorder %v1234_v24, 0.0  ;;  %v464_v25 = vmul.f32 %v1169_v26, %v426_v18 }
 0x123   :  { %528 = vadd.xlane.f32.xlu1 %v475_v8  ;;  %v479_v31 = vmul.f32 %v1169_v26, %v441_v22  ;;  %v428_v32 = vsel %vm364_vm3, %v332_v47, %v396_v19  ;;  %v406_v33 = vmul.f32 0.2, %v342_v61  ;;  %v427_v29 = vsel %vm363_vm4, %v1234_v24, %v395_v23 }
 0x124   :  { %498 = vadd.xlane.f32.xlu0 %v460_v7  ;;  %v350_v30 = vadd.f32 %v303_v27, %v1138_v4  ;;  %v351_v34 = vadd.f32 %v303_v27, %v1140_v5  ;;  %v397_v35 = vmul.f32 0.2, %v1243_v49  ;;  %vm374_vm5 = vcmp.gt.f32.partialorder %v342_v61, 0.0 }
 0x125   :  { %vm365_vm6 = vcmp.gt.f32.partialorder %v1243_v49, 0.0  ;;  %v466_v36 = vmul.f32 %v1169_v26, %v428_v32  ;;  %v465_v4 = vmul.f32 %v1169_v26, %v427_v29  ;;  %v438_v37 = vsel %vm374_vm5, %v342_v61, %v406_v33 }
 0x126   :  { %vm383_vm7 = vcmp.gt.f32.partialorder %v351_v34, 0.0  ;;  %v415_v59 = vmul.f32 0.2, %v351_v34  ;;  %v410_v38 = vmul.f32 0.2, %v346_v63  ;;  %v429_v5 = vsel %vm365_vm6, %v1243_v49, %v397_v35 }
 0x127   :  { %500 = vadd.xlane.f32.xlu1 %v461_v16  ;;  %v407_v40 = vmul.f32 0.2, %v1251_v62  ;;  %vm378_vm8 = vcmp.gt.f32.partialorder %v346_v63, 0.0  ;;  %vm375_vm9 = vcmp.gt.f32.partialorder %v1251_v62, 0.0  ;;  %v476_v41 = vmul.f32 %v1169_v26, %v438_v37 }
 0x128   :  { %534 = vadd.xlane.f32.xlu0 %v478_v17  ;;  %v447_v39 = vsel %vm383_vm7, %v351_v34, %v415_v59  ;;  %v467_v42 = vmul.f32 %v1169_v26, %v429_v5  ;;  %v442_v43 = vsel %vm378_vm8, %v346_v63, %v410_v38  ;;  %v412_v44 = vmul.f32 0.2, %v348_v14  ;;  %v1349_v5 = vld [vmem:[%s1507_s3] sm:$0xff] }
 0x129   :  { %v485_v24 = vmul.f32 %v1169_v26, %v447_v39  ;;  %v439_v45 = vsel %vm375_vm9, %v1251_v62, %v407_v40  ;;  %v411_v46 = vmul.f32 0.2, %v1255_v1  ;;  %vm380_vm10 = vcmp.gt.f32.partialorder %v348_v14, 0.0 }
 0x12a   :  { %vm379_vm11 = vcmp.gt.f32.partialorder %v1255_v1, 0.0  ;;  %v480_v0 = vmul.f32 %v1169_v26, %v442_v43  ;;  %v477_v28 = vmul.f32 %v1169_v26, %v439_v45  ;;  %v444_v47 = vsel %vm380_vm10, %v348_v14, %v412_v44 }
 0x12b   :  { %536 = vadd.xlane.f32.xlu1 %v479_v31  ;;  %v398_v49 = vmul.f32 0.2, %v334_v20  ;;  %v443_v50 = vsel %vm379_vm11, %v1255_v1, %v411_v46  ;;  %v413_v51 = vmul.f32 0.2, %v1266_v15  ;;  %vm366_vm12 = vcmp.gt.f32.partialorder %v334_v20, 0.0 }
 0x12c   :  { %506 = vadd.xlane.f32.xlu0 %v464_v25  ;;  %vm381_vm13 = vcmp.gt.f32.partialorder %v1266_v15, 0.0  ;;  %v482_v55 = vmul.f32 %v1169_v26, %v444_v47  ;;  %v481_v56 = vmul.f32 %v1169_v26, %v443_v50  ;;  %v414_v58 = vmul.f32 0.2, %v350_v30 }
 0x12d   :  { %v430_v57 = vsel %vm366_vm12, %v334_v20, %v398_v49  ;;  %v445_v48 = vsel %vm381_vm13, %v1266_v15, %v413_v51  ;;  %v399_v60 = vmul.f32 0.2, %v1274_v21  ;;  %vm382_vm14 = vcmp.gt.f32.partialorder %v350_v30, 0.0 }
 0x12e   :  { %vm367_vm15 = vcmp.gt.f32.partialorder %v1274_v21, 0.0  ;;  %v468_v61 = vmul.f32 %v1169_v26, %v430_v57  ;;  %v483_v62 = vmul.f32 %v1169_v26, %v445_v48  ;;  %v446_v63 = vsel %vm382_vm14, %v350_v30, %v414_v58 }
 0x12f   :  { %508 = vadd.xlane.f32.xlu1 %v465_v4  ;;  %v431_v1 = vsel %vm367_vm15, %v1274_v21, %v399_v60  ;;  %v484_v2 = vmul.f32 %v1169_v26, %v446_v63  ;;  %v585_v27 = vand.u32 127, %v83_v53  ;;  %vm595_vm0 = vcmask 130112  }
 0x130   :  { %510 = vadd.xlane.f32.xlu0 %v466_v36  ;;  %v469_v3 = vmul.f32 %v1169_v26, %v431_v1  ;;  %vm732_vm1 = vcmask 1041409   ;;  %vm734_vm2 = vcmask 1042434   ;;  %vm736_vm3 = vcmask 1043459  }
 0x131   :  { %v590_v30 = vadd.s32 4294967288, %v585_v27  ;;  %v1334_v29 = vsub.s32 %v585_v27, %v1125_v54  ;;  %vm738_vm4 = vcmask 1044484   ;;  %vm740_vm5 = vcmask 1045509  }
 0x132   :  { %vm742_vm6 = vcmask 1046534   ;;  %vm744_vm7 = vcmask 1047559   ;;  %vm550_vm8 = vcmp.gt.f32.partialorder %v1349_v5, 0.0  ;;  %vm757_vm9 = vcmask 130048   ;;  %v840_v5 = vld [vmem:[%s1508_s6] sm:$0xff] }
 0x133   :  { %512 = vadd.xlane.f32.xlu1 %v467_v42  ;;  %v1331_v33 = vsub.s32 %v590_v30, %v1125_v54  ;;  %vm975_vm11 = vmmov 0  }
 0x134   :  { %530 = vadd.xlane.f32.xlu0 %v476_v41  ;;  %936 = vmatprep.mubr.msk.bf16.mxu1 %vm975_vm11, %v973_v52 }
 0x137   :  { %532 = vadd.xlane.f32.xlu1 %v477_v28 }
 0x138   :  { %538 = vadd.xlane.f32.xlu0 %v480_v0 }
 0x13b   :  { %540 = vadd.xlane.f32.xlu1 %v481_v56 }
 0x13c   :  { %542 = vadd.xlane.f32.xlu0 %v482_v55 }
 0x13f   :  { %544 = vadd.xlane.f32.xlu1 %v483_v62 }
 0x140   :  { %514 = vadd.xlane.f32.xlu0 %v468_v61 }
 0x143   :  { %516 = vadd.xlane.f32.xlu1 %v469_v3 }
 0x144   :  { %546 = vadd.xlane.f32.xlu0 %v484_v2 }
 0x147   :  { %548 = vadd.xlane.f32.xlu1 %v485_v24 }
 0x195   :  { %v487_v6 = vpop.xlane.xlu0 %486 }
 0x196   :  { %v589_v4 = vrot.slane %v487_v6, %v1334_v29 }
 0x198   :  { %v491_v8 = vpop.xlane.xlu1 %490 }
 0x199   :  { %v489_v7 = vpop.xlane.xlu0 %488  ;;  %v600_v38 = vrot.slane %v491_v8, %v1334_v29 }
 0x19a   :  { %v594_v59 = vrot.slane %v489_v7, %v1331_v33 }
 0x19c   :  { %v493_v10 = vpop.xlane.xlu1 %492  ;;  %v596_v40 = vsel %vm595_vm0, %v594_v59, %v589_v4  ;;  %v137_v59 = vld [vmem:[%s1507_s3 + $0x8] sm:$0xff] }
 0x19d   :  { %v1313_v9 = vpop.xlane.xlu0 %518  ;;  %v604_v53 = vrot.slane %v493_v10, %v1331_v33  ;;  %vm551_vm10 = vcmp.gt.f32.partialorder %v137_v59, 0.0 }
 0x19e   :  { %v663_v44 = vrot.slane %v1313_v9, %v1334_v29 }
 0x19f   :  { %v605_v43 = vsel %vm595_vm0, %v604_v53, %v600_v38 }
 0x1a0   :  { %v1315_v13 = vpop.xlane.xlu1 %520  ;;  %v733_v57 = vsel %vm732_vm1, %v605_v43, %v596_v40 }
 0x1a1   :  { %v495_v12 = vpop.xlane.xlu0 %494  ;;  %v667_v0 = vrot.slane %v1315_v13, %v1331_v33 }
 0x1a2   :  { %v609_v24 = vrot.slane %v495_v12, %v1334_v29 }
 0x1a3   :  { %v668_v6 = vsel %vm595_vm0, %v667_v0, %v663_v44 }
 0x1a4   :  { %v497_v15 = vpop.xlane.xlu1 %496 }
 0x1a5   :  { %v1317_v14 = vpop.xlane.xlu0 %502  ;;  %v613_v37 = vrot.slane %v497_v15, %v1331_v33 }
 0x1a6   :  { %v627_v58 = vrot.slane %v1317_v14, %v1334_v29 }
 0x1a7   :  { %v614_v28 = vsel %vm595_vm0, %v613_v37, %v609_v24 }
 0x1a8   :  { %v1319_v16 = vpop.xlane.xlu1 %504  ;;  %v735_v63 = vsel %vm734_vm2, %v614_v28, %v733_v57 }
 0x1a9   :  { %v523_v11 = vpop.xlane.xlu0 %522  ;;  %v631_v47 = vrot.slane %v1319_v16, %v1331_v33 }
 0x1aa   :  { %v672_v49 = vrot.slane %v523_v11, %v1334_v29 }
 0x1ab   :  { %v632_v7 = vsel %vm595_vm0, %v631_v47, %v627_v58 }
 0x1ac   :  { %v525_v26 = vpop.xlane.xlu1 %524 }
 0x1ad   :  { %v527_v17 = vpop.xlane.xlu0 %526  ;;  %v676_v41 = vrot.slane %v525_v26, %v1331_v33 }
 0x1ae   :  { %v681_v50 = vrot.slane %v527_v17, %v1334_v29 }
 0x1af   :  { %v677_v48 = vsel %vm595_vm0, %v676_v41, %v672_v49 }
 0x1b0   :  { %v529_v19 = vpop.xlane.xlu1 %528  ;;  %v746_v10 = vsel %vm732_vm1, %v677_v48, %v668_v6  ;;  %v841_v48 = vld [vmem:[%s1508_s6 + $0x8] sm:$0xff]  ;;  %v846_v6 = vld [vmem:[%s1508_s6 + $0x30] sm:$0xff] }
 0x1b1   :  { %v499_v18 = vpop.xlane.xlu0 %498  ;;  %v685_v45 = vrot.slane %v529_v19, %v1331_v33 }
 0x1b2   :  { %v618_v46 = vrot.slane %v499_v18, %v1334_v29 }
 0x1b3   :  { %v686_v1 = vsel %vm595_vm0, %v685_v45, %v681_v50 }
 0x1b4   :  { %v501_v21 = vpop.xlane.xlu1 %500  ;;  %v747_v15 = vsel %vm734_vm2, %v686_v1, %v746_v10  ;;  %v844_v1 = vld [vmem:[%s1508_s6 + $0x20] sm:$0xff]  ;;  %v849_v10 = vld [vmem:[%s1508_s6 + $0x48] sm:$0xff] }
 0x1b5   :  { %v1321_v20 = vpop.xlane.xlu0 %534  ;;  %v622_v54 = vrot.slane %v501_v21, %v1331_v33 }
 0x1b6   :  { %v699_v27 = vrot.slane %v1321_v20, %v1334_v29 }
 0x1b7   :  { %v623_v51 = vsel %vm595_vm0, %v622_v54, %v618_v46 }
 0x1b8   :  { %v1325_v23 = vpop.xlane.xlu1 %536  ;;  %v737_v8 = vsel %vm736_vm3, %v623_v51, %v735_v63 }
 0x1b9   :  { %v1323_v22 = vpop.xlane.xlu0 %506  ;;  %v703_v11 = vrot.slane %v1325_v23, %v1331_v33 }
 0x1ba   :  { %v636_v2 = vrot.slane %v1323_v22, %v1334_v29  ;;  %v739_v22 = vsel %vm738_vm4, %v632_v7, %v737_v8  ;;  %v847_v7 = vld [vmem:[%s1508_s6 + $0x38] sm:$0xff] }
 0x1bb   :  { %v704_v20 = vsel %vm595_vm0, %v703_v11, %v699_v27  ;;  %v860_v8 = vpack.c.bf16 %v847_v7, %v846_v6  ;;  %v852_v11 = vld [vmem:[%s1508_s6 + $0x60] sm:$0xff] }
 0x1bc   :  { %v509_v31 = vpop.xlane.xlu1 %508 }
 0x1bd   :  { %v1328_v25 = vpop.xlane.xlu0 %510  ;;  %v640_v55 = vrot.slane %v509_v31, %v1331_v33 }
 0x1be   :  { %v645_v9 = vrot.slane %v1328_v25, %v1334_v29 }
 0x1bf   :  { %v641_v12 = vsel %vm595_vm0, %v640_v55, %v636_v2  ;;  %v845_v2 = vld [vmem:[%s1508_s6 + $0x28] sm:$0xff] }
 0x1c0   :  { %v513_v34 = vpop.xlane.xlu1 %512  ;;  %v741_v31 = vsel %vm740_vm5, %v641_v12, %v739_v22 }
 0x1c1   :  { %v531_v32 = vpop.xlane.xlu0 %530  ;;  %v649_v60 = vrot.slane %v513_v34, %v1331_v33 }
 0x1c2   :  { %v690_v3 = vrot.slane %v531_v32, %v1334_v29 }
 0x1c3   :  { %v650_v16 = vsel %vm595_vm0, %v649_v60, %v645_v9  ;;  %v842_v60 = vld [vmem:[%s1508_s6 + $0x10] sm:$0xff]  ;;  %v848_v9 = vld [vmem:[%s1508_s6 + $0x40] sm:$0xff] }
 0x1c4   :  { %v533_v36 = vpop.xlane.xlu1 %532  ;;  %v861_v12 = vpack.c.bf16 %v849_v10, %v848_v9 }
 0x1c5   :  { %v1336_v35 = vpop.xlane.xlu0 %538  ;;  %v694_v56 = vrot.slane %v533_v36, %v1331_v33 }
 0x1c6   :  { %v708_v18 = vrot.slane %v1336_v35, %v1334_v29  ;;  %v743_v35 = vsel %vm742_vm6, %v650_v16, %v741_v31  ;;  %v853_v16 = vld [vmem:[%s1508_s6 + $0x68] sm:$0xff] }
 0x1c7   :  { %v695_v13 = vsel %vm595_vm0, %v694_v56, %v690_v3  ;;  %v859_v3 = vpack.c.bf16 %v845_v2, %v844_v1 }
 0x1c8   :  { %v541_v42 = vpop.xlane.xlu1 %540  ;;  %v748_v25 = vsel %vm736_vm3, %v695_v13, %v747_v15  ;;  %v850_v13 = vld [vmem:[%s1508_s6 + $0x50] sm:$0xff] }
 0x1c9   :  { %v1344_v39 = vpop.xlane.xlu0 %542  ;;  %v712_v14 = vrot.slane %v541_v42, %v1331_v33 }
 0x1ca   :  { %v717_v23 = vrot.slane %v1344_v39, %v1334_v29  ;;  %v749_v39 = vsel %vm738_vm4, %v704_v20, %v748_v25 }
 0x1cb   :  { %v713_v32 = vsel %vm595_vm0, %v712_v14, %v708_v18  ;;  %v851_v14 = vld [vmem:[%s1508_s6 + $0x58] sm:$0xff] }
 0x1cc   :  { %v545_v61 = vpop.xlane.xlu1 %544  ;;  %v750_v24 = vsel %vm740_vm5, %v713_v32, %v749_v39  ;;  %v862_v15 = vpack.c.bf16 %v851_v14, %v850_v13  ;;  %v855_v18 = vld [vmem:[%s1508_s6 + $0x78] sm:$0xff] }
 0x1cd   :  { %v515_v62 = vpop.xlane.xlu0 %514  ;;  %v721_v17 = vrot.slane %v545_v61, %v1331_v33  ;;  %v857_v61 = vpack.c.bf16 %v841_v48, %v840_v5 }
 0x1ce   :  { %v654_v19 = vrot.slane %v515_v62, %v1334_v29  ;;  %v843_v62 = vld [vmem:[%s1508_s6 + $0x18] sm:$0xff] }
 0x1cf   :  { %v722_v36 = vsel %vm595_vm0, %v721_v17, %v717_v23  ;;  %v858_v63 = vpack.c.bf16 %v843_v62, %v842_v60  ;;  %v854_v17 = vld [vmem:[%s1508_s6 + $0x70] sm:$0xff] }
 0x1d0   :  { %v517_v26 = vpop.xlane.xlu1 %516  ;;  %v751_v42 = vsel %vm742_vm6, %v722_v36, %v750_v24 }
 0x1d1   :  { %v658_v21 = vrot.slane %v517_v26, %v1331_v33  ;;  %v547_v30 = vpop.xlane.xlu0 %546  ;;  %v863_v26 = vpack.c.bf16 %v853_v16, %v852_v11 }
 0x1d2   :  { %v726_v37 = vrot.slane %v547_v30, %v1334_v29  ;;  %v921_v30 = vld [vmem:[%s1509_s5] ss:$0 sm:$0xff] }
 0x1d3   :  { %v659_v34 = vsel %vm595_vm0, %v658_v21, %v654_v19  ;;  %v864_v19 = vpack.c.bf16 %v855_v18, %v854_v17 }
 0x1d4   :  { %v549_v53 = vpop.xlane.xlu1 %548  ;;  %v745_v4 = vsel %vm744_vm7, %v659_v34, %v743_v35 }
 0x1d5   :  { %v730_v38 = vrot.slane %v549_v53, %v1331_v33  ;;  %v755_v54 = vsel %vm550_vm8, %v745_v4, -1e+30 }
 0x1d6   :  { %v758_v40 = vsel %vm757_vm9, %v755_v54, -inf }
 0x1d7   :  { %759 = vmax.xlane.f32.xlu0 %v758_v40  ;;  %v731_v41 = vsel %vm595_vm0, %v730_v38, %v726_v37 }
 0x1d8   :  { %v752_v43 = vsel %vm744_vm7, %v731_v41, %v751_v42 }
 0x1d9   :  { %v756_v29 = vsel %vm551_vm10, %v752_v43, -1e+30 }
 0x1da   :  { %v761_v33 = vsel %vm757_vm9, %v756_v29, -inf }
 0x1db   :  { %762 = vmax.xlane.f32.xlu1 %v761_v33 }
 0x264   :  { %v760_v44 = vpop.xlane.xlu0 %759 }
 0x265   :  { %v764_v45 = vsub.f32 %v755_v54, %v760_v44  ;;  %v922_v54 = vld [vmem:[%s1510_s7] ss:$0 sm:$0xff] }
 0x267   :  { %v766_v46 = vmul.f32 1.442695, %v764_v45 }
 0x268   :  { %v763_v0 = vpop.xlane.xlu1 %762 }
 0x269   :  { %964 = vpow2.f32 %v766_v46  ;;  %v765_v28 = vsub.f32 %v756_v29, %v763_v0 }
 0x26b   :  { %v768_v47 = vmul.f32 1.442695, %v765_v28 }
 0x26d   :  { %966 = vpow2.f32 %v768_v47 }
 0x273   :  { %v965_v49 = vpop.eup %964 }
 0x274   :  { %v770_v50 = vsel %vm550_vm8, %v965_v49, 0.0 }
 0x275   :  { %v772_v51 = vsel %vm757_vm9, %v770_v50, 0.0 }
 0x276   :  { %773 = vadd.xlane.f32.xlu0 %v772_v51 }
 0x277   :  { %v967_v55 = vpop.eup %966 }
 0x278   :  { %v771_v56 = vsel %vm551_vm10, %v967_v55, 0.0 }
 0x279   :  { %v775_v57 = vsel %vm757_vm9, %v771_v56, 0.0  ;;  %v778_v58 = vpack.c.bf16 %v771_v56, %v770_v50 }
 0x27a   :  { %776 = vadd.xlane.f32.xlu1 %v775_v57 }
 0x27b   :  { %937 = vmatmul.mubr.msk.bf16.vlgmr.msra.gmra.mrb[0].mxu1 %vm757_vm9, %v778_v58 }
 0x27c   :  { %956 = vmatprep.mubr.msk.bf16.mxu1 %vm975_vm11, %v973_v52  ;;  %941 = vmatpush3.bf16.msra.mxu1 %v857_v61 }
 0x27d   :  { %942 = vmatprep.subr.bf16.mxu1 %v973_v52 }
 0x280   :  { %943 = vmatpush3.bf16.msra.mxu1 %v858_v63 }
 0x281   :  { %944 = vmatprep.subr.bf16.mxu1 %v973_v52 }
 0x284   :  { %945 = vmatpush3.bf16.msra.mxu1 %v859_v3 }
 0x285   :  { %946 = vmatprep.subr.bf16.mxu1 %v973_v52 }
 0x288   :  { %947 = vmatpush3.bf16.msra.mxu1 %v860_v8 }
 0x289   :  { %948 = vmatprep.subr.bf16.mxu1 %v973_v52 }
 0x28c   :  { %949 = vmatpush3.bf16.msra.mxu1 %v861_v12 }
 0x28d   :  { %950 = vmatprep.subr.bf16.mxu1 %v973_v52 }
 0x290   :  { %951 = vmatpush3.bf16.msra.mxu1 %v862_v15 }
 0x291   :  { %952 = vmatprep.subr.bf16.mxu1 %v973_v52 }
 0x294   :  { %953 = vmatpush3.bf16.msra.mxu1 %v863_v26 }
 0x295   :  { %954 = vmatprep.subr.bf16.mxu1 %v973_v52 }
 0x298   :  { %955 = vmatpush3.bf16.msra.mxu1 %v864_v19 }
 0x303   :  { %v774_v21 = vpop.xlane.xlu0 %773 }
 0x304   :  { %v824_v27 = vmax.f32 %v774_v21, 1e-12 }
 0x306   :  { %968 = vrcp.f32 %v824_v27 }
 0x307   :  { %v777_v22 = vpop.xlane.xlu1 %776 }
 0x308   :  { %v825_v25 = vmax.f32 %v777_v22, 1e-12 }
 0x30a   :  { %970 = vrcp.f32 %v825_v25 }
 0x310   :  { %v969_v23 = vpop.eup %968 }
 0x314   :  { %v971_v35 = vpop.eup %970 }
 0x34e   :  { %v817_v31 = vpop.f32.mrb[0].mxu1 }
 0x34f   :  { %v828_v32 = vmul.f32 %v969_v23, %v817_v31  ;;  %v938_v34 = vpop.f32.mrb[1].mxu1 }
 0x350   :  { %v820_v59 = vpop.f32.mrb[2].mxu1 }
 0x351   :  { %v836_v20 = vadd.f32 %v921_v30, %v828_v32  ;;  %v829_v36 = vmul.f32 %v971_v35, %v820_v59  ;;  %v939_v52 = vpop.f32.mrb[3].mxu1 }
 0x353   :  { %v837_v53 = vadd.f32 %v921_v30, %v829_v36  ;;  %v838_v4 = vmax.f32 %v836_v20, 0.0 }
 0x355   :  { %v839_v37 = vmax.f32 %v837_v53, 0.0 }
 0x357   :  { %v856_v38 = vpack.c.bf16 %v839_v37, %v838_v4 }
 0x359   :  { %957 = vmatmul.mubr.bf16.vlgmr.msra.gmra.mrb[4].mxu1 %v856_v38 }
 0x42c   :  { %v906_v39 = vpop.f32.mrb[4].mxu1 }
 0x42d   :  { %v907_v40 = vadd.f32 %v922_v54, %v906_v39  ;;  %v958_v24 = vpop.f32.mrb[5].mxu1 }
 0x42e   :  { %v909_v41 = vpop.f32.mrb[6].mxu1 }
 0x42f   :  { %913 = vst [vmem:[%s1511_s8] sm:$0xff] %v907_v40  ;;  %v910_v42 = vadd.f32 %v922_v54, %v909_v41  ;;  %v959_v43 = vpop.f32.mrb[7].mxu1 }
 0x431   :  { %914 = vst [vmem:[%s1511_s8 + $0x8] sm:$0xff] %v910_v42 }

// kernel: meta_gatv2_forward.9
= control target key start
LH: loop header
LB: loop body
LE: loop exit
PB: predicated region body
PF: predicated region fallthrough
CT: control target
= control target key end

     0   :  { %vm47_vm0 = vcmask 1043456   ;;  %v832_v2 = vmov 0   ;;  %vm43_vm1 = vcmask 64512   ;;  %v833_v9 = vmov 0.0   ;;  %s1201_s1 = inlined_call_operand.vmem [shape: f32[8,256], index: 1, kind: input, shape index: {}]   ;;  %s1202_s0 = inlined_call_operand.vmem [shape: f32[16,8], index: 0, kind: input, shape index: {}]   ;;  %s1203_s2 = inlined_call_operand.vmem [shape: f32[1,256], index: 2, kind: input, shape index: {}]   ;;  %s1204_s4 = inlined_call_operand.vmem [shape: f32[1,1,128], index: 4, kind: input, shape index: {}]   ;;  %s1205_s3 = inlined_call_operand.vmem [shape: f32[16,16], index: 3, kind: input, shape index: {}]   ;;  %s1206_s5 = inlined_call_operand.vmem [shape: f32[1,128], index: 5, kind: input, shape index: {}]   ;;  %s1207_s6 = inlined_call_operand.vmem [shape: f32[16,128], index: 6, kind: output, shape index: {}]  }
   0x1   :  { %v27_v0 = vld [vmem:[%s1201_s1 + $0x8] sm:$0xff]  ;;  %v26_v1 = vld [vmem:[%s1201_s1] sm:$0xff]  ;;  %86 = vmatprep.mubr.bf16.mxu0 %v832_v2  ;;  %814 = vmatprep.subr.bf16.mxu1 %v833_v9  ;;  %v33_v10 = vlaneseq  ;;  %v834_v12 = vmov 1966171168  }
   0x2   :  { %v24_v3 = vld [vmem:[%s1202_s0] sm:$0xff]  ;;  %v30_v4 = vpack.c.bf16 %v27_v0, %v27_v0  ;;  %v29_v5 = vpack.c.bf16 %v26_v1, %v26_v1  ;;  %v25_v6 = vld [vmem:[%s1202_s0 + $0x8] sm:$0xff]  ;;  %v105_v13 = vunpack.c.l.s4 %v834_v12 }
   0x3   :  { %v28_v8 = vpack.c.bf16 %v25_v6, %v24_v3  ;;  %v885_v11 = vshrl.u32 %v33_v10, 7  ;;  %v31_v15 = vld [vmem:[%s1203_s2] sm:$0x3] }
   0x4   :  { %807 = vmatprep.subr.msk.bf16.mxu0 %vm47_vm0, %v30_v4  ;;  %v49_v7 = vsel %vm47_vm0, %v29_v5, 0  ;;  %v106_v17 = vunpack.c.0.s8 %v105_v13  ;;  %v928_v47 = vld [vmem:[%s1204_s4] ss:$0 sm:$0xff] }
   0x5   :  { %55 = vmatpush1.bf16.msra.mxu0 %v49_v7  ;;  %v39_v14 = vsub.s32 1, %v885_v11  ;;  %v892_v16 = vsub.s32 0, %v885_v11 }
   0x6   :  { %v896_v21 = vsub.s32 %v106_v17, %v885_v11 }
   0x7   :  { %v40_v18 = vrot.slane %v31_v15, %v39_v14  ;;  %v36_v19 = vrot.slane %v31_v15, %v892_v16 }
   0x8   :  { %808 = vmatmul.mubr.msk.bf16.vlgmr.msra.gmra.mrb[0].mxu0 %vm43_vm1, %v28_v8 }
  0xdb   :  { %v88_v20 = vpop.f32.mrb[0].mxu0 }
  0xdc   :  { %v90_v22 = vpop.f32.mrb[1].mxu0  ;;  %v898_v25 = vadd.f32 %v88_v20, %v36_v19 }
  0xdd   :  { %v91_v23 = vadd.f32 %v90_v22, %v40_v18  ;;  %v92_v24 = vpop.f32.mrb[2].mxu0 }
  0xde   :  { %v900_v26 = vadd.f32 %v92_v24, %v36_v19  ;;  %v94_v27 = vpop.f32.mrb[3].mxu0 }
  0xdf   :  { %v110_v28 = vrot.slane %v91_v23, %v896_v21  ;;  %v95_v29 = vadd.f32 %v94_v27, %v40_v18  ;;  %v103_v31 = vcombine.high %v91_v23, %v91_v23 }
  0xe0   :  { %v740_v30 = vpack.c.bf16 %v900_v26, %v898_v25 }
  0xe1   :  { %v126_v32 = vrot.slane %v110_v28, %v896_v21  ;;  %v118_v33 = vcombine.high %v110_v28, %v110_v28  ;;  %v159_v34 = vrot.slane %v95_v29, %v896_v21  ;;  %v910_v38 = vrot.slane %v103_v31, %v896_v21 }
  0xe2   :  { %815 = vmatpush3.bf16.msra.mxu1 %v740_v30  ;;  %v152_v39 = vcombine.high %v95_v29, %v95_v29 }
  0xe3   :  { %v148_v35 = vcombine.high %v126_v32, %v126_v32  ;;  %v204_v36 = vrot.slane %v126_v32, %v892_v16  ;;  %v175_v37 = vrot.slane %v159_v34, %v896_v21  ;;  %v913_v40 = vrot.slane %v118_v33, %v896_v21 }
  0xe4   :  { %v167_v41 = vcombine.high %v159_v34, %v159_v34  ;;  %v920_v45 = vrot.slane %v910_v38, %v896_v21  ;;  %v923_v46 = vrot.slane %v152_v39, %v896_v21  ;;  %v119_v4 = vcombine.high %v910_v38, %v910_v38 }
  0xe5   :  { %v212_v42 = vrot.slane %v148_v35, %v892_v16  ;;  %v236_v43 = vrot.slane %v175_v37, %v892_v16  ;;  %v281_v44 = vadd.f32 %v204_v36, %v898_v25  ;;  %v208_v50 = vrot.slane %v913_v40, %v892_v16 }
  0xe6   :  { %v931_v49 = vrot.slane %v167_v41, %v896_v21  ;;  %v282_v51 = vadd.f32 %v204_v36, %v900_v26  ;;  %v220_v60 = vrot.slane %v920_v45, %v892_v16  ;;  %v197_v61 = vcombine.high %v175_v37, %v175_v37 }
  0xe7   :  { %vm313_vm2 = vcmp.gt.f32.partialorder %v281_v44, 0.0  ;;  %v345_v48 = vmul.f32 0.2, %v281_v44  ;;  %v297_v52 = vadd.f32 %v236_v43, %v898_v25  ;;  %v298_v54 = vadd.f32 %v236_v43, %v900_v26 }
  0xe8   :  { %v285_v55 = vadd.f32 %v212_v42, %v898_v25  ;;  %v286_v56 = vadd.f32 %v212_v42, %v900_v26  ;;  %v283_v58 = vadd.f32 %v208_v50, %v898_v25  ;;  %vm314_vm3 = vcmp.gt.f32.partialorder %v282_v51, 0.0 }
  0xe9   :  { %v377_v53 = vsel %vm313_vm2, %v281_v44, %v345_v48  ;;  %v346_v59 = vmul.f32 0.2, %v282_v51  ;;  %v284_v62 = vadd.f32 %v208_v50, %v900_v26  ;;  %v361_v63 = vmul.f32 0.2, %v297_v52 }
  0xea   :  { %v415_v57 = vmul.f32 %v928_v47, %v377_v53  ;;  %vm315_vm4 = vcmp.gt.f32.partialorder %v283_v58, 0.0  ;;  %v347_v0 = vmul.f32 0.2, %v283_v58  ;;  %vm329_vm5 = vcmp.gt.f32.partialorder %v297_v52, 0.0 }
  0xeb   :  { %v378_v1 = vsel %vm314_vm3, %v282_v51, %v346_v59  ;;  %v240_v2 = vrot.slane %v931_v49, %v892_v16  ;;  %vm316_vm6 = vcmp.gt.f32.partialorder %v284_v62, 0.0  ;;  %v348_v3 = vmul.f32 0.2, %v284_v62 }
  0xec   :  { %447 = vadd.xlane.f32.xlu0 %v415_v57  ;;  %v951_v5 = vrot.slane %v923_v46, %v896_v21  ;;  %v379_v6 = vsel %vm315_vm4, %v283_v58, %v347_v0  ;;  %v416_v7 = vmul.f32 %v928_v47, %v378_v1  ;;  %v244_v8 = vrot.slane %v197_v61, %v892_v16 }
  0xed   :  { %v417_v12 = vmul.f32 %v928_v47, %v379_v6  ;;  %v393_v13 = vsel %vm329_vm5, %v297_v52, %v361_v63  ;;  %v349_v14 = vmul.f32 0.2, %v285_v55  ;;  %v380_v15 = vsel %vm316_vm6, %v284_v62, %v348_v3 }
  0xee   :  { %v362_v17 = vmul.f32 0.2, %v298_v54  ;;  %vm317_vm7 = vcmp.gt.f32.partialorder %v285_v55, 0.0  ;;  %v289_v18 = vadd.f32 %v220_v60, %v898_v25  ;;  %vm330_vm8 = vcmp.gt.f32.partialorder %v298_v54, 0.0 }
  0xef   :  { %451 = vadd.xlane.f32.xlu1 %v417_v12  ;;  %v290_v19 = vadd.f32 %v220_v60, %v900_v26  ;;  %v299_v20 = vadd.f32 %v240_v2, %v898_v25  ;;  %v300_v22 = vadd.f32 %v240_v2, %v900_v26  ;;  %v150_v23 = vcombine.high %v913_v40, %v913_v40 }
  0xf0   :  { %449 = vadd.xlane.f32.xlu0 %v416_v7  ;;  %v431_v24 = vmul.f32 %v928_v47, %v393_v13  ;;  %v418_v27 = vmul.f32 %v928_v47, %v380_v15  ;;  %v381_v28 = vsel %vm317_vm7, %v285_v55, %v349_v14  ;;  %v350_v29 = vmul.f32 0.2, %v286_v56 }
  0xf1   :  { %v353_v30 = vmul.f32 0.2, %v289_v18  ;;  %v394_v31 = vsel %vm330_vm8, %v298_v54, %v362_v17  ;;  %vm318_vm9 = vcmp.gt.f32.partialorder %v286_v56, 0.0  ;;  %vm321_vm10 = vcmp.gt.f32.partialorder %v289_v18, 0.0 }
  0xf2   :  { %v965_v32 = vrot.slane %v119_v4, %v896_v21  ;;  %v252_v33 = vrot.slane %v951_v5, %v892_v16  ;;  %v301_v34 = vadd.f32 %v244_v8, %v898_v25  ;;  %v302_v35 = vadd.f32 %v244_v8, %v900_v26 }
  0xf3   :  { %453 = vadd.xlane.f32.xlu1 %v418_v27  ;;  %v168_v36 = vcombine.high %v923_v46, %v923_v46  ;;  %v419_v37 = vmul.f32 %v928_v47, %v381_v28  ;;  %v216_v38 = vrot.slane %v150_v23, %v892_v16  ;;  %v432_v39 = vmul.f32 %v928_v47, %v394_v31 }
  0xf4   :  { %479 = vadd.xlane.f32.xlu0 %v431_v24  ;;  %v382_v40 = vsel %vm318_vm9, %v286_v56, %v350_v29  ;;  %v385_v41 = vsel %vm321_vm10, %v289_v18, %v353_v30  ;;  %v363_v42 = vmul.f32 0.2, %v299_v20  ;;  %v354_v43 = vmul.f32 0.2, %v290_v19 }
  0xf5   :  { %vm331_vm11 = vcmp.gt.f32.partialorder %v299_v20, 0.0  ;;  %v287_v44 = vadd.f32 %v216_v38, %v898_v25  ;;  %v288_v48 = vadd.f32 %v216_v38, %v900_v26  ;;  %vm322_vm12 = vcmp.gt.f32.partialorder %v290_v19, 0.0 }
  0xf6   :  { %v305_v46 = vadd.f32 %v252_v33, %v898_v25  ;;  %v980_v50 = vadd.f32 %v252_v33, %v900_v26  ;;  %v224_v51 = vrot.slane %v965_v32, %v892_v16  ;;  %v149_v52 = vcombine.high %v920_v45, %v920_v45 }
  0xf7   :  { %481 = vadd.xlane.f32.xlu1 %v432_v39  ;;  %v423_v53 = vmul.f32 %v928_v47, %v385_v41  ;;  %v364_v54 = vmul.f32 0.2, %v300_v22  ;;  %v420_v55 = vmul.f32 %v928_v47, %v382_v40  ;;  %v395_v56 = vsel %vm331_vm11, %v299_v20, %v363_v42 }
  0xf8   :  { %455 = vadd.xlane.f32.xlu0 %v419_v37  ;;  %vm332_vm13 = vcmp.gt.f32.partialorder %v300_v22, 0.0  ;;  %v365_v57 = vmul.f32 0.2, %v301_v34  ;;  %v386_v58 = vsel %vm322_vm12, %v290_v19, %v354_v43  ;;  %vm333_vm14 = vcmp.gt.f32.partialorder %v301_v34, 0.0 }
  0xf9   :  { %v196_v59 = vrot.slane %v168_v36, %v896_v21  ;;  %v199_v60 = vcombine.high %v931_v49, %v931_v49  ;;  %v291_v61 = vadd.f32 %v224_v51, %v898_v25  ;;  %v993_v45 = vadd.f32 %v224_v51, %v900_v26 }
  0xfa   :  { %v433_v62 = vmul.f32 %v928_v47, %v395_v56  ;;  %v396_v63 = vsel %vm332_vm13, %v300_v22, %v364_v54  ;;  %v366_v0 = vmul.f32 0.2, %v302_v35  ;;  %v228_v1 = vrot.slane %v149_v52, %v892_v16 }
  0xfb   :  { %457 = vadd.xlane.f32.xlu1 %v420_v55  ;;  %v424_v2 = vmul.f32 %v928_v47, %v386_v58  ;;  %v397_v3 = vsel %vm333_vm14, %v301_v34, %v365_v57  ;;  %vm334_vm15 = vcmp.gt.f32.partialorder %v302_v35, 0.0  ;;  %v351_v21 = vmul.f32 0.2, %v287_v44 }
  0xfc   :  { %463 = vadd.xlane.f32.xlu0 %v423_v53  ;;  %v198_v49 = vcombine.high %v951_v5, %v951_v5  ;;  %vm319_vm0 = vcmp.gt.f32.partialorder %v287_v44, 0.0  ;;  %v293_v4 = vadd.f32 %v228_v1, %v898_v25  ;;  %v1002_v6 = vadd.f32 %v228_v1, %v900_v26 }
  0xfd   :  { %v434_v7 = vmul.f32 %v928_v47, %v396_v63  ;;  %v248_v8 = vrot.slane %v199_v60, %v892_v16  ;;  %v256_v12 = vrot.slane %v196_v59, %v892_v16  ;;  %v435_v13 = vmul.f32 %v928_v47, %v397_v3 }
  0xfe   :  { %v398_v14 = vsel %vm334_vm15, %v302_v35, %v366_v0  ;;  %vm320_vm1 = vcmp.gt.f32.partialorder %v288_v48, 0.0  ;;  %v352_v15 = vmul.f32 0.2, %v288_v48  ;;  %v383_v5 = vsel %vm319_vm0, %v287_v44, %v351_v21 }
  0xff   :  { %465 = vadd.xlane.f32.xlu1 %v424_v2  ;;  %vm337_vm2 = vcmp.gt.f32.partialorder %v305_v46, 0.0  ;;  %v369_v17 = vmul.f32 0.2, %v305_v46  ;;  %v303_v18 = vadd.f32 %v248_v8, %v898_v25  ;;  %v1010_v19 = vadd.f32 %v248_v8, %v900_v26 }
 0x100   :  { %483 = vadd.xlane.f32.xlu0 %v433_v62  ;;  %v307_v20 = vadd.f32 %v256_v12, %v898_v25  ;;  %v1014_v22 = vadd.f32 %v256_v12, %v900_v26  ;;  %v260_v23 = vrot.slane %v198_v49, %v892_v16  ;;  %v151_v24 = vcombine.high %v965_v32, %v965_v32 }
 0x101   :  { %v200_v27 = vcombine.high %v196_v59, %v196_v59  ;;  %v421_v28 = vmul.f32 %v928_v47, %v383_v5  ;;  %v436_v29 = vmul.f32 %v928_v47, %v398_v14  ;;  %v384_v30 = vsel %vm320_vm1, %v288_v48, %v352_v15 }
 0x102   :  { %v401_v31 = vsel %vm337_vm2, %v305_v46, %v369_v17  ;;  %v355_v33 = vmul.f32 0.2, %v291_v61  ;;  %v370_v34 = vmul.f32 0.2, %v980_v50  ;;  %vm323_vm3 = vcmp.gt.f32.partialorder %v291_v61, 0.0 }
 0x103   :  { %485 = vadd.xlane.f32.xlu1 %v434_v7  ;;  %v309_v35 = vadd.f32 %v260_v23, %v898_v25  ;;  %v1025_v36 = vadd.f32 %v260_v23, %v900_v26  ;;  %vm338_vm4 = vcmp.gt.f32.partialorder %v980_v50, 0.0  ;;  %v232_v32 = vrot.slane %v151_v24, %v892_v16 }
 0x104   :  { %487 = vadd.xlane.f32.xlu0 %v435_v13  ;;  %v422_v37 = vmul.f32 %v928_v47, %v384_v30  ;;  %v439_v38 = vmul.f32 %v928_v47, %v401_v31  ;;  %v387_v39 = vsel %vm323_vm3, %v291_v61, %v355_v33  ;;  %v357_v40 = vmul.f32 0.2, %v293_v4 }
 0x105   :  { %v295_v41 = vadd.f32 %v232_v32, %v898_v25  ;;  %v1033_v42 = vadd.f32 %v232_v32, %v900_v26  ;;  %v402_v43 = vsel %vm338_vm4, %v980_v50, %v370_v34  ;;  %v356_v44 = vmul.f32 0.2, %v993_v45 }
 0x106   :  { %vm325_vm5 = vcmp.gt.f32.partialorder %v293_v4, 0.0  ;;  %v264_v48 = vrot.slane %v200_v27, %v892_v16  ;;  %vm324_vm6 = vcmp.gt.f32.partialorder %v993_v45, 0.0  ;;  %v425_v46 = vmul.f32 %v928_v47, %v387_v39 }
 0x107   :  { %489 = vadd.xlane.f32.xlu1 %v436_v29  ;;  %v440_v52 = vmul.f32 %v928_v47, %v402_v43  ;;  %v389_v53 = vsel %vm325_vm5, %v293_v4, %v357_v40  ;;  %v367_v54 = vmul.f32 0.2, %v303_v18  ;;  %v388_v50 = vsel %vm324_vm6, %v993_v45, %v356_v44 }
 0x108   :  { %459 = vadd.xlane.f32.xlu0 %v421_v28  ;;  %v311_v51 = vadd.f32 %v264_v48, %v898_v25  ;;  %v312_v55 = vadd.f32 %v264_v48, %v900_v26  ;;  %v358_v56 = vmul.f32 0.2, %v1002_v6  ;;  %vm335_vm7 = vcmp.gt.f32.partialorder %v303_v18, 0.0 }
 0x109   :  { %vm326_vm8 = vcmp.gt.f32.partialorder %v1002_v6, 0.0  ;;  %v427_v57 = vmul.f32 %v928_v47, %v389_v53  ;;  %v426_v25 = vmul.f32 %v928_v47, %v388_v50  ;;  %v399_v58 = vsel %vm335_vm7, %v303_v18, %v367_v54 }
 0x10a   :  { %vm344_vm9 = vcmp.gt.f32.partialorder %v312_v55, 0.0  ;;  %v376_v16 = vmul.f32 0.2, %v312_v55  ;;  %v371_v59 = vmul.f32 0.2, %v307_v20  ;;  %v390_v26 = vsel %vm326_vm8, %v1002_v6, %v358_v56 }
 0x10b   :  { %461 = vadd.xlane.f32.xlu1 %v422_v37  ;;  %v368_v61 = vmul.f32 0.2, %v1010_v19  ;;  %vm339_vm10 = vcmp.gt.f32.partialorder %v307_v20, 0.0  ;;  %vm336_vm11 = vcmp.gt.f32.partialorder %v1010_v19, 0.0  ;;  %v437_v62 = vmul.f32 %v928_v47, %v399_v58 }
 0x10c   :  { %495 = vadd.xlane.f32.xlu0 %v439_v38  ;;  %v408_v60 = vsel %vm344_vm9, %v312_v55, %v376_v16  ;;  %v428_v63 = vmul.f32 %v928_v47, %v390_v26  ;;  %v403_v0 = vsel %vm339_vm10, %v307_v20, %v371_v59  ;;  %v373_v1 = vmul.f32 0.2, %v309_v35  ;;  %v1108_v26 = vld [vmem:[%s1205_s3] sm:$0xff] }
 0x10d   :  { %v446_v45 = vmul.f32 %v928_v47, %v408_v60  ;;  %v400_v2 = vsel %vm336_vm11, %v1010_v19, %v368_v61  ;;  %v372_v3 = vmul.f32 0.2, %v1014_v22  ;;  %vm341_vm12 = vcmp.gt.f32.partialorder %v309_v35, 0.0 }
 0x10e   :  { %vm340_vm13 = vcmp.gt.f32.partialorder %v1014_v22, 0.0  ;;  %v441_v21 = vmul.f32 %v928_v47, %v403_v0  ;;  %v438_v49 = vmul.f32 %v928_v47, %v400_v2  ;;  %v405_v4 = vsel %vm341_vm12, %v309_v35, %v373_v1 }
 0x10f   :  { %497 = vadd.xlane.f32.xlu1 %v440_v52  ;;  %v359_v6 = vmul.f32 0.2, %v295_v41  ;;  %v404_v7 = vsel %vm340_vm13, %v1014_v22, %v372_v3  ;;  %v374_v8 = vmul.f32 0.2, %v1025_v36  ;;  %vm327_vm14 = vcmp.gt.f32.partialorder %v295_v41, 0.0 }
 0x110   :  { %467 = vadd.xlane.f32.xlu0 %v425_v46  ;;  %vm342_vm15 = vcmp.gt.f32.partialorder %v1025_v36, 0.0  ;;  %v443_v12 = vmul.f32 %v928_v47, %v405_v4  ;;  %v442_v13 = vmul.f32 %v928_v47, %v404_v7  ;;  %v375_v15 = vmul.f32 0.2, %v311_v51 }
 0x111   :  { %v391_v14 = vsel %vm327_vm14, %v295_v41, %v359_v6  ;;  %v406_v5 = vsel %vm342_vm15, %v1025_v36, %v374_v8  ;;  %v360_v17 = vmul.f32 0.2, %v1033_v42  ;;  %vm343_vm0 = vcmp.gt.f32.partialorder %v311_v51, 0.0 }
 0x112   :  { %vm328_vm1 = vcmp.gt.f32.partialorder %v1033_v42, 0.0  ;;  %v429_v18 = vmul.f32 %v928_v47, %v391_v14  ;;  %v444_v19 = vmul.f32 %v928_v47, %v406_v5  ;;  %v407_v20 = vsel %vm343_vm0, %v311_v51, %v375_v15 }
 0x113   :  { %469 = vadd.xlane.f32.xlu1 %v426_v25  ;;  %v392_v22 = vsel %vm328_vm1, %v1033_v42, %v360_v17  ;;  %v445_v23 = vmul.f32 %v928_v47, %v407_v20  ;;  %v546_v48 = vand.u32 127, %v33_v10  ;;  %vm556_vm2 = vcmask 130112  }
 0x114   :  { %471 = vadd.xlane.f32.xlu0 %v427_v57  ;;  %v430_v24 = vmul.f32 %v928_v47, %v392_v22  ;;  %vm693_vm3 = vcmask 1041409   ;;  %vm695_vm4 = vcmask 1042434   ;;  %vm697_vm5 = vcmask 1043459  }
 0x115   :  { %v551_v51 = vadd.s32 4294967288, %v546_v48  ;;  %v1093_v50 = vsub.s32 %v546_v48, %v885_v11  ;;  %vm699_vm6 = vcmask 1044484   ;;  %vm701_vm7 = vcmask 1045509  }
 0x116   :  { %vm703_vm8 = vcmask 1046534   ;;  %vm705_vm9 = vcmask 1047559   ;;  %vm511_vm10 = vcmp.gt.f32.partialorder %v1108_v26, 0.0  ;;  %vm718_vm11 = vcmask 130048  }
 0x117   :  { %473 = vadd.xlane.f32.xlu1 %v428_v63  ;;  %v1090_v54 = vsub.s32 %v551_v51, %v885_v11  ;;  %vm835_vm13 = vmmov 0  }
 0x118   :  { %491 = vadd.xlane.f32.xlu0 %v437_v62  ;;  %816 = vmatprep.mubr.msk.bf16.mxu1 %vm835_vm13, %v833_v9 }
 0x11b   :  { %493 = vadd.xlane.f32.xlu1 %v438_v49 }
 0x11c   :  { %499 = vadd.xlane.f32.xlu0 %v441_v21 }
 0x11f   :  { %501 = vadd.xlane.f32.xlu1 %v442_v13 }
 0x120   :  { %503 = vadd.xlane.f32.xlu0 %v443_v12 }
 0x123   :  { %505 = vadd.xlane.f32.xlu1 %v444_v19 }
 0x124   :  { %475 = vadd.xlane.f32.xlu0 %v429_v18 }
 0x127   :  { %477 = vadd.xlane.f32.xlu1 %v430_v24 }
 0x128   :  { %507 = vadd.xlane.f32.xlu0 %v445_v23 }
 0x12b   :  { %509 = vadd.xlane.f32.xlu1 %v446_v45 }
 0x179   :  { %v448_v27 = vpop.xlane.xlu0 %447 }
 0x17a   :  { %v550_v25 = vrot.slane %v448_v27, %v1093_v50 }
 0x17c   :  { %v452_v29 = vpop.xlane.xlu1 %451 }
 0x17d   :  { %v450_v28 = vpop.xlane.xlu0 %449  ;;  %v561_v59 = vrot.slane %v452_v29, %v1093_v50 }
 0x17e   :  { %v555_v16 = vrot.slane %v450_v28, %v1090_v54 }
 0x180   :  { %v454_v31 = vpop.xlane.xlu1 %453  ;;  %v557_v61 = vsel %vm556_vm2, %v555_v16, %v550_v25  ;;  %v98_v16 = vld [vmem:[%s1205_s3 + $0x8] sm:$0xff] }
 0x181   :  { %v1072_v30 = vpop.xlane.xlu0 %479  ;;  %v565_v10 = vrot.slane %v454_v31, %v1090_v54  ;;  %vm512_vm12 = vcmp.gt.f32.partialorder %v98_v16, 0.0 }
 0x182   :  { %v624_v1 = vrot.slane %v1072_v30, %v1093_v50 }
 0x183   :  { %v566_v0 = vsel %vm556_vm2, %v565_v10, %v561_v59 }
 0x184   :  { %v1074_v34 = vpop.xlane.xlu1 %481  ;;  %v694_v14 = vsel %vm693_vm3, %v566_v0, %v557_v61 }
 0x185   :  { %v456_v33 = vpop.xlane.xlu0 %455  ;;  %v628_v21 = vrot.slane %v1074_v34, %v1090_v54 }
 0x186   :  { %v570_v45 = vrot.slane %v456_v33, %v1093_v50 }
 0x187   :  { %v629_v27 = vsel %vm556_vm2, %v628_v21, %v624_v1 }
 0x188   :  { %v458_v36 = vpop.xlane.xlu1 %457 }
 0x189   :  { %v1076_v35 = vpop.xlane.xlu0 %463  ;;  %v574_v58 = vrot.slane %v458_v36, %v1090_v54 }
 0x18a   :  { %v588_v15 = vrot.slane %v1076_v35, %v1093_v50 }
 0x18b   :  { %v575_v49 = vsel %vm556_vm2, %v574_v58, %v570_v45 }
 0x18c   :  { %v1078_v37 = vpop.xlane.xlu1 %465  ;;  %v696_v20 = vsel %vm695_vm4, %v575_v49, %v694_v14 }
 0x18d   :  { %v484_v32 = vpop.xlane.xlu0 %483  ;;  %v592_v4 = vrot.slane %v1078_v37, %v1090_v54 }
 0x18e   :  { %v633_v6 = vrot.slane %v484_v32, %v1093_v50 }
 0x18f   :  { %v593_v28 = vsel %vm556_vm2, %v592_v4, %v588_v15 }
 0x190   :  { %v486_v47 = vpop.xlane.xlu1 %485 }
 0x191   :  { %v488_v38 = vpop.xlane.xlu0 %487  ;;  %v637_v62 = vrot.slane %v486_v47, %v1090_v54 }
 0x192   :  { %v642_v7 = vrot.slane %v488_v38, %v1093_v50 }
 0x193   :  { %v638_v5 = vsel %vm556_vm2, %v637_v62, %v633_v6 }
 0x194   :  { %v490_v40 = vpop.xlane.xlu1 %489  ;;  %v707_v31 = vsel %vm693_vm3, %v638_v5, %v629_v27 }
 0x195   :  { %v460_v39 = vpop.xlane.xlu0 %459  ;;  %v646_v2 = vrot.slane %v490_v40, %v1090_v54 }
 0x196   :  { %v579_v3 = vrot.slane %v460_v39, %v1093_v50 }
 0x197   :  { %v647_v22 = vsel %vm556_vm2, %v646_v2, %v642_v7 }
 0x198   :  { %v462_v42 = vpop.xlane.xlu1 %461  ;;  %v708_v36 = vsel %vm695_vm4, %v647_v22, %v707_v31 }
 0x199   :  { %v1080_v41 = vpop.xlane.xlu0 %495  ;;  %v583_v11 = vrot.slane %v462_v42, %v1090_v54 }
 0x19a   :  { %v660_v48 = vrot.slane %v1080_v41, %v1093_v50 }
 0x19b   :  { %v584_v8 = vsel %vm556_vm2, %v583_v11, %v579_v3 }
 0x19c   :  { %v1084_v44 = vpop.xlane.xlu1 %497  ;;  %v698_v29 = vsel %vm697_vm5, %v584_v8, %v696_v20 }
 0x19d   :  { %v1082_v43 = vpop.xlane.xlu0 %467  ;;  %v664_v32 = vrot.slane %v1084_v44, %v1090_v54 }
 0x19e   :  { %v597_v23 = vrot.slane %v1082_v43, %v1093_v50  ;;  %v700_v43 = vsel %vm699_vm6, %v593_v28, %v698_v29 }
 0x19f   :  { %v665_v41 = vsel %vm556_vm2, %v664_v32, %v660_v48 }
 0x1a0   :  { %v470_v52 = vpop.xlane.xlu1 %469 }
 0x1a1   :  { %v1087_v46 = vpop.xlane.xlu0 %471  ;;  %v601_v12 = vrot.slane %v470_v52, %v1090_v54 }
 0x1a2   :  { %v606_v30 = vrot.slane %v1087_v46, %v1093_v50 }
 0x1a3   :  { %v602_v33 = vsel %vm556_vm2, %v601_v12, %v597_v23 }
 0x1a4   :  { %v474_v55 = vpop.xlane.xlu1 %473  ;;  %v702_v52 = vsel %vm701_vm7, %v602_v33, %v700_v43 }
 0x1a5   :  { %v492_v53 = vpop.xlane.xlu0 %491  ;;  %v610_v17 = vrot.slane %v474_v55, %v1090_v54 }
 0x1a6   :  { %v651_v24 = vrot.slane %v492_v53, %v1093_v50 }
 0x1a7   :  { %v611_v37 = vsel %vm556_vm2, %v610_v17, %v606_v30 }
 0x1a8   :  { %v494_v57 = vpop.xlane.xlu1 %493 }
 0x1a9   :  { %v1095_v56 = vpop.xlane.xlu0 %499  ;;  %v655_v13 = vrot.slane %v494_v57, %v1090_v54 }
 0x1aa   :  { %v669_v39 = vrot.slane %v1095_v56, %v1093_v50  ;;  %v704_v56 = vsel %vm703_vm8, %v611_v37, %v702_v52 }
 0x1ab   :  { %v656_v34 = vsel %vm556_vm2, %v655_v13, %v651_v24 }
 0x1ac   :  { %v502_v63 = vpop.xlane.xlu1 %501  ;;  %v709_v46 = vsel %vm697_vm5, %v656_v34, %v708_v36 }
 0x1ad   :  { %v1103_v60 = vpop.xlane.xlu0 %503  ;;  %v673_v35 = vrot.slane %v502_v63, %v1090_v54 }
 0x1ae   :  { %v678_v44 = vrot.slane %v1103_v60, %v1093_v50  ;;  %v710_v60 = vsel %vm699_vm6, %v665_v41, %v709_v46 }
 0x1af   :  { %v674_v53 = vsel %vm556_vm2, %v673_v35, %v669_v39 }
 0x1b0   :  { %v506_v18 = vpop.xlane.xlu1 %505  ;;  %v711_v45 = vsel %vm701_vm7, %v674_v53, %v710_v60 }
 0x1b1   :  { %v476_v19 = vpop.xlane.xlu0 %475  ;;  %v682_v38 = vrot.slane %v506_v18, %v1090_v54 }
 0x1b2   :  { %v615_v40 = vrot.slane %v476_v19, %v1093_v50  ;;  %v811_v19 = vld [vmem:[%s1206_s5] ss:$0 sm:$0xff] }
 0x1b3   :  { %v683_v57 = vsel %vm556_vm2, %v682_v38, %v678_v44 }
 0x1b4   :  { %v478_v47 = vpop.xlane.xlu1 %477  ;;  %v712_v63 = vsel %vm703_vm8, %v683_v57, %v711_v45 }
 0x1b5   :  { %v619_v42 = vrot.slane %v478_v47, %v1090_v54  ;;  %v508_v51 = vpop.xlane.xlu0 %507 }
 0x1b6   :  { %v687_v58 = vrot.slane %v508_v51, %v1093_v50 }
 0x1b7   :  { %v620_v55 = vsel %vm556_vm2, %v619_v42, %v615_v40 }
 0x1b8   :  { %v510_v10 = vpop.xlane.xlu1 %509  ;;  %v706_v25 = vsel %vm705_vm9, %v620_v55, %v704_v56 }
 0x1b9   :  { %v691_v59 = vrot.slane %v510_v10, %v1090_v54  ;;  %v716_v11 = vsel %vm511_vm10, %v706_v25, -1e+30 }
 0x1ba   :  { %v719_v61 = vsel %vm718_vm11, %v716_v11, -inf }
 0x1bb   :  { %720 = vmax.xlane.f32.xlu0 %v719_v61  ;;  %v692_v62 = vsel %vm556_vm2, %v691_v59, %v687_v58 }
 0x1bc   :  { %v713_v0 = vsel %vm705_vm9, %v692_v62, %v712_v63 }
 0x1bd   :  { %v717_v50 = vsel %vm512_vm12, %v713_v0, -1e+30 }
 0x1be   :  { %v722_v54 = vsel %vm718_vm11, %v717_v50, -inf }
 0x1bf   :  { %723 = vmax.xlane.f32.xlu1 %v722_v54 }
 0x248   :  { %v721_v1 = vpop.xlane.xlu0 %720 }
 0x249   :  { %v725_v2 = vsub.f32 %v716_v11, %v721_v1 }
 0x24b   :  { %v727_v3 = vmul.f32 1.442695, %v725_v2 }
 0x24c   :  { %v724_v21 = vpop.xlane.xlu1 %723 }
 0x24d   :  { %824 = vpow2.f32 %v727_v3  ;;  %v726_v49 = vsub.f32 %v717_v50, %v724_v21 }
 0x24f   :  { %v729_v4 = vmul.f32 1.442695, %v726_v49 }
 0x251   :  { %826 = vpow2.f32 %v729_v4 }
 0x257   :  { %v825_v6 = vpop.eup %824 }
 0x258   :  { %v731_v7 = vsel %vm511_vm10, %v825_v6, 0.0 }
 0x259   :  { %v733_v8 = vsel %vm718_vm11, %v731_v7, 0.0 }
 0x25a   :  { %734 = vadd.xlane.f32.xlu0 %v733_v8 }
 0x25b   :  { %v827_v12 = vpop.eup %826 }
 0x25c   :  { %v732_v13 = vsel %vm512_vm12, %v827_v12, 0.0 }
 0x25d   :  { %v736_v9 = vsel %vm718_vm11, %v732_v13, 0.0  ;;  %v739_v14 = vpack.c.bf16 %v732_v13, %v731_v7 }
 0x25e   :  { %737 = vadd.xlane.f32.xlu1 %v736_v9 }
 0x25f   :  { %817 = vmatmul.mubr.msk.bf16.vlgmr.msra.gmra.mrb[0].mxu1 %vm718_vm11, %v739_v14 }
 0x2e7   :  { %v735_v15 = vpop.xlane.xlu0 %734 }
 0x2e8   :  { %v785_v17 = vmax.f32 %v735_v15, 1e-12 }
 0x2ea   :  { %828 = vrcp.f32 %v785_v17 }
 0x2eb   :  { %v738_v5 = vpop.xlane.xlu1 %737 }
 0x2ec   :  { %v786_v18 = vmax.f32 %v738_v5, 1e-12 }
 0x2ee   :  { %830 = vrcp.f32 %v786_v18 }
 0x2f4   :  { %v829_v26 = vpop.eup %828 }
 0x2f8   :  { %v831_v24 = vpop.eup %830 }
 0x332   :  { %v778_v20 = vpop.f32.mrb[0].mxu1 }
 0x333   :  { %v789_v22 = vmul.f32 %v829_v26, %v778_v20  ;;  %v818_v23 = vpop.f32.mrb[1].mxu1 }
 0x334   :  { %v781_v27 = vpop.f32.mrb[2].mxu1 }
 0x335   :  { %v797_v28 = vadd.f32 %v811_v19, %v789_v22  ;;  %v790_v29 = vmul.f32 %v831_v24, %v781_v27  ;;  %v819_v30 = vpop.f32.mrb[3].mxu1 }
 0x337   :  { %v799_v31 = vmax.f32 %v797_v28, 0.0  ;;  %v798_v33 = vadd.f32 %v811_v19, %v790_v29 }
 0x339   :  { %801 = vst [vmem:[%s1207_s6] sm:$0xff] %v799_v31  ;;  %v800_v34 = vmax.f32 %v798_v33, 0.0 }
 0x33b   :  { %802 = vst [vmem:[%s1207_s6 + $0x8] sm:$0xff] %v800_v34 }

// kernel: meta_gatv2_forward.7
= control target key start
LH: loop header
LB: loop body
LE: loop exit
PB: predicated region body
PF: predicated region fallthrough
CT: control target
= control target key end

     0   :  { %v971_v0 = vmov 0.0   ;;  %vm972_vm0 = vmmov 0   ;;  %vm55_vm1 = vcmask 1043456   ;;  %v973_v11 = vmov 0   ;;  %s1363_s4 = inlined_call_operand.vmem [shape: f32[32,128], index: 4, kind: input, shape index: {}]   ;;  %s1364_s2 = inlined_call_operand.vmem [shape: f32[8,128], index: 2, kind: input, shape index: {}]   ;;  %s1365_s1 = inlined_call_operand.vmem [shape: f32[12,32], index: 1, kind: input, shape index: {}]   ;;  %s1366_s0 = inlined_call_operand.vmem [shape: f32[16,8], index: 0, kind: input, shape index: {}]   ;;  %s1367_s7 = inlined_call_operand.vmem [shape: f32[12,16,1], index: 7, kind: input, shape index: {}]   ;;  %s1368_s3 = inlined_call_operand.vmem [shape: f32[1,128], index: 3, kind: input, shape index: {}]   ;;  %s1369_s5 = inlined_call_operand.vmem [shape: f32[1,128], index: 5, kind: input, shape index: {}]   ;;  %s1370_s6 = inlined_call_operand.vmem [shape: f32[1,128], index: 6, kind: input, shape index: {}]   ;;  %s1371_s9 = inlined_call_operand.vmem [shape: f32[1,1,128], index: 9, kind: input, shape index: {}]   ;;  %s1372_s8 = inlined_call_operand.vmem [shape: f32[12,16], index: 8, kind: input, shape index: {}]   ;;  %s1373_s10 = inlined_call_operand.vmem [shape: f32[1,128], index: 10, kind: input, shape index: {}]   ;;  %s1374_s11 = inlined_call_operand.vmem [shape: f32[12,128], index: 11, kind: output, shape index: {}]  }
   0x1   :  { %943 = vmatprep.subr.bf16.mxu1 %v971_v0  ;;  %v102_v1 = vld [vmem:[%s1363_s4] sm:$0xff]  ;;  %v103_v2 = vld [vmem:[%s1363_s4 + $0x8] sm:$0xff]  ;;  %v104_v3 = vld [vmem:[%s1363_s4 + $0x10] sm:$0xff]  ;;  %937 = vmatprep.subr.bf16.mxu0 %v971_v0  ;;  %vm51_vm2 = vcmask 64512   ;;  %vm116_vm3 = vcmask 261120   ;;  %v346_v41 = vlaneseq }
   0x2   :  { %v107_v4 = vpack.c.bf16 %v103_v2, %v102_v1  ;;  %v105_v5 = vld [vmem:[%s1363_s4 + $0x18] sm:$0xff]  ;;  %947 = vmatprep.mubr.msk.bf16.mxu1 %vm972_vm0, %v971_v0  ;;  %v41_v6 = vld [vmem:[%s1364_s2] sm:$0xff]  ;;  %939 = vmatprep.mubr.msk.bf16.mxu0 %vm972_vm0, %v971_v0  ;;  %v40_v10 = vld [vmem:[%s1366_s0 + $0x8] sm:$0xff]  ;;  %v974_v54 = vmov 1966171168  }
   0x3   :  { %v43_v7 = vpack.c.bf16 %v41_v6, %v41_v6  ;;  %v100_v8 = vld [vmem:[%s1365_s1] sm:$0xff]  ;;  %962 = vset.pattern.permute.xlu1 %v973_v11  ;;  %961 = vset.pattern.permute.xlu0 %v973_v11  ;;  %v108_v12 = vpack.c.bf16 %v105_v5, %v104_v3  ;;  %v101_v13 = vld [vmem:[%s1365_s1 + $0x8] sm:$0xf]  ;;  %v163_v14 = vld [vmem:[%s1367_s7 + $0x10] sm:$0xff]  ;;  %v347_v42 = vshrl.u32 %v346_v41, 7  ;;  %v700_v43 = vand.u32 127, %v346_v41 }
   0x4   :  { %v39_v9 = vld [vmem:[%s1366_s0] sm:$0xff]  ;;  %944 = vmatpush3.bf16.msra.mxu1 %v107_v4  ;;  %198 = vperm.xlu1 %962, %v163_v14   ;;  %v164_v18 = vld [vmem:[%s1367_s7 + $0x18] sm:$0xff]  ;;  %v106_v19 = vpack.c.bf16 %v101_v13, %v100_v8  ;;  %v162_v20 = vld [vmem:[%s1367_s7 + $0x8] sm:$0xff]  ;;  %v344_v55 = vunpack.c.l.s4 %v974_v54 }
   0x5   :  { %v161_v15 = vld [vmem:[%s1367_s7] sm:$0xff]  ;;  %945 = vmatprep.subr.bf16.mxu1 %v971_v0  ;;  %v57_v16 = vsel %vm55_vm1, %v43_v7, 0  ;;  %v42_v17 = vpack.c.bf16 %v40_v10, %v39_v9  ;;  %v166_v21 = vld [vmem:[%s1367_s7 + $0x28] sm:$0xff]  ;;  %v168_v23 = vld [vmem:[%s1367_s7 + $0x38] sm:$0xff]  ;;  %v1137_v44 = vsub.s32 %v700_v43, %v347_v42  ;;  %v705_v45 = vadd.s32 4294967288, %v700_v43 }
   0x6   :  { %938 = vmatpush3.bf16.msra.mxu0 %v57_v16  ;;  %188 = vperm.xlu0 %961, %v161_v15   ;;  %v165_v22 = vld [vmem:[%s1367_s7 + $0x20] sm:$0xff]  ;;  %v167_v24 = vld [vmem:[%s1367_s7 + $0x30] sm:$0xff]  ;;  %v170_v25 = vld [vmem:[%s1367_s7 + $0x48] sm:$0xff]  ;;  %v345_v57 = vunpack.c.0.s8 %v344_v55 }
   0x7   :  { %951 = vmatprep.subr.bf16.mxu0 %v971_v0  ;;  %v169_v26 = vld [vmem:[%s1367_s7 + $0x40] sm:$0xff]  ;;  %v172_v27 = vld [vmem:[%s1367_s7 + $0x58] sm:$0xff]  ;;  %v171_v28 = vld [vmem:[%s1367_s7 + $0x50] sm:$0xff]  ;;  %v1139_v46 = vsub.s32 %v705_v45, %v347_v42 }
   0x8   :  { %946 = vmatpush3.bf16.msra.mxu1 %v108_v12  ;;  %203 = vperm.xlu1 %962, %v164_v18   ;;  %v178_v29 = vld [vmem:[%s1367_s7 + $0x88] sm:$0xff]  ;;  %v177_v30 = vld [vmem:[%s1367_s7 + $0x80] sm:$0xff]  ;;  %v180_v31 = vld [vmem:[%s1367_s7 + $0x98] sm:$0xff]  ;;  %v348_v63 = vsub.s32 %v345_v57, %v347_v42 }
   0x9   :  { %940 = vmatmul.mubr.msk.bf16.vlgmr.msra.gmra.mrb[0].mxu0 %vm51_vm2, %v42_v17  ;;  %v179_v32 = vld [vmem:[%s1367_s7 + $0x90] sm:$0xff]  ;;  %v174_v33 = vld [vmem:[%s1367_s7 + $0x68] sm:$0xff]  ;;  %v173_v34 = vld [vmem:[%s1367_s7 + $0x60] sm:$0xff]  ;;  %v1162_v17 = vsub.s32 0, %v347_v42 }
   0xa   :  { %193 = vperm.xlu0 %961, %v162_v20   ;;  %953 = vmatprep.mubr.msk.bf16.mxu0 %vm972_vm0, %v971_v0  ;;  %v182_v35 = vld [vmem:[%s1367_s7 + $0xa8] sm:$0xff]  ;;  %v181_v36 = vld [vmem:[%s1367_s7 + $0xa0] sm:$0xff]  ;;  %v176_v37 = vld [vmem:[%s1367_s7 + $0x78] sm:$0xff] }
   0xb   :  { %948 = vmatmul.mubr.msk.bf16.vlgmr.msra.gmra.mrb[0].mxu1 %vm116_vm3, %v106_v19  ;;  %v175_v38 = vld [vmem:[%s1367_s7 + $0x70] sm:$0xff]  ;;  %v184_v39 = vld [vmem:[%s1367_s7 + $0xb8] sm:$0xff]  ;;  %v922_v58 = vld [vmem:[%s1368_s3] ss:$0 sm:$0xff] }
   0xc   :  { %213 = vperm.xlu1 %962, %v166_v21   ;;  %v183_v40 = vld [vmem:[%s1367_s7 + $0xb0] sm:$0xff]  ;;  %v924_v61 = vld [vmem:[%s1369_s5] ss:$0 sm:$0xff] }
   0xd   :  { %v1156_v9 = vld [vmem:[%s1370_s6] ss:$0 sm:$0xff] }
   0xe   :  { %208 = vperm.xlu0 %961, %v165_v22  }
  0x10   :  { %223 = vperm.xlu1 %962, %v168_v23  }
  0x12   :  { %218 = vperm.xlu0 %961, %v167_v24  }
  0x14   :  { %233 = vperm.xlu1 %962, %v170_v25  }
  0x16   :  { %228 = vperm.xlu0 %961, %v169_v26  }
  0x18   :  { %243 = vperm.xlu1 %962, %v172_v27  }
  0x1a   :  { %238 = vperm.xlu0 %961, %v171_v28  }
  0x1c   :  { %273 = vperm.xlu1 %962, %v178_v29  }
  0x1e   :  { %268 = vperm.xlu0 %961, %v177_v30  }
  0x20   :  { %283 = vperm.xlu1 %962, %v180_v31  }
  0x22   :  { %278 = vperm.xlu0 %961, %v179_v32  }
  0x24   :  { %253 = vperm.xlu1 %962, %v174_v33  }
  0x26   :  { %248 = vperm.xlu0 %961, %v173_v34  }
  0x28   :  { %293 = vperm.xlu1 %962, %v182_v35  }
  0x2a   :  { %288 = vperm.xlu0 %961, %v181_v36  }
  0x2c   :  { %263 = vperm.xlu1 %962, %v176_v37  }
  0x2e   :  { %258 = vperm.xlu0 %961, %v175_v38  }
  0x30   :  { %303 = vperm.xlu1 %962, %v184_v39  }
  0x32   :  { %298 = vperm.xlu0 %961, %v183_v40  }
  0x83   :  { %v199_v47 = vpop.permute.xlu1 %198 }
  0x84   :  { %v314_v22 = vmul.f32 %v1156_v9, %v199_v47 }
  0x85   :  { %v189_v48 = vpop.permute.xlu0 %188 }
  0x86   :  { %v312_v23 = vmul.f32 %v1156_v9, %v189_v48 }
  0x87   :  { %v204_v49 = vpop.permute.xlu1 %203 }
  0x88   :  { %v315_v24 = vmul.f32 %v1156_v9, %v204_v49 }
  0x89   :  { %v194_v50 = vpop.permute.xlu0 %193 }
  0x8a   :  { %v313_v25 = vmul.f32 %v1156_v9, %v194_v50 }
  0x8b   :  { %v214_v51 = vpop.permute.xlu1 %213 }
  0x8c   :  { %v317_v29 = vmul.f32 %v1156_v9, %v214_v51 }
  0x8d   :  { %v209_v52 = vpop.permute.xlu0 %208 }
  0x8e   :  { %v316_v30 = vmul.f32 %v1156_v9, %v209_v52 }
  0x8f   :  { %v1141_v53 = vpop.permute.xlu1 %223 }
  0x91   :  { %v219_v56 = vpop.permute.xlu0 %218 }
  0x92   :  { %v1173_v33 = vmul.f32 %v1156_v9, %v219_v56 }
  0x93   :  { %v234_v59 = vpop.permute.xlu1 %233 }
  0x94   :  { %v1178_v37 = vmul.f32 %v1156_v9, %v234_v59 }
  0x95   :  { %v229_v60 = vpop.permute.xlu0 %228 }
  0x96   :  { %v320_v43 = vmul.f32 %v1156_v9, %v229_v60 }
  0x97   :  { %v1160_v15 = vpop.permute.xlu1 %243 }
  0x99   :  { %v239_v16 = vpop.permute.xlu0 %238 }
  0x9a   :  { %v1185_v45 = vmul.f32 %v1156_v9, %v239_v16 }
  0x9b   :  { %v274_v38 = vpop.permute.xlu1 %273 }
  0x9c   :  { %v1188_v47 = vmul.f32 %v1156_v9, %v274_v38 }
  0x9d   :  { %v269_v39 = vpop.permute.xlu0 %268 }
  0x9e   :  { %v328_v48 = vmul.f32 %v1156_v9, %v269_v39 }
  0xdc   :  { %v93_v62 = vpop.f32.mrb[0].mxu0 }
  0xdd   :  { %v1149_v0 = vadd.f32 %v922_v58, %v93_v62  ;;  %v941_v1 = vpop.f32.mrb[1].mxu0 }
  0xde   :  { %v154_v2 = vpop.f32.mrb[0].mxu1  ;;  %v96_v3 = vpop.f32.mrb[2].mxu0 }
  0xdf   :  { %v155_v4 = vadd.f32 %v924_v61, %v154_v2  ;;  %v949_v5 = vpop.f32.mrb[1].mxu1  ;;  %v1151_v6 = vadd.f32 %v922_v58, %v96_v3  ;;  %v942_v7 = vpop.f32.mrb[3].mxu0 }
  0xe0   :  { %v157_v8 = vpop.f32.mrb[2].mxu1  ;;  %v1217_v5 = vld [vmem:[%s1371_s9] ss:$0 sm:$0xff] }
  0xe1   :  { %v342_v10 = vcombine.high %v155_v4, %v155_v4  ;;  %v349_v11 = vrot.slane %v155_v4, %v348_v63  ;;  %v158_v12 = vadd.f32 %v924_v61, %v157_v8  ;;  %v950_v13 = vpop.f32.mrb[3].mxu1  ;;  %v855_v14 = vpack.c.bf16 %v1151_v6, %v1149_v0 }
  0xe3   :  { %v356_v18 = vrot.slane %v342_v10, %v348_v63  ;;  %v357_v19 = vcombine.high %v349_v11, %v349_v11  ;;  %v365_v20 = vrot.slane %v349_v11, %v348_v63  ;;  %v397_v21 = vrot.slane %v158_v12, %v348_v63  ;;  %952 = vmatpush3.bf16.msra.mxu0 %v855_v14  ;;  %v279_v14 = vpop.permute.xlu0 %278 }
  0xe5   :  { %v1168_v26 = vrot.slane %v356_v18, %v348_v63  ;;  %v379_v27 = vrot.slane %v357_v19, %v348_v63  ;;  %v387_v28 = vcombine.high %v365_v20, %v365_v20  ;;  %v358_v31 = vcombine.high %v356_v18, %v356_v18 }
  0xe6   :  { %v398_v32 = vcombine.high %v397_v21, %v397_v21  ;;  %v418_v35 = vrot.slane %v365_v20, %v1162_v17  ;;  %v1196_v51 = vrot.slane %v397_v21, %v348_v63 }
  0xe7   :  { %v389_v34 = vcombine.high %v379_v27, %v379_v27  ;;  %v422_v36 = vrot.slane %v379_v27, %v1162_v17  ;;  %v426_v40 = vrot.slane %v387_v28, %v1162_v17  ;;  %v434_v41 = vrot.slane %v1168_v26, %v1162_v17 }
  0xe8   :  { %v412_v42 = vrot.slane %v398_v32, %v348_v63  ;;  %v1191_v49 = vrot.slane %v358_v31, %v348_v63  ;;  %v475_v54 = vadd.f32 %v418_v35, %v1149_v0  ;;  %v476_v55 = vadd.f32 %v418_v35, %v1151_v6 }
  0xe9   :  { %v1194_v50 = vrot.slane %v389_v34, %v1162_v17  ;;  %v477_v56 = vadd.f32 %v422_v36, %v1149_v0  ;;  %v479_v57 = vadd.f32 %v426_v40, %v1149_v0  ;;  %v478_v59 = vadd.f32 %v422_v36, %v1151_v6 }
  0xea   :  { %v414_v52 = vcombine.high %v412_v42, %v412_v42  ;;  %v483_v60 = vadd.f32 %v434_v41, %v1149_v0  ;;  %v480_v61 = vadd.f32 %v426_v40, %v1151_v6  ;;  %v499_v62 = vadd.f32 %v475_v54, %v312_v23  ;;  %v249_v40 = vpop.permute.xlu0 %248 }
  0xeb   :  { %v500_v63 = vadd.f32 %v476_v55, %v313_v25  ;;  %v501_v1 = vadd.f32 %v477_v56, %v314_v22  ;;  %v503_v2 = vadd.f32 %v479_v57, %v316_v30  ;;  %v450_v3 = vrot.slane %v1196_v51, %v1162_v17 }
  0xec   :  { %v1203_v58 = vrot.slane %v414_v52, %v1162_v17  ;;  %v502_v7 = vadd.f32 %v478_v59, %v315_v24  ;;  %v507_v8 = vadd.f32 %v483_v60, %v320_v43  ;;  %vm523_vm4 = vcmp.gt.f32.partialorder %v499_v62, 0.0  ;;  %v284_v60 = vpop.permute.xlu1 %283 }
  0xed   :  { %v547_v10 = vmul.f32 0.2, %v499_v62  ;;  %vm524_vm5 = vcmp.gt.f32.partialorder %v500_v63, 0.0  ;;  %v548_v11 = vmul.f32 0.2, %v500_v63  ;;  %vm525_vm6 = vcmp.gt.f32.partialorder %v501_v1, 0.0 }
  0xee   :  { %v1212_v4 = vadd.f32 %v1203_v58, %v1149_v0  ;;  %v549_v12 = vmul.f32 0.2, %v501_v1  ;;  %vm527_vm7 = vcmp.gt.f32.partialorder %v503_v2, 0.0  ;;  %v504_v13 = vadd.f32 %v480_v61, %v317_v29 }
  0xef   :  { %v571_v16 = vsel %vm523_vm4, %v499_v62, %v547_v10  ;;  %v572_v18 = vsel %vm524_vm5, %v500_v63, %v548_v11  ;;  %v551_v19 = vmul.f32 0.2, %v503_v2  ;;  %vm526_vm8 = vcmp.gt.f32.partialorder %v502_v7, 0.0 }
  0xf0   :  { %v601_v20 = vmul.f32 %v1217_v5, %v571_v16  ;;  %v602_v21 = vmul.f32 %v1217_v5, %v572_v18  ;;  %v573_v22 = vsel %vm525_vm6, %v501_v1, %v549_v12  ;;  %v550_v23 = vmul.f32 0.2, %v502_v7 }
  0xf1   :  { %v388_v24 = vcombine.high %v1168_v26, %v1168_v26  ;;  %v438_v25 = vrot.slane %v1191_v49, %v1162_v17  ;;  %v575_v27 = vsel %vm527_vm7, %v503_v2, %v551_v19  ;;  %v555_v28 = vmul.f32 0.2, %v507_v8  ;;  %v289_v2 = vpop.permute.xlu0 %288 }
  0xf2   :  { %v413_v29 = vcombine.high %v1196_v51, %v1196_v51  ;;  %v454_v30 = vrot.slane %v412_v42, %v1162_v17  ;;  %625 = vadd.xlane.f32.xlu0 %v601_v20  ;;  %627 = vadd.xlane.f32.xlu1 %v602_v21  ;;  %v603_v31 = vmul.f32 %v1217_v5, %v573_v22  ;;  %vm531_vm9 = vcmp.gt.f32.partialorder %v507_v8, 0.0  ;;  %v254_v20 = vpop.permute.xlu1 %253 }
  0xf3   :  { %v605_v32 = vmul.f32 %v1217_v5, %v575_v27  ;;  %v574_v34 = vsel %vm526_vm8, %v502_v7, %v550_v23  ;;  %v491_v26 = vadd.f32 %v450_v3, %v1149_v0  ;;  %v484_v35 = vadd.f32 %v434_v41, %v1151_v6 }
  0xf4   :  { %vm528_vm10 = vcmp.gt.f32.partialorder %v504_v13, 0.0  ;;  %v552_v36 = vmul.f32 0.2, %v504_v13  ;;  %v481_v38 = vadd.f32 %v1194_v50, %v1149_v0  ;;  %v492_v39 = vadd.f32 %v450_v3, %v1151_v6 }
  0xf5   :  { %v579_v42 = vsel %vm531_vm9, %v507_v8, %v555_v28  ;;  %v515_v43 = vadd.f32 %v491_v26, %v328_v48  ;;  %v508_v51 = vadd.f32 %v484_v35, %v1178_v37  ;;  %v485_v52 = vadd.f32 %v438_v25, %v1149_v0 }
  0xf6   :  { %629 = vadd.xlane.f32.xlu0 %v603_v31  ;;  %633 = vadd.xlane.f32.xlu1 %v605_v32  ;;  %v604_v54 = vmul.f32 %v1217_v5, %v574_v34  ;;  %v505_v41 = vadd.f32 %v481_v38, %v1173_v33  ;;  %v482_v55 = vadd.f32 %v1194_v50, %v1151_v6  ;;  %v294_v38 = vpop.permute.xlu1 %293 }
  0xf7   :  { %vm539_vm11 = vcmp.gt.f32.partialorder %v515_v43, 0.0  ;;  %v563_v56 = vmul.f32 0.2, %v515_v43  ;;  %v556_v57 = vmul.f32 0.2, %v508_v51  ;;  %v516_v59 = vadd.f32 %v492_v39, %v1188_v47 }
  0xf8   :  { %v609_v48 = vmul.f32 %v1217_v5, %v579_v42  ;;  %v576_v37 = vsel %vm528_vm10, %v504_v13, %v552_v36  ;;  %vm532_vm12 = vcmp.gt.f32.partialorder %v508_v51, 0.0  ;;  %v553_v61 = vmul.f32 0.2, %v505_v41 }
  0xf9   :  { %v442_v62 = vrot.slane %v388_v24, %v1162_v17  ;;  %v587_v63 = vsel %vm539_vm11, %v515_v43, %v563_v56  ;;  %vm529_vm13 = vcmp.gt.f32.partialorder %v505_v41, 0.0  ;;  %v509_v33 = vadd.f32 %v485_v52, %v1185_v45 }
  0xfa   :  { %v319_v50 = vmul.f32 %v1156_v9, %v1141_v53  ;;  %v330_v1 = vmul.f32 %v1156_v9, %v279_v14  ;;  %v458_v47 = vrot.slane %v413_v29, %v1162_v17  ;;  %631 = vadd.xlane.f32.xlu0 %v604_v54  ;;  %641 = vadd.xlane.f32.xlu1 %v609_v48  ;;  %vm540_vm14 = vcmp.gt.f32.partialorder %v516_v59, 0.0 }
  0xfb   :  { %v606_v3 = vmul.f32 %v1217_v5, %v576_v37  ;;  %v580_v7 = vsel %vm532_vm12, %v508_v51, %v556_v57  ;;  %v564_v8 = vmul.f32 0.2, %v516_v59  ;;  %v617_v10 = vmul.f32 %v1217_v5, %v587_v63 }
  0xfc   :  { %v577_v11 = vsel %vm529_vm13, %v505_v41, %v553_v61  ;;  %v506_v12 = vadd.f32 %v482_v55, %v319_v50  ;;  %v493_v45 = vadd.f32 %v454_v30, %v1149_v0  ;;  %v557_v13 = vmul.f32 0.2, %v509_v33 }
  0xfd   :  { %v486_v53 = vadd.f32 %v438_v25, %v1151_v6  ;;  %v487_v14 = vadd.f32 %v442_v62, %v1149_v0  ;;  %v494_v16 = vadd.f32 %v454_v30, %v1151_v6  ;;  %v323_v18 = vmul.f32 %v1156_v9, %v1160_v15  ;;  %v259_v30 = vpop.permute.xlu0 %258 }
  0xfe   :  { %v331_v19 = vmul.f32 %v1156_v9, %v284_v60  ;;  %635 = vadd.xlane.f32.xlu0 %v606_v3  ;;  %657 = vadd.xlane.f32.xlu1 %v617_v10  ;;  %vm533_vm15 = vcmp.gt.f32.partialorder %v509_v33, 0.0  ;;  %v517_v21 = vadd.f32 %v493_v45, %v330_v1  ;;  %v324_v22 = vmul.f32 %v1156_v9, %v249_v40  ;;  %v264_v1 = vpop.permute.xlu1 %263 }
  0xff   :  { %v610_v23 = vmul.f32 %v1217_v5, %v580_v7  ;;  %v607_v24 = vmul.f32 %v1217_v5, %v577_v11  ;;  %v588_v25 = vsel %vm540_vm14, %v516_v59, %v564_v8  ;;  %v554_v27 = vmul.f32 0.2, %v506_v12 }
 0x100   :  { %v510_v28 = vadd.f32 %v486_v53, %v323_v18  ;;  %v495_v29 = vadd.f32 %v458_v47, %v1149_v0  ;;  %v488_v15 = vadd.f32 %v442_v62, %v1151_v6  ;;  %v581_v31 = vsel %vm533_vm15, %v509_v33, %v557_v13 }
 0x101   :  { %vm530_vm0 = vcmp.gt.f32.partialorder %v506_v12, 0.0  ;;  %v565_v32 = vmul.f32 0.2, %v517_v21  ;;  %v511_v34 = vadd.f32 %v487_v14, %v324_v22  ;;  %v390_v26 = vcombine.high %v1191_v49, %v1191_v49  ;;  %v299_v57 = vpop.permute.xlu0 %298 }
 0x102   :  { %643 = vadd.xlane.f32.xlu0 %v610_v23  ;;  %637 = vadd.xlane.f32.xlu1 %v607_v24  ;;  %vm541_vm1 = vcmp.gt.f32.partialorder %v517_v21, 0.0  ;;  %v332_v35 = vmul.f32 %v1156_v9, %v289_v2  ;;  %v518_v36 = vadd.f32 %v494_v16, %v331_v19  ;;  %v618_v39 = vmul.f32 %v1217_v5, %v588_v25  ;;  %v304_v13 = vpop.permute.xlu1 %303 }
 0x103   :  { %v611_v40 = vmul.f32 %v1217_v5, %v581_v31  ;;  %v578_v42 = vsel %vm530_vm0, %v506_v12, %v554_v27  ;;  %v558_v43 = vmul.f32 0.2, %v510_v28  ;;  %v589_v51 = vsel %vm541_vm1, %v517_v21, %v565_v32 }
 0x104   :  { %vm534_vm2 = vcmp.gt.f32.partialorder %v510_v28, 0.0  ;;  %v559_v52 = vmul.f32 0.2, %v511_v34  ;;  %v519_v54 = vadd.f32 %v495_v29, %v332_v35  ;;  %v325_v41 = vmul.f32 %v1156_v9, %v254_v20 }
 0x105   :  { %vm535_vm3 = vcmp.gt.f32.partialorder %v511_v34, 0.0  ;;  %v446_v49 = vrot.slane %v390_v26, %v1162_v17  ;;  %v496_v55 = vadd.f32 %v458_v47, %v1151_v6  ;;  %v326_v56 = vmul.f32 %v1156_v9, %v259_v30 }
 0x106   :  { %659 = vadd.xlane.f32.xlu0 %v618_v39  ;;  %645 = vadd.xlane.f32.xlu1 %v611_v40  ;;  %v608_v59 = vmul.f32 %v1217_v5, %v578_v42  ;;  %vm542_vm4 = vcmp.gt.f32.partialorder %v518_v36, 0.0  ;;  %v498_v60 = vadd.f32 %v1203_v58, %v1151_v6  ;;  %v619_v48 = vmul.f32 %v1217_v5, %v589_v51 }
 0x107   :  { %v582_v37 = vsel %vm534_vm2, %v510_v28, %v558_v43  ;;  %v566_v61 = vmul.f32 0.2, %v518_v36  ;;  %v489_v62 = vadd.f32 %v446_v49, %v1149_v0  ;;  %v583_v63 = vsel %vm535_vm3, %v511_v34, %v559_v52 }
 0x108   :  { %v567_v33 = vmul.f32 0.2, %v519_v54  ;;  %v512_v17 = vadd.f32 %v488_v15, %v325_v41  ;;  %v490_v50 = vadd.f32 %v446_v49, %v1151_v6  ;;  %v334_v47 = vmul.f32 %v1156_v9, %v299_v57 }
 0x109   :  { %vm543_vm5 = vcmp.gt.f32.partialorder %v519_v54, 0.0  ;;  %v513_v2 = vadd.f32 %v489_v62, %v326_v56  ;;  %v333_v58 = vmul.f32 %v1156_v9, %v294_v38  ;;  %v612_v7 = vmul.f32 %v1217_v5, %v582_v37 }
 0x10a   :  { %639 = vadd.xlane.f32.xlu0 %v608_v59  ;;  %661 = vadd.xlane.f32.xlu1 %v619_v48  ;;  %v521_v3 = vadd.f32 %v1212_v4, %v334_v47  ;;  %v613_v0 = vmul.f32 %v1217_v5, %v583_v63  ;;  %v590_v8 = vsel %vm542_vm4, %v518_v36, %v566_v61  ;;  %v560_v11 = vmul.f32 0.2, %v512_v17 }
 0x10b   :  { %v591_v10 = vsel %vm543_vm5, %v519_v54, %v567_v33  ;;  %v561_v6 = vmul.f32 0.2, %v513_v2  ;;  %v520_v12 = vadd.f32 %v496_v55, %v333_v58  ;;  %vm536_vm6 = vcmp.gt.f32.partialorder %v512_v17, 0.0 }
 0x10c   :  { %vm537_vm7 = vcmp.gt.f32.partialorder %v513_v2, 0.0  ;;  %v327_v45 = vmul.f32 %v1156_v9, %v264_v1  ;;  %v620_v53 = vmul.f32 %v1217_v5, %v590_v8  ;;  %v621_v4 = vmul.f32 %v1217_v5, %v591_v10 }
 0x10d   :  { %v569_v14 = vmul.f32 0.2, %v521_v3  ;;  %v584_v16 = vsel %vm536_vm6, %v512_v17, %v560_v11  ;;  %v585_v18 = vsel %vm537_vm7, %v513_v2, %v561_v6  ;;  %v568_v19 = vmul.f32 0.2, %v520_v12 }
 0x10e   :  { %647 = vadd.xlane.f32.xlu0 %v612_v7  ;;  %649 = vadd.xlane.f32.xlu1 %v613_v0  ;;  %v514_v20 = vadd.f32 %v490_v50, %v327_v45  ;;  %vm544_vm8 = vcmp.gt.f32.partialorder %v520_v12, 0.0  ;;  %vm545_vm9 = vcmp.gt.f32.partialorder %v521_v3, 0.0  ;;  %v335_v21 = vmul.f32 %v1156_v9, %v304_v13 }
 0x10f   :  { %v614_v22 = vmul.f32 %v1217_v5, %v584_v16  ;;  %v615_v23 = vmul.f32 %v1217_v5, %v585_v18  ;;  %v592_v24 = vsel %vm544_vm8, %v520_v12, %v568_v19  ;;  %v593_v25 = vsel %vm545_vm9, %v521_v3, %v569_v14 }
 0x110   :  { %v562_v27 = vmul.f32 0.2, %v514_v20  ;;  %v522_v28 = vadd.f32 %v498_v60, %v335_v21  ;;  %vm538_vm10 = vcmp.gt.f32.partialorder %v514_v20, 0.0  ;;  %v622_v29 = vmul.f32 %v1217_v5, %v592_v24 }
 0x111   :  { %v623_v15 = vmul.f32 %v1217_v5, %v593_v25  ;;  %vm710_vm12 = vcmask 130112   ;;  %vm811_vm13 = vcmask 1041409   ;;  %vm813_vm14 = vcmask 1042434  }
 0x112   :  { %663 = vadd.xlane.f32.xlu0 %v620_v53  ;;  %665 = vadd.xlane.f32.xlu1 %v621_v4  ;;  %v586_v30 = vsel %vm538_vm10, %v514_v20, %v562_v27  ;;  %v570_v31 = vmul.f32 0.2, %v522_v28  ;;  %vm546_vm11 = vcmp.gt.f32.partialorder %v522_v28, 0.0  ;;  %vm815_vm15 = vcmask 1043459  }
 0x113   :  { %v616_v9 = vmul.f32 %v1217_v5, %v586_v30  ;;  %vm817_vm0 = vcmask 1044484   ;;  %vm819_vm1 = vcmask 1045509   ;;  %vm821_vm2 = vcmask 1046534  }
 0x114   :  { %v594_v32 = vsel %vm546_vm11, %v522_v28, %v570_v31  ;;  %v336_v31 = vld [vmem:[%s1372_s8] sm:$0xff]  ;;  %vm823_vm3 = vcmask 1047559   ;;  %vm832_vm5 = vcmask 130048   ;;  %vm836_vm7 = vcmask 125952  }
 0x115   :  { %v624_v34 = vmul.f32 %v1217_v5, %v594_v32  ;;  %vm673_vm4 = vcmp.gt.f32.partialorder %v336_v31, 0.0 }
 0x116   :  { %651 = vadd.xlane.f32.xlu0 %v614_v22  ;;  %653 = vadd.xlane.f32.xlu1 %v615_v23 }
 0x11a   :  { %667 = vadd.xlane.f32.xlu0 %v622_v29  ;;  %669 = vadd.xlane.f32.xlu1 %v623_v15 }
 0x11e   :  { %655 = vadd.xlane.f32.xlu0 %v616_v9 }
 0x122   :  { %671 = vadd.xlane.f32.xlu0 %v624_v34 }
 0x17f   :  { %v626_v26 = vpop.xlane.xlu0 %625  ;;  %v628_v35 = vpop.xlane.xlu1 %627 }
 0x180   :  { %v704_v36 = vrot.slane %v626_v26, %v1137_v44  ;;  %v709_v38 = vrot.slane %v628_v35, %v1139_v46 }
 0x182   :  { %v711_v39 = vsel %vm710_vm12, %v709_v38, %v704_v36  ;;  %v337_v38 = vld [vmem:[%s1372_s8 + $0x8] sm:$0xf] }
 0x183   :  { %v630_v40 = vpop.xlane.xlu0 %629  ;;  %v634_v42 = vpop.xlane.xlu1 %633  ;;  %vm674_vm6 = vcmp.gt.f32.partialorder %v337_v38, 0.0 }
 0x184   :  { %v715_v52 = vrot.slane %v630_v40, %v1137_v44  ;;  %v724_v56 = vrot.slane %v634_v42, %v1137_v44 }
 0x187   :  { %v632_v43 = vpop.xlane.xlu0 %631  ;;  %v642_v51 = vpop.xlane.xlu1 %641 }
 0x188   :  { %v719_v54 = vrot.slane %v632_v43, %v1139_v46  ;;  %v742_v61 = vrot.slane %v642_v51, %v1137_v44 }
 0x18a   :  { %v720_v5 = vsel %vm710_vm12, %v719_v54, %v715_v52 }
 0x18b   :  { %v812_v41 = vsel %vm811_vm13, %v720_v5, %v711_v39  ;;  %v636_v49 = vpop.xlane.xlu0 %635  ;;  %v658_v55 = vpop.xlane.xlu1 %657 }
 0x18c   :  { %v728_v57 = vrot.slane %v636_v49, %v1139_v46  ;;  %v778_v50 = vrot.slane %v658_v55, %v1137_v44 }
 0x18e   :  { %v729_v59 = vsel %vm710_vm12, %v728_v57, %v724_v56 }
 0x18f   :  { %v814_v60 = vsel %vm813_vm14, %v729_v59, %v812_v41  ;;  %v644_v48 = vpop.xlane.xlu0 %643  ;;  %v638_v37 = vpop.xlane.xlu1 %637 }
 0x190   :  { %v746_v62 = vrot.slane %v644_v48, %v1139_v46  ;;  %v733_v3 = vrot.slane %v638_v37, %v1137_v44 }
 0x192   :  { %v747_v63 = vsel %vm710_vm12, %v746_v62, %v742_v61 }
 0x193   :  { %v660_v33 = vpop.xlane.xlu0 %659  ;;  %v646_v17 = vpop.xlane.xlu1 %645 }
 0x194   :  { %v782_v1 = vrot.slane %v660_v33, %v1139_v46  ;;  %v751_v6 = vrot.slane %v646_v17, %v1137_v44 }
 0x196   :  { %v783_v47 = vsel %vm710_vm12, %v782_v1, %v778_v50 }
 0x197   :  { %v640_v2 = vpop.xlane.xlu0 %639  ;;  %v662_v58 = vpop.xlane.xlu1 %661 }
 0x198   :  { %v737_v7 = vrot.slane %v640_v2, %v1139_v46  ;;  %v787_v14 = vrot.slane %v662_v58, %v1137_v44  ;;  %v929_v58 = vld [vmem:[%s1373_s10] ss:$0 sm:$0xff] }
 0x19a   :  { %v738_v0 = vsel %vm710_vm12, %v737_v7, %v733_v3 }
 0x19b   :  { %v816_v8 = vsel %vm815_vm15, %v738_v0, %v814_v60  ;;  %v648_v10 = vpop.xlane.xlu0 %647  ;;  %v650_v11 = vpop.xlane.xlu1 %649 }
 0x19c   :  { %v755_v12 = vrot.slane %v648_v10, %v1139_v46  ;;  %v818_v45 = vsel %vm817_vm0, %v747_v63, %v816_v8  ;;  %v760_v22 = vrot.slane %v650_v11, %v1137_v44 }
 0x19e   :  { %v756_v13 = vsel %vm710_vm12, %v755_v12, %v751_v6 }
 0x19f   :  { %v664_v53 = vpop.xlane.xlu0 %663  ;;  %v820_v4 = vsel %vm819_vm1, %v756_v13, %v818_v45  ;;  %v666_v18 = vpop.xlane.xlu1 %665 }
 0x1a0   :  { %v791_v16 = vrot.slane %v664_v53, %v1139_v46  ;;  %v796_v29 = vrot.slane %v666_v18, %v1137_v44 }
 0x1a2   :  { %v792_v19 = vsel %vm710_vm12, %v791_v16, %v787_v14 }
 0x1a3   :  { %v652_v20 = vpop.xlane.xlu0 %651  ;;  %v825_v21 = vsel %vm811_vm13, %v792_v19, %v783_v47  ;;  %v654_v25 = vpop.xlane.xlu1 %653 }
 0x1a4   :  { %v764_v23 = vrot.slane %v652_v20, %v1139_v46  ;;  %v769_v34 = vrot.slane %v654_v25, %v1137_v44 }
 0x1a6   :  { %v765_v24 = vsel %vm710_vm12, %v764_v23, %v760_v22 }
 0x1a7   :  { %v668_v27 = vpop.xlane.xlu0 %667  ;;  %v822_v28 = vsel %vm821_vm2, %v765_v24, %v820_v4  ;;  %v670_v35 = vpop.xlane.xlu1 %669 }
 0x1a8   :  { %v800_v15 = vrot.slane %v668_v27, %v1139_v46  ;;  %v805_v42 = vrot.slane %v670_v35, %v1137_v44 }
 0x1aa   :  { %v801_v30 = vsel %vm710_vm12, %v800_v15, %v796_v29 }
 0x1ab   :  { %v656_v9 = vpop.xlane.xlu0 %655  ;;  %v826_v32 = vsel %vm813_vm14, %v801_v30, %v825_v21 }
 0x1ac   :  { %v773_v26 = vrot.slane %v656_v9, %v1139_v46 }
 0x1ae   :  { %v774_v36 = vsel %vm710_vm12, %v773_v26, %v769_v34 }
 0x1af   :  { %v672_v39 = vpop.xlane.xlu0 %671  ;;  %v824_v40 = vsel %vm823_vm3, %v774_v36, %v822_v28 }
 0x1b0   :  { %v809_v43 = vrot.slane %v672_v39, %v1139_v46  ;;  %v830_v51 = vsel %vm673_vm4, %v824_v40, -1e+30 }
 0x1b1   :  { %v833_v52 = vsel %vm832_vm5, %v830_v51, -inf }
 0x1b2   :  { %834 = vmax.xlane.f32.xlu1 %v833_v52  ;;  %v810_v54 = vsel %vm710_vm12, %v809_v43, %v805_v42 }
 0x1b3   :  { %v827_v5 = vsel %vm815_vm15, %v810_v54, %v826_v32 }
 0x1b4   :  { %v831_v41 = vsel %vm674_vm6, %v827_v5, -1e+30 }
 0x1b5   :  { %v837_v49 = vsel %vm836_vm7, %v831_v41, -inf }
 0x1b6   :  { %838 = vmax.xlane.f32.xlu0 %v837_v49 }
 0x23f   :  { %v835_v55 = vpop.xlane.xlu1 %834 }
 0x240   :  { %v840_v44 = vsub.f32 %v830_v51, %v835_v55 }
 0x242   :  { %v842_v56 = vmul.f32 1.442695, %v840_v44 }
 0x243   :  { %v839_v46 = vpop.xlane.xlu0 %838 }
 0x244   :  { %963 = vpow2.f32 %v842_v56  ;;  %v841_v57 = vsub.f32 %v831_v41, %v839_v46 }
 0x246   :  { %v844_v59 = vmul.f32 1.442695, %v841_v57 }
 0x248   :  { %965 = vpow2.f32 %v844_v59 }
 0x24e   :  { %v964_v60 = vpop.eup %963 }
 0x24f   :  { %v846_v48 = vsel %vm673_vm4, %v964_v60, 0.0 }
 0x250   :  { %v848_v37 = vsel %vm832_vm5, %v846_v48, 0.0 }
 0x251   :  { %849 = vadd.xlane.f32.xlu1 %v848_v37 }
 0x252   :  { %v966_v61 = vpop.eup %965 }
 0x253   :  { %v847_v62 = vsel %vm674_vm6, %v966_v61, 0.0 }
 0x254   :  { %v851_v63 = vsel %vm836_vm7, %v847_v62, 0.0  ;;  %v854_v33 = vpack.c.bf16 %v847_v62, %v846_v48 }
 0x255   :  { %852 = vadd.xlane.f32.xlu0 %v851_v63 }
 0x256   :  { %954 = vmatmul.mubr.msk.bf16.vlgmr.msra.gmra.mrb[4].mxu0 %vm832_vm5, %v854_v33 }
 0x2de   :  { %v850_v17 = vpop.xlane.xlu1 %849 }
 0x2df   :  { %v900_v1 = vmax.f32 %v850_v17, 1e-12 }
 0x2e1   :  { %967 = vrcp.f32 %v900_v1 }
 0x2e2   :  { %v853_v50 = vpop.xlane.xlu0 %852 }
 0x2e3   :  { %v901_v47 = vmax.f32 %v853_v50, 1e-12 }
 0x2e5   :  { %969 = vrcp.f32 %v901_v47 }
 0x2eb   :  { %v968_v2 = vpop.eup %967 }
 0x2ef   :  { %v970_v8 = vpop.eup %969 }
 0x329   :  { %v893_v3 = vpop.f32.mrb[4].mxu0 }
 0x32a   :  { %v904_v7 = vmul.f32 %v968_v2, %v893_v3  ;;  %v955_v0 = vpop.f32.mrb[5].mxu0 }
 0x32b   :  { %v896_v10 = vpop.f32.mrb[6].mxu0 }
 0x32c   :  { %v912_v11 = vadd.f32 %v929_v58, %v904_v7  ;;  %v905_v6 = vmul.f32 %v970_v8, %v896_v10  ;;  %v956_v12 = vpop.f32.mrb[7].mxu0 }
 0x32e   :  { %v914_v45 = vmax.f32 %v912_v11, 0.0  ;;  %v913_v13 = vadd.f32 %v929_v58, %v905_v6 }
 0x330   :  { %916 = vst [vmem:[%s1374_s11] sm:$0xff] %v914_v45  ;;  %v915_v53 = vmax.f32 %v913_v13, 0.0 }
 0x332   :  { %917 = vst [vmem:[%s1374_s11 + $0x8] sm:$0xf] %v915_v53 }

// kernel: meta_gatv2_forward.11
= control target key start
LH: loop header
LB: loop body
LE: loop exit
PB: predicated region body
PF: predicated region fallthrough
CT: control target
= control target key end

     0   :  { %v344_v0 = vmov 0.0   ;;  %vm345_vm0 = vmmov 0   ;;  %s584_s3 = inlined_call_operand.vmem [shape: f32[128,128], index: 3, kind: input, shape index: {}]   ;;  %s585_s2 = inlined_call_operand.vmem [shape: f32[128,128], index: 2, kind: input, shape index: {}]   ;;  %s586_s1 = inlined_call_operand.vmem [shape: f32[10,128], index: 1, kind: input, shape index: {}]   ;;  %s587_s0 = inlined_call_operand.vmem [shape: f32[10,128], index: 0, kind: input, shape index: {}]   ;;  %s588_s5 = inlined_call_operand.vmem [shape: f32[128,128], index: 5, kind: input, shape index: {}]   ;;  %s589_s4 = inlined_call_operand.vmem [shape: f32[1,128], index: 4, kind: input, shape index: {}]   ;;  %s590_s6 = inlined_call_operand.vmem [shape: f32[1,128], index: 6, kind: input, shape index: {}]   ;;  %s591_s7 = inlined_call_operand.vmem [shape: f32[10,128], index: 7, kind: output, shape index: {}]  }
   0x1   :  { %282 = vmatprep.subr.bf16.mxu0 %v344_v0  ;;  %302 = vmatprep.subr.bf16.mxu1 %v344_v0  ;;  %v56_v1 = vld [vmem:[%s584_s3] sm:$0xff]  ;;  %v57_v2 = vld [vmem:[%s584_s3 + $0x8] sm:$0xff]  ;;  %v58_v6 = vld [vmem:[%s584_s3 + $0x10] sm:$0xff] }
   0x2   :  { %v29_v3 = vld [vmem:[%s585_s2] sm:$0xff]  ;;  %v73_v4 = vpack.c.bf16 %v57_v2, %v56_v1  ;;  %v30_v5 = vld [vmem:[%s585_s2 + $0x8] sm:$0xff]  ;;  %v59_v7 = vld [vmem:[%s584_s3 + $0x18] sm:$0xff]  ;;  %298 = vmatprep.mubr.msk.bf16.mxu0 %vm345_vm0, %v344_v0  ;;  %318 = vmatprep.mubr.msk.bf16.mxu1 %vm345_vm0, %v344_v0 }
   0x3   :  { %v46_v8 = vpack.c.bf16 %v30_v5, %v29_v3  ;;  %v31_v9 = vld [vmem:[%s585_s2 + $0x10] sm:$0xff]  ;;  %v32_v10 = vld [vmem:[%s585_s2 + $0x18] sm:$0xff]  ;;  %v74_v11 = vpack.c.bf16 %v59_v7, %v58_v6  ;;  %v60_v13 = vld [vmem:[%s584_s3 + $0x20] sm:$0xff] }
   0x4   :  { %283 = vmatpush3.bf16.msra.mxu0 %v73_v4  ;;  %v47_v12 = vpack.c.bf16 %v32_v10, %v31_v9  ;;  %v61_v14 = vld [vmem:[%s584_s3 + $0x28] sm:$0xff]  ;;  %v33_v15 = vld [vmem:[%s585_s2 + $0x20] sm:$0xff]  ;;  %v62_v19 = vld [vmem:[%s584_s3 + $0x30] sm:$0xff] }
   0x5   :  { %303 = vmatpush3.bf16.msra.mxu1 %v46_v8  ;;  %284 = vmatprep.subr.bf16.mxu0 %v344_v0  ;;  %v34_v16 = vld [vmem:[%s585_s2 + $0x28] sm:$0xff]  ;;  %v75_v17 = vpack.c.bf16 %v61_v14, %v60_v13  ;;  %v63_v20 = vld [vmem:[%s584_s3 + $0x38] sm:$0xff]  ;;  %v35_v21 = vld [vmem:[%s585_s2 + $0x30] sm:$0xff] }
   0x6   :  { %304 = vmatprep.subr.bf16.mxu1 %v344_v0  ;;  %v48_v18 = vpack.c.bf16 %v34_v16, %v33_v15  ;;  %v36_v22 = vld [vmem:[%s585_s2 + $0x38] sm:$0xff]  ;;  %v76_v23 = vpack.c.bf16 %v63_v20, %v62_v19  ;;  %v64_v25 = vld [vmem:[%s584_s3 + $0x40] sm:$0xff]  ;;  %v65_v26 = vld [vmem:[%s584_s3 + $0x48] sm:$0xff] }
   0x7   :  { %v49_v24 = vpack.c.bf16 %v36_v22, %v35_v21  ;;  %v37_v27 = vld [vmem:[%s585_s2 + $0x40] sm:$0xff]  ;;  %v38_v28 = vld [vmem:[%s585_s2 + $0x48] sm:$0xff]  ;;  %v77_v29 = vpack.c.bf16 %v65_v26, %v64_v25  ;;  %v66_v31 = vld [vmem:[%s584_s3 + $0x50] sm:$0xff] }
   0x8   :  { %285 = vmatpush3.bf16.msra.mxu0 %v74_v11  ;;  %v50_v30 = vpack.c.bf16 %v38_v28, %v37_v27  ;;  %v67_v32 = vld [vmem:[%s584_s3 + $0x58] sm:$0xff]  ;;  %v39_v33 = vld [vmem:[%s585_s2 + $0x50] sm:$0xff]  ;;  %v68_v37 = vld [vmem:[%s584_s3 + $0x60] sm:$0xff] }
   0x9   :  { %305 = vmatpush3.bf16.msra.mxu1 %v47_v12  ;;  %286 = vmatprep.subr.bf16.mxu0 %v344_v0  ;;  %v40_v34 = vld [vmem:[%s585_s2 + $0x58] sm:$0xff]  ;;  %v78_v35 = vpack.c.bf16 %v67_v32, %v66_v31  ;;  %v69_v38 = vld [vmem:[%s584_s3 + $0x68] sm:$0xff]  ;;  %v41_v39 = vld [vmem:[%s585_s2 + $0x60] sm:$0xff] }
   0xa   :  { %306 = vmatprep.subr.bf16.mxu1 %v344_v0  ;;  %v51_v36 = vpack.c.bf16 %v40_v34, %v39_v33  ;;  %v42_v40 = vld [vmem:[%s585_s2 + $0x68] sm:$0xff]  ;;  %v79_v41 = vpack.c.bf16 %v69_v38, %v68_v37  ;;  %v70_v43 = vld [vmem:[%s584_s3 + $0x70] sm:$0xff]  ;;  %v71_v44 = vld [vmem:[%s584_s3 + $0x78] sm:$0xff] }
   0xb   :  { %v52_v42 = vpack.c.bf16 %v42_v40, %v41_v39  ;;  %v43_v45 = vld [vmem:[%s585_s2 + $0x70] sm:$0xff]  ;;  %v44_v46 = vld [vmem:[%s585_s2 + $0x78] sm:$0xff]  ;;  %v80_v47 = vpack.c.bf16 %v71_v44, %v70_v43  ;;  %v54_v48 = vld [vmem:[%s586_s1] sm:$0xff] }
   0xc   :  { %287 = vmatpush3.bf16.msra.mxu0 %v75_v17  ;;  %v55_v49 = vld [vmem:[%s586_s1 + $0x8] sm:$0x3]  ;;  %v27_v50 = vld [vmem:[%s587_s0] sm:$0xff]  ;;  %v53_v51 = vpack.c.bf16 %v44_v46, %v43_v45  ;;  %v176_v58 = vld [vmem:[%s588_s5 + $0x10] sm:$0xff] }
   0xd   :  { %307 = vmatpush3.bf16.msra.mxu1 %v48_v18  ;;  %288 = vmatprep.subr.bf16.mxu0 %v344_v0  ;;  %v28_v52 = vld [vmem:[%s587_s0 + $0x8] sm:$0x3]  ;;  %v174_v53 = vld [vmem:[%s588_s5] sm:$0xff]  ;;  %v72_v55 = vpack.c.bf16 %v55_v49, %v54_v48  ;;  %v177_v59 = vld [vmem:[%s588_s5 + $0x18] sm:$0xff] }
   0xe   :  { %308 = vmatprep.subr.bf16.mxu1 %v344_v0  ;;  %v175_v54 = vld [vmem:[%s588_s5 + $0x8] sm:$0xff]  ;;  %v45_v56 = vpack.c.bf16 %v28_v52, %v27_v50  ;;  %v192_v60 = vpack.c.bf16 %v177_v59, %v176_v58  ;;  %v178_v61 = vld [vmem:[%s588_s5 + $0x20] sm:$0xff]  ;;  %v180_v1 = vld [vmem:[%s588_s5 + $0x30] sm:$0xff] }
   0xf   :  { %v191_v57 = vpack.c.bf16 %v175_v54, %v174_v53  ;;  %v179_v62 = vld [vmem:[%s588_s5 + $0x28] sm:$0xff]  ;;  %v181_v2 = vld [vmem:[%s588_s5 + $0x38] sm:$0xff]  ;;  %v182_v4 = vld [vmem:[%s588_s5 + $0x40] sm:$0xff] }
  0x10   :  { %289 = vmatpush3.bf16.msra.mxu0 %v76_v23  ;;  %v193_v63 = vpack.c.bf16 %v179_v62, %v178_v61  ;;  %v194_v3 = vpack.c.bf16 %v181_v2, %v180_v1  ;;  %v183_v5 = vld [vmem:[%s588_s5 + $0x48] sm:$0xff]  ;;  %v184_v7 = vld [vmem:[%s588_s5 + $0x50] sm:$0xff]  ;;  %v185_v8 = vld [vmem:[%s588_s5 + $0x58] sm:$0xff] }
  0x11   :  { %309 = vmatpush3.bf16.msra.mxu1 %v49_v24  ;;  %290 = vmatprep.subr.bf16.mxu0 %v344_v0  ;;  %v195_v6 = vpack.c.bf16 %v183_v5, %v182_v4  ;;  %v196_v9 = vpack.c.bf16 %v185_v8, %v184_v7  ;;  %v186_v10 = vld [vmem:[%s588_s5 + $0x60] sm:$0xff]  ;;  %v187_v11 = vld [vmem:[%s588_s5 + $0x68] sm:$0xff]  ;;  %v188_v13 = vld [vmem:[%s588_s5 + $0x70] sm:$0xff] }
  0x12   :  { %310 = vmatprep.subr.bf16.mxu1 %v344_v0  ;;  %v197_v12 = vpack.c.bf16 %v187_v11, %v186_v10  ;;  %v189_v14 = vld [vmem:[%s588_s5 + $0x78] sm:$0xff]  ;;  %v253_v18 = vld [vmem:[%s589_s4] ss:$0 sm:$0xff] }
  0x13   :  { %v198_v15 = vpack.c.bf16 %v189_v14, %v188_v13  ;;  %v254_v31 = vld [vmem:[%s590_s6] ss:$0 sm:$0xff] }
  0x14   :  { %291 = vmatpush3.bf16.msra.mxu0 %v77_v29 }
  0x15   :  { %311 = vmatpush3.bf16.msra.mxu1 %v50_v30  ;;  %292 = vmatprep.subr.bf16.mxu0 %v344_v0 }
  0x16   :  { %312 = vmatprep.subr.bf16.mxu1 %v344_v0 }
  0x18   :  { %293 = vmatpush3.bf16.msra.mxu0 %v78_v35 }
  0x19   :  { %313 = vmatpush3.bf16.msra.mxu1 %v51_v36  ;;  %294 = vmatprep.subr.bf16.mxu0 %v344_v0 }
  0x1a   :  { %314 = vmatprep.subr.bf16.mxu1 %v344_v0 }
  0x1c   :  { %295 = vmatpush3.bf16.msra.mxu0 %v79_v41 }
  0x1d   :  { %315 = vmatpush3.bf16.msra.mxu1 %v52_v42  ;;  %296 = vmatprep.subr.bf16.mxu0 %v344_v0 }
  0x1e   :  { %316 = vmatprep.subr.bf16.mxu1 %v344_v0 }
  0x20   :  { %297 = vmatpush3.bf16.msra.mxu0 %v80_v47 }
  0x21   :  { %317 = vmatpush3.bf16.msra.mxu1 %v53_v51  ;;  %322 = vmatprep.subr.bf16.mxu0 %v344_v0 }
  0x23   :  { %299 = vmatmul.mubr.bf16.vlgmr.msra.gmra.mrb[0].mxu0 %v72_v55 }
  0x24   :  { %319 = vmatmul.mubr.bf16.vlgmr.msra.gmra.mrb[0].mxu1 %v45_v56  ;;  %323 = vmatpush3.bf16.msra.mxu0 %v191_v57 }
  0x25   :  { %324 = vmatprep.subr.bf16.mxu0 %v344_v0  ;;  %338 = vmatprep.mubr.msk.bf16.mxu0 %vm345_vm0, %v344_v0 }
  0x28   :  { %325 = vmatpush3.bf16.msra.mxu0 %v192_v60 }
  0x29   :  { %326 = vmatprep.subr.bf16.mxu0 %v344_v0 }
  0x2c   :  { %327 = vmatpush3.bf16.msra.mxu0 %v193_v63 }
  0x2d   :  { %328 = vmatprep.subr.bf16.mxu0 %v344_v0 }
  0x30   :  { %329 = vmatpush3.bf16.msra.mxu0 %v194_v3 }
  0x31   :  { %330 = vmatprep.subr.bf16.mxu0 %v344_v0 }
  0x34   :  { %331 = vmatpush3.bf16.msra.mxu0 %v195_v6 }
  0x35   :  { %332 = vmatprep.subr.bf16.mxu0 %v344_v0 }
  0x38   :  { %333 = vmatpush3.bf16.msra.mxu0 %v196_v9 }
  0x39   :  { %334 = vmatprep.subr.bf16.mxu0 %v344_v0 }
  0x3c   :  { %335 = vmatpush3.bf16.msra.mxu0 %v197_v12 }
  0x3d   :  { %336 = vmatprep.subr.bf16.mxu0 %v344_v0 }
  0x40   :  { %337 = vmatpush3.bf16.msra.mxu0 %v198_v15 }
  0xf6   :  { %v115_v16 = vpop.f32.mrb[0].mxu0 }
  0xf7   :  { %v156_v17 = vpop.f32.mrb[0].mxu1  ;;  %v300_v19 = vpop.f32.mrb[1].mxu0 }
  0xf8   :  { %v157_v20 = vadd.f32 %v156_v17, %v115_v16  ;;  %v320_v21 = vpop.f32.mrb[1].mxu1  ;;  %v118_v0 = vpop.f32.mrb[2].mxu0 }
  0xf9   :  { %v159_v22 = vpop.f32.mrb[2].mxu1  ;;  %v301_v23 = vpop.f32.mrb[3].mxu0 }
  0xfa   :  { %v170_v24 = vadd.f32 %v253_v18, %v157_v20  ;;  %v160_v25 = vadd.f32 %v159_v22, %v118_v0  ;;  %v321_v26 = vpop.f32.mrb[3].mxu1 }
  0xfc   :  { %v171_v27 = vadd.f32 %v253_v18, %v160_v25  ;;  %v172_v28 = vmax.f32 %v170_v24, 0.0 }
  0xfe   :  { %v173_v29 = vmax.f32 %v171_v27, 0.0 }
 0x100   :  { %v190_v30 = vpack.c.bf16 %v173_v29, %v172_v28 }
 0x102   :  { %339 = vmatmul.mubr.bf16.vlgmr.msra.gmra.mrb[4].mxu0 %v190_v30 }
 0x1d5   :  { %v240_v32 = vpop.f32.mrb[4].mxu0 }
 0x1d6   :  { %v241_v33 = vadd.f32 %v254_v31, %v240_v32  ;;  %v340_v34 = vpop.f32.mrb[5].mxu0 }
 0x1d7   :  { %v243_v35 = vpop.f32.mrb[6].mxu0 }
 0x1d8   :  { %247 = vst [vmem:[%s591_s7] sm:$0xff] %v241_v33  ;;  %v244_v36 = vadd.f32 %v254_v31, %v243_v35  ;;  %v341_v37 = vpop.f32.mrb[7].mxu0 }
 0x1da   :  { %248 = vst [vmem:[%s591_s7 + $0x8] sm:$0x3] %v244_v36 }

// kernel: meta_gatv2_forward.8
= control target key start
LH: loop header
LB: loop body
LE: loop exit
PB: predicated region body
PF: predicated region fallthrough
CT: control target
= control target key end

     0   :  { %v1145_v0 = vmov 0.0   ;;  %vm1146_vm0 = vmmov 0   ;;  %v1147_v11 = vmov 0   ;;  %s1709_s4 = inlined_call_operand.vmem [shape: f32[128,128], index: 4, kind: input, shape index: {}]   ;;  %s1710_s2 = inlined_call_operand.vmem [shape: f32[128,128], index: 2, kind: input, shape index: {}]   ;;  %s1711_s7 = inlined_call_operand.vmem [shape: f32[12,16,1], index: 7, kind: input, shape index: {}]   ;;  %s1712_s1 = inlined_call_operand.vmem [shape: f32[12,128], index: 1, kind: input, shape index: {}]   ;;  %s1713_s0 = inlined_call_operand.vmem [shape: f32[16,128], index: 0, kind: input, shape index: {}]   ;;  %s1714_s5 = inlined_call_operand.vmem [shape: f32[1,128], index: 5, kind: input, shape index: {}]   ;;  %s1715_s3 = inlined_call_operand.vmem [shape: f32[1,128], index: 3, kind: input, shape index: {}]   ;;  %s1716_s6 = inlined_call_operand.vmem [shape: f32[1,128], index: 6, kind: input, shape index: {}]   ;;  %s1717_s9 = inlined_call_operand.vmem [shape: f32[1,1,128], index: 9, kind: input, shape index: {}]   ;;  %s1718_s8 = inlined_call_operand.vmem [shape: f32[12,16], index: 8, kind: input, shape index: {}]   ;;  %s1719_s11 = inlined_call_operand.vmem [shape: f32[128,128], index: 11, kind: input, shape index: {}]   ;;  %s1720_s10 = inlined_call_operand.vmem [shape: f32[1,128], index: 10, kind: input, shape index: {}]   ;;  %s1721_s12 = inlined_call_operand.vmem [shape: f32[1,128], index: 12, kind: input, shape index: {}]   ;;  %s1722_s13 = inlined_call_operand.vmem [shape: f32[12,128], index: 13, kind: output, shape index: {}]  }
   0x1   :  { %1085 = vmatprep.subr.bf16.mxu1 %v1145_v0  ;;  %v122_v1 = vld [vmem:[%s1709_s4] sm:$0xff]  ;;  %v123_v2 = vld [vmem:[%s1709_s4 + $0x8] sm:$0xff]  ;;  %1065 = vmatprep.subr.bf16.mxu0 %v1145_v0  ;;  %v124_v6 = vld [vmem:[%s1709_s4 + $0x10] sm:$0xff] }
   0x2   :  { %v47_v3 = vld [vmem:[%s1710_s2] sm:$0xff]  ;;  %v139_v4 = vpack.c.bf16 %v123_v2, %v122_v1  ;;  %v48_v5 = vld [vmem:[%s1710_s2 + $0x8] sm:$0xff]  ;;  %v125_v7 = vld [vmem:[%s1709_s4 + $0x18] sm:$0xff]  ;;  %1101 = vmatprep.mubr.msk.bf16.mxu1 %vm1146_vm0, %v1145_v0  ;;  %1081 = vmatprep.mubr.msk.bf16.mxu0 %vm1146_vm0, %v1145_v0 }
   0x3   :  { %v64_v8 = vpack.c.bf16 %v48_v5, %v47_v3  ;;  %v49_v9 = vld [vmem:[%s1710_s2 + $0x10] sm:$0xff]  ;;  %v50_v10 = vld [vmem:[%s1710_s2 + $0x18] sm:$0xff]  ;;  %1136 = vset.pattern.permute.xlu1 %v1147_v11  ;;  %1135 = vset.pattern.permute.xlu0 %v1147_v11  ;;  %v140_v12 = vpack.c.bf16 %v125_v7, %v124_v6  ;;  %v126_v14 = vld [vmem:[%s1709_s4 + $0x20] sm:$0xff] }
   0x4   :  { %1086 = vmatpush3.bf16.msra.mxu1 %v139_v4  ;;  %v65_v13 = vpack.c.bf16 %v50_v10, %v49_v9  ;;  %v127_v15 = vld [vmem:[%s1709_s4 + $0x28] sm:$0xff]  ;;  %v51_v16 = vld [vmem:[%s1710_s2 + $0x20] sm:$0xff]  ;;  %v128_v20 = vld [vmem:[%s1709_s4 + $0x30] sm:$0xff] }
   0x5   :  { %1066 = vmatpush3.bf16.msra.mxu0 %v64_v8  ;;  %1087 = vmatprep.subr.bf16.mxu1 %v1145_v0  ;;  %v52_v17 = vld [vmem:[%s1710_s2 + $0x28] sm:$0xff]  ;;  %v141_v18 = vpack.c.bf16 %v127_v15, %v126_v14  ;;  %v129_v21 = vld [vmem:[%s1709_s4 + $0x38] sm:$0xff]  ;;  %v53_v22 = vld [vmem:[%s1710_s2 + $0x30] sm:$0xff] }
   0x6   :  { %1067 = vmatprep.subr.bf16.mxu0 %v1145_v0  ;;  %v66_v19 = vpack.c.bf16 %v52_v17, %v51_v16  ;;  %v54_v23 = vld [vmem:[%s1710_s2 + $0x38] sm:$0xff]  ;;  %v142_v24 = vpack.c.bf16 %v129_v21, %v128_v20  ;;  %v130_v25 = vld [vmem:[%s1709_s4 + $0x40] sm:$0xff]  ;;  %v131_v27 = vld [vmem:[%s1709_s4 + $0x48] sm:$0xff]  ;;  %v380_v17 = vlaneseq }
   0x7   :  { %v67_v26 = vpack.c.bf16 %v54_v23, %v53_v22  ;;  %v197_v28 = vld [vmem:[%s1711_s7 + $0x10] sm:$0xff]  ;;  %v195_v29 = vld [vmem:[%s1711_s7] sm:$0xff]  ;;  %v56_v31 = vld [vmem:[%s1710_s2 + $0x48] sm:$0xff]  ;;  %v143_v33 = vpack.c.bf16 %v131_v27, %v130_v25 }
   0x8   :  { %1088 = vmatpush3.bf16.msra.mxu1 %v140_v12  ;;  %v55_v30 = vld [vmem:[%s1710_s2 + $0x40] sm:$0xff]  ;;  %232 = vperm.xlu1 %1136, %v197_v28   ;;  %v198_v32 = vld [vmem:[%s1711_s7 + $0x18] sm:$0xff]  ;;  %v196_v34 = vld [vmem:[%s1711_s7 + $0x8] sm:$0xff] }
   0x9   :  { %1068 = vmatpush3.bf16.msra.mxu0 %v65_v13  ;;  %1089 = vmatprep.subr.bf16.mxu1 %v1145_v0  ;;  %v68_v35 = vpack.c.bf16 %v56_v31, %v55_v30  ;;  %v132_v36 = vld [vmem:[%s1709_s4 + $0x50] sm:$0xff]  ;;  %v133_v37 = vld [vmem:[%s1709_s4 + $0x58] sm:$0xff]  ;;  %v200_v40 = vld [vmem:[%s1711_s7 + $0x28] sm:$0xff]  ;;  %v1148_v30 = vmov 1966171168  }
   0xa   :  { %1069 = vmatprep.subr.bf16.mxu0 %v1145_v0  ;;  %222 = vperm.xlu0 %1135, %v195_v29   ;;  %v57_v38 = vld [vmem:[%s1710_s2 + $0x50] sm:$0xff]  ;;  %v58_v39 = vld [vmem:[%s1710_s2 + $0x58] sm:$0xff]  ;;  %v144_v41 = vpack.c.bf16 %v133_v37, %v132_v36  ;;  %v199_v42 = vld [vmem:[%s1711_s7 + $0x20] sm:$0xff]  ;;  %v378_v31 = vunpack.c.l.s4 %v1148_v30 }
   0xb   :  { %v69_v43 = vpack.c.bf16 %v58_v39, %v57_v38  ;;  %v134_v44 = vld [vmem:[%s1709_s4 + $0x60] sm:$0xff]  ;;  %v135_v45 = vld [vmem:[%s1709_s4 + $0x68] sm:$0xff]  ;;  %v202_v48 = vld [vmem:[%s1711_s7 + $0x38] sm:$0xff] }
   0xc   :  { %1090 = vmatpush3.bf16.msra.mxu1 %v141_v18  ;;  %237 = vperm.xlu1 %1136, %v198_v32   ;;  %v59_v46 = vld [vmem:[%s1710_s2 + $0x60] sm:$0xff]  ;;  %v60_v47 = vld [vmem:[%s1710_s2 + $0x68] sm:$0xff]  ;;  %v145_v49 = vpack.c.bf16 %v135_v45, %v134_v44  ;;  %v201_v50 = vld [vmem:[%s1711_s7 + $0x30] sm:$0xff]  ;;  %v381_v18 = vshrl.u32 %v380_v17, 7 }
   0xd   :  { %1070 = vmatpush3.bf16.msra.mxu0 %v66_v19  ;;  %1091 = vmatprep.subr.bf16.mxu1 %v1145_v0  ;;  %v70_v51 = vpack.c.bf16 %v60_v47, %v59_v46  ;;  %v136_v52 = vld [vmem:[%s1709_s4 + $0x70] sm:$0xff]  ;;  %v137_v53 = vld [vmem:[%s1709_s4 + $0x78] sm:$0xff]  ;;  %v204_v56 = vld [vmem:[%s1711_s7 + $0x48] sm:$0xff]  ;;  %v734_v19 = vand.u32 127, %v380_v17 }
   0xe   :  { %1071 = vmatprep.subr.bf16.mxu0 %v1145_v0  ;;  %227 = vperm.xlu0 %1135, %v196_v34   ;;  %v61_v54 = vld [vmem:[%s1710_s2 + $0x70] sm:$0xff]  ;;  %v62_v55 = vld [vmem:[%s1710_s2 + $0x78] sm:$0xff]  ;;  %v146_v57 = vpack.c.bf16 %v137_v53, %v136_v52  ;;  %v120_v58 = vld [vmem:[%s1712_s1] sm:$0xff]  ;;  %v379_v34 = vunpack.c.0.s8 %v378_v31 }
   0xf   :  { %v121_v59 = vld [vmem:[%s1712_s1 + $0x8] sm:$0xf]  ;;  %v203_v60 = vld [vmem:[%s1711_s7 + $0x40] sm:$0xff]  ;;  %v71_v61 = vpack.c.bf16 %v62_v55, %v61_v54  ;;  %v206_v2 = vld [vmem:[%s1711_s7 + $0x58] sm:$0xff]  ;;  %v1425_v20 = vsub.s32 %v734_v19, %v381_v18  ;;  %v739_v21 = vadd.s32 4294967288, %v734_v19  ;;  %v1446_v54 = vsub.s32 0, %v381_v18 }
  0x10   :  { %1092 = vmatpush3.bf16.msra.mxu1 %v142_v24  ;;  %247 = vperm.xlu1 %1136, %v200_v40   ;;  %v45_v62 = vld [vmem:[%s1713_s0] sm:$0xff]  ;;  %v46_v63 = vld [vmem:[%s1713_s0 + $0x8] sm:$0xff]  ;;  %v138_v1 = vpack.c.bf16 %v121_v59, %v120_v58  ;;  %v205_v4 = vld [vmem:[%s1711_s7 + $0x50] sm:$0xff]  ;;  %v382_v37 = vsub.s32 %v379_v34, %v381_v18 }
  0x11   :  { %1072 = vmatpush3.bf16.msra.mxu0 %v67_v26  ;;  %1093 = vmatprep.subr.bf16.mxu1 %v1145_v0  ;;  %v63_v3 = vpack.c.bf16 %v46_v63, %v45_v62  ;;  %v212_v5 = vld [vmem:[%s1711_s7 + $0x88] sm:$0xff]  ;;  %v211_v6 = vld [vmem:[%s1711_s7 + $0x80] sm:$0xff]  ;;  %v214_v7 = vld [vmem:[%s1711_s7 + $0x98] sm:$0xff]  ;;  %v1427_v22 = vsub.s32 %v739_v21, %v381_v18 }
  0x12   :  { %1073 = vmatprep.subr.bf16.mxu0 %v1145_v0  ;;  %242 = vperm.xlu0 %1135, %v199_v42   ;;  %v213_v8 = vld [vmem:[%s1711_s7 + $0x90] sm:$0xff]  ;;  %v208_v9 = vld [vmem:[%s1711_s7 + $0x68] sm:$0xff]  ;;  %v207_v10 = vld [vmem:[%s1711_s7 + $0x60] sm:$0xff] }
  0x13   :  { %v216_v11 = vld [vmem:[%s1711_s7 + $0xa8] sm:$0xff]  ;;  %v215_v12 = vld [vmem:[%s1711_s7 + $0xa0] sm:$0xff]  ;;  %v210_v13 = vld [vmem:[%s1711_s7 + $0x78] sm:$0xff] }
  0x14   :  { %1094 = vmatpush3.bf16.msra.mxu1 %v143_v33  ;;  %257 = vperm.xlu1 %1136, %v202_v48   ;;  %v209_v14 = vld [vmem:[%s1711_s7 + $0x70] sm:$0xff]  ;;  %v218_v15 = vld [vmem:[%s1711_s7 + $0xb8] sm:$0xff]  ;;  %v1030_v36 = vld [vmem:[%s1714_s5] ss:$0 sm:$0xff] }
  0x15   :  { %1074 = vmatpush3.bf16.msra.mxu0 %v68_v35  ;;  %1095 = vmatprep.subr.bf16.mxu1 %v1145_v0  ;;  %v217_v16 = vld [vmem:[%s1711_s7 + $0xb0] sm:$0xff]  ;;  %v1029_v38 = vld [vmem:[%s1715_s3] ss:$0 sm:$0xff] }
  0x16   :  { %1075 = vmatprep.subr.bf16.mxu0 %v1145_v0  ;;  %252 = vperm.xlu0 %1135, %v201_v50   ;;  %v1444_v47 = vld [vmem:[%s1716_s6] ss:$0 sm:$0xff] }
  0x18   :  { %1096 = vmatpush3.bf16.msra.mxu1 %v144_v41  ;;  %267 = vperm.xlu1 %1136, %v204_v56  }
  0x19   :  { %1076 = vmatpush3.bf16.msra.mxu0 %v69_v43  ;;  %1097 = vmatprep.subr.bf16.mxu1 %v1145_v0 }
  0x1a   :  { %1077 = vmatprep.subr.bf16.mxu0 %v1145_v0  ;;  %262 = vperm.xlu0 %1135, %v203_v60  }
  0x1c   :  { %1098 = vmatpush3.bf16.msra.mxu1 %v145_v49  ;;  %277 = vperm.xlu1 %1136, %v206_v2  }
  0x1d   :  { %1078 = vmatpush3.bf16.msra.mxu0 %v70_v51  ;;  %1099 = vmatprep.subr.bf16.mxu1 %v1145_v0 }
  0x1e   :  { %1079 = vmatprep.subr.bf16.mxu0 %v1145_v0  ;;  %272 = vperm.xlu0 %1135, %v205_v4  }
  0x20   :  { %1100 = vmatpush3.bf16.msra.mxu1 %v146_v57  ;;  %307 = vperm.xlu1 %1136, %v212_v5  }
  0x21   :  { %1080 = vmatpush3.bf16.msra.mxu0 %v71_v61  ;;  %1111 = vmatprep.subr.bf16.mxu1 %v1145_v0 }
  0x22   :  { %1105 = vmatprep.subr.bf16.mxu0 %v1145_v0  ;;  %302 = vperm.xlu0 %1135, %v211_v6  }
  0x23   :  { %1102 = vmatmul.mubr.bf16.vlgmr.msra.gmra.mrb[0].mxu1 %v138_v1 }
  0x24   :  { %1082 = vmatmul.mubr.bf16.vlgmr.msra.gmra.mrb[0].mxu0 %v63_v3  ;;  %1127 = vmatprep.mubr.msk.bf16.mxu1 %vm1146_vm0, %v1145_v0 }
  0x25   :  { %1107 = vmatprep.mubr.msk.bf16.mxu0 %vm1146_vm0, %v1145_v0  ;;  %317 = vperm.xlu1 %1136, %v214_v7  }
  0x26   :  { %312 = vperm.xlu0 %1135, %v213_v8  }
  0x29   :  { %287 = vperm.xlu1 %1136, %v208_v9  }
  0x2a   :  { %282 = vperm.xlu0 %1135, %v207_v10  }
  0x2d   :  { %327 = vperm.xlu1 %1136, %v216_v11  }
  0x2e   :  { %322 = vperm.xlu0 %1135, %v215_v12  }
  0x31   :  { %297 = vperm.xlu1 %1136, %v210_v13  }
  0x32   :  { %292 = vperm.xlu0 %1135, %v209_v14  }
  0x35   :  { %337 = vperm.xlu1 %1136, %v218_v15  }
  0x36   :  { %332 = vperm.xlu0 %1135, %v217_v16  }
  0x87   :  { %v233_v23 = vpop.permute.xlu1 %232 }
  0x88   :  { %v348_v61 = vmul.f32 %v1444_v47, %v233_v23 }
  0x89   :  { %v223_v24 = vpop.permute.xlu0 %222 }
  0x8a   :  { %v346_v62 = vmul.f32 %v1444_v47, %v223_v24 }
  0x8b   :  { %v238_v25 = vpop.permute.xlu1 %237 }
  0x8c   :  { %v349_v63 = vmul.f32 %v1444_v47, %v238_v25 }
  0x8d   :  { %v228_v26 = vpop.permute.xlu0 %227 }
  0x8e   :  { %v347_v2 = vmul.f32 %v1444_v47, %v228_v26 }
  0x8f   :  { %v248_v27 = vpop.permute.xlu1 %247 }
  0x90   :  { %v351_v6 = vmul.f32 %v1444_v47, %v248_v27 }
  0x91   :  { %v243_v28 = vpop.permute.xlu0 %242 }
  0x92   :  { %v350_v7 = vmul.f32 %v1444_v47, %v243_v28 }
  0x93   :  { %v1429_v29 = vpop.permute.xlu1 %257 }
  0x95   :  { %v253_v32 = vpop.permute.xlu0 %252 }
  0x96   :  { %v1461_v10 = vmul.f32 %v1444_v47, %v253_v32 }
  0x97   :  { %v268_v33 = vpop.permute.xlu1 %267 }
  0x98   :  { %v1466_v14 = vmul.f32 %v1444_v47, %v268_v33 }
  0x99   :  { %v263_v35 = vpop.permute.xlu0 %262 }
  0x9a   :  { %v354_v21 = vmul.f32 %v1444_v47, %v263_v35 }
  0x9b   :  { %v1437_v39 = vpop.permute.xlu1 %277 }
  0x9d   :  { %v273_v53 = vpop.permute.xlu0 %272 }
  0x9e   :  { %v1473_v23 = vmul.f32 %v1444_v47, %v273_v53 }
  0x9f   :  { %v308_v15 = vpop.permute.xlu1 %307 }
  0xa0   :  { %v1476_v24 = vmul.f32 %v1444_v47, %v308_v15 }
  0xa1   :  { %v303_v16 = vpop.permute.xlu0 %302 }
  0xa2   :  { %v362_v25 = vmul.f32 %v1444_v47, %v303_v16 }
  0xf6   :  { %v188_v40 = vpop.f32.mrb[0].mxu1 }
  0xf7   :  { %v189_v41 = vadd.f32 %v1030_v36, %v188_v40  ;;  %v1103_v42 = vpop.f32.mrb[1].mxu1  ;;  %v113_v43 = vpop.f32.mrb[0].mxu0 }
  0xf8   :  { %v191_v44 = vpop.f32.mrb[2].mxu1  ;;  %v1439_v45 = vadd.f32 %v1029_v38, %v113_v43  ;;  %v1083_v46 = vpop.f32.mrb[1].mxu0 }
  0xf9   :  { %v376_v48 = vcombine.high %v189_v41, %v189_v41  ;;  %v383_v49 = vrot.slane %v189_v41, %v382_v37  ;;  %v192_v50 = vadd.f32 %v1030_v36, %v191_v44  ;;  %v1104_v51 = vpop.f32.mrb[3].mxu1  ;;  %v116_v52 = vpop.f32.mrb[2].mxu0 }
  0xfa   :  { %v1448_v55 = vadd.f32 %v1029_v38, %v116_v52  ;;  %v1084_v56 = vpop.f32.mrb[3].mxu0 }
  0xfb   :  { %v390_v57 = vrot.slane %v376_v48, %v382_v37  ;;  %v391_v58 = vcombine.high %v383_v49, %v383_v49  ;;  %v399_v59 = vrot.slane %v383_v49, %v382_v37  ;;  %v431_v60 = vrot.slane %v192_v50, %v382_v37  ;;  %v1505_v48 = vld [vmem:[%s1717_s9] ss:$0 sm:$0xff] }
  0xfc   :  { %v889_v1 = vpack.c.bf16 %v1448_v55, %v1439_v45 }
  0xfd   :  { %v1456_v3 = vrot.slane %v390_v57, %v382_v37  ;;  %v413_v4 = vrot.slane %v391_v58, %v382_v37  ;;  %v421_v5 = vcombine.high %v399_v59, %v399_v59  ;;  %v392_v8 = vcombine.high %v390_v57, %v390_v57  ;;  %v313_v57 = vpop.permute.xlu0 %312 }
  0xfe   :  { %v432_v9 = vcombine.high %v431_v60, %v431_v60  ;;  %1106 = vmatpush3.bf16.msra.mxu0 %v889_v1  ;;  %v452_v12 = vrot.slane %v399_v59, %v1446_v54  ;;  %v1484_v28 = vrot.slane %v431_v60, %v382_v37 }
  0xff   :  { %v423_v11 = vcombine.high %v413_v4, %v413_v4  ;;  %v456_v13 = vrot.slane %v413_v4, %v1446_v54  ;;  %v460_v17 = vrot.slane %v421_v5, %v1446_v54  ;;  %v468_v18 = vrot.slane %v1456_v3, %v1446_v54 }
 0x100   :  { %v446_v19 = vrot.slane %v432_v9, %v382_v37  ;;  %v1479_v26 = vrot.slane %v392_v8, %v382_v37  ;;  %v509_v31 = vadd.f32 %v452_v12, %v1439_v45  ;;  %v510_v32 = vadd.f32 %v452_v12, %v1448_v55 }
 0x101   :  { %v1482_v27 = vrot.slane %v423_v11, %v1446_v54  ;;  %v511_v33 = vadd.f32 %v456_v13, %v1439_v45  ;;  %v513_v34 = vadd.f32 %v460_v17, %v1439_v45  ;;  %v512_v36 = vadd.f32 %v456_v13, %v1448_v55 }
 0x102   :  { %v448_v30 = vcombine.high %v446_v19, %v446_v19  ;;  %v517_v38 = vadd.f32 %v468_v18, %v1439_v45  ;;  %v514_v40 = vadd.f32 %v460_v17, %v1448_v55  ;;  %v533_v37 = vadd.f32 %v509_v31, %v346_v62 }
 0x103   :  { %v534_v41 = vadd.f32 %v510_v32, %v347_v2  ;;  %v535_v42 = vadd.f32 %v511_v33, %v348_v61  ;;  %v537_v43 = vadd.f32 %v513_v34, %v350_v7  ;;  %v484_v44 = vrot.slane %v1484_v28, %v1446_v54 }
 0x104   :  { %v1491_v35 = vrot.slane %v448_v30, %v1446_v54  ;;  %v536_v49 = vadd.f32 %v512_v36, %v349_v63  ;;  %v541_v50 = vadd.f32 %v517_v38, %v354_v21  ;;  %vm557_vm1 = vcmp.gt.f32.partialorder %v533_v37, 0.0 }
 0x105   :  { %v581_v51 = vmul.f32 0.2, %v533_v37  ;;  %vm558_vm2 = vcmp.gt.f32.partialorder %v534_v41, 0.0  ;;  %v582_v52 = vmul.f32 0.2, %v534_v41  ;;  %vm559_vm3 = vcmp.gt.f32.partialorder %v535_v42, 0.0 }
 0x106   :  { %v1500_v46 = vadd.f32 %v1491_v35, %v1439_v45  ;;  %v583_v53 = vmul.f32 0.2, %v535_v42  ;;  %vm561_vm4 = vcmp.gt.f32.partialorder %v537_v43, 0.0  ;;  %v538_v56 = vadd.f32 %v514_v40, %v351_v6  ;;  %v318_v40 = vpop.permute.xlu1 %317 }
 0x107   :  { %v605_v58 = vsel %vm557_vm1, %v533_v37, %v581_v51  ;;  %v606_v59 = vsel %vm558_vm2, %v534_v41, %v582_v52  ;;  %v585_v60 = vmul.f32 0.2, %v537_v43  ;;  %vm560_vm5 = vcmp.gt.f32.partialorder %v536_v49, 0.0 }
 0x108   :  { %v635_v61 = vmul.f32 %v1505_v48, %v605_v58  ;;  %v636_v62 = vmul.f32 %v1505_v48, %v606_v59  ;;  %v607_v1 = vsel %vm559_vm3, %v535_v42, %v583_v53  ;;  %v584_v63 = vmul.f32 0.2, %v536_v49 }
 0x109   :  { %v422_v2 = vcombine.high %v1456_v3, %v1456_v3  ;;  %v472_v4 = vrot.slane %v1479_v26, %v1446_v54  ;;  %v609_v5 = vsel %vm561_vm4, %v537_v43, %v585_v60  ;;  %v589_v7 = vmul.f32 0.2, %v541_v50 }
 0x10a   :  { %v447_v6 = vcombine.high %v1484_v28, %v1484_v28  ;;  %v488_v8 = vrot.slane %v446_v19, %v1446_v54  ;;  %659 = vadd.xlane.f32.xlu0 %v635_v61  ;;  %661 = vadd.xlane.f32.xlu1 %v636_v62  ;;  %v637_v9 = vmul.f32 %v1505_v48, %v607_v1  ;;  %vm565_vm6 = vcmp.gt.f32.partialorder %v541_v50, 0.0  ;;  %v283_v19 = vpop.permute.xlu0 %282  ;;  %v288_v62 = vpop.permute.xlu1 %287 }
 0x10b   :  { %v639_v11 = vmul.f32 %v1505_v48, %v609_v5  ;;  %v608_v12 = vsel %vm560_vm5, %v536_v49, %v584_v63  ;;  %v525_v3 = vadd.f32 %v484_v44, %v1439_v45  ;;  %v518_v13 = vadd.f32 %v468_v18, %v1448_v55 }
 0x10c   :  { %vm562_vm7 = vcmp.gt.f32.partialorder %v538_v56, 0.0  ;;  %v586_v15 = vmul.f32 0.2, %v538_v56  ;;  %v515_v16 = vadd.f32 %v1482_v27, %v1439_v45  ;;  %v526_v17 = vadd.f32 %v484_v44, %v1448_v55 }
 0x10d   :  { %v613_v21 = vsel %vm565_vm6, %v541_v50, %v589_v7  ;;  %v549_v28 = vadd.f32 %v525_v3, %v362_v25  ;;  %v542_v30 = vadd.f32 %v518_v13, %v1466_v14  ;;  %v519_v31 = vadd.f32 %v472_v4, %v1439_v45 }
 0x10e   :  { %663 = vadd.xlane.f32.xlu0 %v637_v9  ;;  %667 = vadd.xlane.f32.xlu1 %v639_v11  ;;  %v638_v32 = vmul.f32 %v1505_v48, %v608_v12  ;;  %v539_v18 = vadd.f32 %v515_v16, %v1461_v10  ;;  %v516_v33 = vadd.f32 %v1482_v27, %v1448_v55  ;;  %v323_v44 = vpop.permute.xlu0 %322 }
 0x10f   :  { %vm573_vm8 = vcmp.gt.f32.partialorder %v549_v28, 0.0  ;;  %v597_v34 = vmul.f32 0.2, %v549_v28  ;;  %v590_v36 = vmul.f32 0.2, %v542_v30  ;;  %v550_v38 = vadd.f32 %v526_v17, %v1476_v24  ;;  %v328_v17 = vpop.permute.xlu1 %327 }
 0x110   :  { %v643_v25 = vmul.f32 %v1505_v48, %v613_v21  ;;  %v610_v14 = vsel %vm562_vm7, %v538_v56, %v586_v15  ;;  %vm566_vm9 = vcmp.gt.f32.partialorder %v542_v30, 0.0  ;;  %v587_v37 = vmul.f32 0.2, %v539_v18 }
 0x111   :  { %v476_v41 = vrot.slane %v422_v2, %v1446_v54  ;;  %v621_v42 = vsel %vm573_vm8, %v549_v28, %v597_v34  ;;  %vm563_vm10 = vcmp.gt.f32.partialorder %v539_v18, 0.0  ;;  %v543_v10 = vadd.f32 %v519_v31, %v1473_v23 }
 0x112   :  { %v353_v27 = vmul.f32 %v1444_v47, %v1429_v29  ;;  %v364_v43 = vmul.f32 %v1444_v47, %v313_v57  ;;  %v492_v24 = vrot.slane %v447_v6, %v1446_v54  ;;  %665 = vadd.xlane.f32.xlu0 %v638_v32  ;;  %675 = vadd.xlane.f32.xlu1 %v643_v25  ;;  %vm574_vm11 = vcmp.gt.f32.partialorder %v550_v38, 0.0  ;;  %v293_v9 = vpop.permute.xlu0 %292 }
 0x113   :  { %v640_v49 = vmul.f32 %v1505_v48, %v610_v14  ;;  %v614_v50 = vsel %vm566_vm9, %v542_v30, %v590_v36  ;;  %v598_v51 = vmul.f32 0.2, %v550_v38  ;;  %v651_v52 = vmul.f32 %v1505_v48, %v621_v42 }
 0x114   :  { %v611_v53 = vsel %vm563_vm10, %v539_v18, %v587_v37  ;;  %v540_v56 = vadd.f32 %v516_v33, %v353_v27  ;;  %v527_v23 = vadd.f32 %v488_v8, %v1439_v45  ;;  %v591_v58 = vmul.f32 0.2, %v543_v10 }
 0x115   :  { %v520_v29 = vadd.f32 %v472_v4, %v1448_v55  ;;  %v521_v57 = vadd.f32 %v476_v41, %v1439_v45  ;;  %v528_v59 = vadd.f32 %v488_v8, %v1448_v55  ;;  %v357_v60 = vmul.f32 %v1444_v47, %v1437_v39 }
 0x116   :  { %v365_v61 = vmul.f32 %v1444_v47, %v318_v40  ;;  %669 = vadd.xlane.f32.xlu0 %v640_v49  ;;  %691 = vadd.xlane.f32.xlu1 %v651_v52  ;;  %vm567_vm12 = vcmp.gt.f32.partialorder %v543_v10, 0.0  ;;  %v551_v1 = vadd.f32 %v527_v23, %v364_v43  ;;  %v358_v63 = vmul.f32 %v1444_v47, %v283_v19 }
 0x117   :  { %v644_v2 = vmul.f32 %v1505_v48, %v614_v50  ;;  %v641_v4 = vmul.f32 %v1505_v48, %v611_v53  ;;  %v622_v5 = vsel %vm574_vm11, %v550_v38, %v598_v51  ;;  %v588_v7 = vmul.f32 0.2, %v540_v56  ;;  %v333_v38 = vpop.permute.xlu0 %332 }
 0x118   :  { %v544_v6 = vadd.f32 %v520_v29, %v357_v60  ;;  %v529_v8 = vadd.f32 %v492_v24, %v1439_v45  ;;  %v522_v39 = vadd.f32 %v476_v41, %v1448_v55  ;;  %v615_v11 = vsel %vm567_vm12, %v543_v10, %v591_v58 }
 0x119   :  { %vm564_vm13 = vcmp.gt.f32.partialorder %v540_v56, 0.0  ;;  %v599_v12 = vmul.f32 0.2, %v551_v1  ;;  %v545_v3 = vadd.f32 %v521_v57, %v358_v63  ;;  %v424_v13 = vcombine.high %v1479_v26, %v1479_v26 }
 0x11a   :  { %677 = vadd.xlane.f32.xlu0 %v644_v2  ;;  %671 = vadd.xlane.f32.xlu1 %v641_v4  ;;  %vm575_vm14 = vcmp.gt.f32.partialorder %v551_v1, 0.0  ;;  %v366_v15 = vmul.f32 %v1444_v47, %v323_v44  ;;  %v552_v16 = vadd.f32 %v528_v59, %v365_v61  ;;  %v652_v19 = vmul.f32 %v1505_v48, %v622_v5 }
 0x11b   :  { %v645_v21 = vmul.f32 %v1505_v48, %v615_v11  ;;  %v612_v28 = vsel %vm564_vm13, %v540_v56, %v588_v7  ;;  %v592_v30 = vmul.f32 0.2, %v544_v6  ;;  %v623_v31 = vsel %vm575_vm14, %v551_v1, %v599_v12 }
 0x11c   :  { %vm568_vm15 = vcmp.gt.f32.partialorder %v544_v6, 0.0  ;;  %v593_v32 = vmul.f32 0.2, %v545_v3  ;;  %v553_v18 = vadd.f32 %v529_v8, %v366_v15  ;;  %v359_v33 = vmul.f32 %v1444_v47, %v288_v62 }
 0x11d   :  { %vm569_vm0 = vcmp.gt.f32.partialorder %v545_v3, 0.0  ;;  %v480_v26 = vrot.slane %v424_v13, %v1446_v54  ;;  %v530_v34 = vadd.f32 %v492_v24, %v1448_v55  ;;  %v360_v36 = vmul.f32 %v1444_v47, %v293_v9  ;;  %v298_v24 = vpop.permute.xlu1 %297 }
 0x11e   :  { %693 = vadd.xlane.f32.xlu0 %v652_v19  ;;  %679 = vadd.xlane.f32.xlu1 %v645_v21  ;;  %v642_v40 = vmul.f32 %v1505_v48, %v612_v28  ;;  %vm576_vm1 = vcmp.gt.f32.partialorder %v552_v16, 0.0  ;;  %v532_v25 = vadd.f32 %v1491_v35, %v1448_v55  ;;  %v653_v14 = vmul.f32 %v1505_v48, %v623_v31 }
 0x11f   :  { %v616_v37 = vsel %vm568_vm15, %v544_v6, %v592_v30  ;;  %v600_v41 = vmul.f32 0.2, %v552_v16  ;;  %v523_v42 = vadd.f32 %v480_v26, %v1439_v45  ;;  %v617_v10 = vsel %vm569_vm0, %v545_v3, %v593_v32 }
 0x120   :  { %v601_v27 = vmul.f32 0.2, %v553_v18  ;;  %v546_v54 = vadd.f32 %v522_v39, %v359_v33  ;;  %v524_v43 = vadd.f32 %v480_v26, %v1448_v55  ;;  %v368_v44 = vmul.f32 %v1444_v47, %v333_v38 }
 0x121   :  { %vm577_vm2 = vcmp.gt.f32.partialorder %v553_v18, 0.0  ;;  %v547_v49 = vadd.f32 %v523_v42, %v360_v36  ;;  %v367_v35 = vmul.f32 %v1444_v47, %v328_v17  ;;  %v646_v51 = vmul.f32 %v1505_v48, %v616_v37  ;;  %v338_v29 = vpop.permute.xlu1 %337 }
 0x122   :  { %673 = vadd.xlane.f32.xlu0 %v642_v40  ;;  %695 = vadd.xlane.f32.xlu1 %v653_v14  ;;  %v555_v50 = vadd.f32 %v1500_v46, %v368_v44  ;;  %v647_v45 = vmul.f32 %v1505_v48, %v617_v10  ;;  %v624_v52 = vsel %vm576_vm1, %v552_v16, %v600_v41  ;;  %v594_v56 = vmul.f32 0.2, %v546_v54 }
 0x123   :  { %v625_v53 = vsel %vm577_vm2, %v553_v18, %v601_v27  ;;  %v595_v55 = vmul.f32 0.2, %v547_v49  ;;  %v554_v23 = vadd.f32 %v530_v34, %v367_v35  ;;  %vm570_vm3 = vcmp.gt.f32.partialorder %v546_v54, 0.0 }
 0x124   :  { %vm571_vm4 = vcmp.gt.f32.partialorder %v547_v49, 0.0  ;;  %v361_v58 = vmul.f32 %v1444_v47, %v298_v24  ;;  %v654_v57 = vmul.f32 %v1505_v48, %v624_v52  ;;  %v655_v46 = vmul.f32 %v1505_v48, %v625_v53 }
 0x125   :  { %v603_v59 = vmul.f32 0.2, %v555_v50  ;;  %v618_v60 = vsel %vm570_vm3, %v546_v54, %v594_v56  ;;  %v619_v61 = vsel %vm571_vm4, %v547_v49, %v595_v55  ;;  %v602_v62 = vmul.f32 0.2, %v554_v23 }
 0x126   :  { %681 = vadd.xlane.f32.xlu0 %v646_v51  ;;  %683 = vadd.xlane.f32.xlu1 %v647_v45  ;;  %v548_v1 = vadd.f32 %v524_v43, %v361_v58  ;;  %vm578_vm5 = vcmp.gt.f32.partialorder %v554_v23, 0.0  ;;  %vm579_vm6 = vcmp.gt.f32.partialorder %v555_v50, 0.0  ;;  %v369_v63 = vmul.f32 %v1444_v47, %v338_v29 }
 0x127   :  { %v648_v2 = vmul.f32 %v1505_v48, %v618_v60  ;;  %v649_v4 = vmul.f32 %v1505_v48, %v619_v61  ;;  %v626_v5 = vsel %vm578_vm5, %v554_v23, %v602_v62  ;;  %v627_v7 = vsel %vm579_vm6, %v555_v50, %v603_v59 }
 0x128   :  { %v596_v6 = vmul.f32 0.2, %v548_v1  ;;  %v556_v8 = vadd.f32 %v532_v25, %v369_v63  ;;  %vm572_vm7 = vcmp.gt.f32.partialorder %v548_v1, 0.0  ;;  %v656_v39 = vmul.f32 %v1505_v48, %v626_v5 }
 0x129   :  { %v657_v9 = vmul.f32 %v1505_v48, %v627_v7  ;;  %vm744_vm9 = vcmask 130112   ;;  %vm845_vm10 = vcmask 1041409   ;;  %vm847_vm11 = vcmask 1042434  }
 0x12a   :  { %697 = vadd.xlane.f32.xlu0 %v654_v57  ;;  %699 = vadd.xlane.f32.xlu1 %v655_v46  ;;  %v620_v11 = vsel %vm572_vm7, %v548_v1, %v596_v6  ;;  %v604_v12 = vmul.f32 0.2, %v556_v8  ;;  %vm580_vm8 = vcmp.gt.f32.partialorder %v556_v8, 0.0  ;;  %vm849_vm12 = vcmask 1043459  }
 0x12b   :  { %v650_v47 = vmul.f32 %v1505_v48, %v620_v11  ;;  %vm851_vm13 = vcmask 1044484   ;;  %vm853_vm14 = vcmask 1045509   ;;  %vm855_vm15 = vcmask 1046534  }
 0x12c   :  { %v628_v3 = vsel %vm580_vm8, %v556_v8, %v604_v12  ;;  %vm857_vm0 = vcmask 1047559   ;;  %vm866_vm2 = vcmask 130048   ;;  %vm870_vm4 = vcmask 125952  }
 0x12d   :  { %v658_v13 = vmul.f32 %v1505_v48, %v628_v3 }
 0x12e   :  { %685 = vadd.xlane.f32.xlu0 %v648_v2  ;;  %687 = vadd.xlane.f32.xlu1 %v649_v4 }
 0x132   :  { %701 = vadd.xlane.f32.xlu0 %v656_v39  ;;  %703 = vadd.xlane.f32.xlu1 %v657_v9 }
 0x136   :  { %689 = vadd.xlane.f32.xlu0 %v650_v47  ;;  %v370_v47 = vld [vmem:[%s1718_s8] sm:$0xff] }
 0x137   :  { %vm707_vm1 = vcmp.gt.f32.partialorder %v370_v47, 0.0 }
 0x13a   :  { %705 = vadd.xlane.f32.xlu0 %v658_v13 }
 0x197   :  { %v660_v15 = vpop.xlane.xlu0 %659  ;;  %v662_v16 = vpop.xlane.xlu1 %661 }
 0x198   :  { %v738_v17 = vrot.slane %v660_v15, %v1425_v20  ;;  %v743_v19 = vrot.slane %v662_v16, %v1427_v22 }
 0x19a   :  { %v745_v21 = vsel %vm744_vm9, %v743_v19, %v738_v17 }
 0x19b   :  { %v664_v28 = vpop.xlane.xlu0 %663  ;;  %v668_v30 = vpop.xlane.xlu1 %667 }
 0x19c   :  { %v749_v18 = vrot.slane %v664_v28, %v1425_v20  ;;  %v758_v38 = vrot.slane %v668_v30, %v1425_v20 }
 0x19f   :  { %v666_v31 = vpop.xlane.xlu0 %665  ;;  %v676_v32 = vpop.xlane.xlu1 %675 }
 0x1a0   :  { %v753_v33 = vrot.slane %v666_v31, %v1427_v22  ;;  %v776_v42 = vrot.slane %v676_v32, %v1425_v20 }
 0x1a2   :  { %v754_v48 = vsel %vm744_vm9, %v753_v33, %v749_v18 }
 0x1a3   :  { %v846_v26 = vsel %vm845_vm10, %v754_v48, %v745_v21  ;;  %v670_v34 = vpop.xlane.xlu0 %669  ;;  %v692_v36 = vpop.xlane.xlu1 %691  ;;  %v371_v21 = vld [vmem:[%s1718_s8 + $0x8] sm:$0xf] }
 0x1a4   :  { %v762_v40 = vrot.slane %v670_v34, %v1427_v22  ;;  %v812_v24 = vrot.slane %v692_v36, %v1425_v20  ;;  %vm708_vm3 = vcmp.gt.f32.partialorder %v371_v21, 0.0 }
 0x1a6   :  { %v763_v25 = vsel %vm744_vm9, %v762_v40, %v758_v38 }
 0x1a7   :  { %v848_v14 = vsel %vm847_vm11, %v763_v25, %v846_v26  ;;  %v678_v37 = vpop.xlane.xlu0 %677  ;;  %v672_v41 = vpop.xlane.xlu1 %671 }
 0x1a8   :  { %v780_v10 = vrot.slane %v678_v37, %v1427_v22  ;;  %v767_v51 = vrot.slane %v672_v41, %v1425_v20 }
 0x1aa   :  { %v781_v27 = vsel %vm744_vm9, %v780_v10, %v776_v42 }
 0x1ab   :  { %v694_v54 = vpop.xlane.xlu0 %693  ;;  %v680_v43 = vpop.xlane.xlu1 %679 }
 0x1ac   :  { %v816_v44 = vrot.slane %v694_v54, %v1427_v22  ;;  %v785_v23 = vrot.slane %v680_v43, %v1425_v20 }
 0x1ae   :  { %v817_v49 = vsel %vm744_vm9, %v816_v44, %v812_v24  ;;  %v950_v24 = vld [vmem:[%s1719_s11] sm:$0xff]  ;;  %v951_v44 = vld [vmem:[%s1719_s11 + $0x8] sm:$0xff] }
 0x1af   :  { %v674_v35 = vpop.xlane.xlu0 %673  ;;  %v696_v50 = vpop.xlane.xlu1 %695 }
 0x1b0   :  { %v771_v45 = vrot.slane %v674_v35, %v1427_v22  ;;  %v821_v60 = vrot.slane %v696_v50, %v1425_v20  ;;  %v967_v35 = vpack.c.bf16 %v951_v44, %v950_v24  ;;  %v953_v50 = vld [vmem:[%s1719_s11 + $0x18] sm:$0xff] }
 0x1b2   :  { %v772_v52 = vsel %vm744_vm9, %v771_v45, %v767_v51  ;;  %1112 = vmatpush3.bf16.msra.mxu1 %v967_v35  ;;  %v954_v45 = vld [vmem:[%s1719_s11 + $0x20] sm:$0xff] }
 0x1b3   :  { %v850_v53 = vsel %vm849_vm12, %v772_v52, %v848_v14  ;;  %v682_v56 = vpop.xlane.xlu0 %681  ;;  %v684_v55 = vpop.xlane.xlu1 %683  ;;  %1113 = vmatprep.subr.bf16.mxu1 %v1145_v0  ;;  %v955_v52 = vld [vmem:[%s1719_s11 + $0x28] sm:$0xff] }
 0x1b4   :  { %v789_v58 = vrot.slane %v682_v56, %v1427_v22  ;;  %v852_v29 = vsel %vm851_vm13, %v781_v27, %v850_v53  ;;  %v794_v4 = vrot.slane %v684_v55, %v1425_v20  ;;  %v969_v53 = vpack.c.bf16 %v955_v52, %v954_v45  ;;  %v956_v56 = vld [vmem:[%s1719_s11 + $0x30] sm:$0xff]  ;;  %v957_v55 = vld [vmem:[%s1719_s11 + $0x38] sm:$0xff] }
 0x1b6   :  { %v790_v57 = vsel %vm744_vm9, %v789_v58, %v785_v23  ;;  %v970_v23 = vpack.c.bf16 %v957_v55, %v956_v56  ;;  %v958_v58 = vld [vmem:[%s1719_s11 + $0x40] sm:$0xff] }
 0x1b7   :  { %v698_v46 = vpop.xlane.xlu0 %697  ;;  %v854_v59 = vsel %vm853_vm14, %v790_v57, %v852_v29  ;;  %v700_v62 = vpop.xlane.xlu1 %699  ;;  %v959_v29 = vld [vmem:[%s1719_s11 + $0x48] sm:$0xff] }
 0x1b8   :  { %v825_v61 = vrot.slane %v698_v46, %v1427_v22  ;;  %v830_v9 = vrot.slane %v700_v62, %v1425_v20  ;;  %v971_v57 = vpack.c.bf16 %v959_v29, %v958_v58  ;;  %v960_v46 = vld [vmem:[%s1719_s11 + $0x50] sm:$0xff]  ;;  %v963_v62 = vld [vmem:[%s1719_s11 + $0x68] sm:$0xff] }
 0x1ba   :  { %v826_v1 = vsel %vm744_vm9, %v825_v61, %v821_v60  ;;  %v962_v61 = vld [vmem:[%s1719_s11 + $0x60] sm:$0xff] }
 0x1bb   :  { %v686_v63 = vpop.xlane.xlu0 %685  ;;  %v859_v2 = vsel %vm845_vm10, %v826_v1, %v817_v49  ;;  %v688_v6 = vpop.xlane.xlu1 %687  ;;  %v952_v49 = vld [vmem:[%s1719_s11 + $0x10] sm:$0xff] }
 0x1bc   :  { %v798_v5 = vrot.slane %v686_v63, %v1427_v22  ;;  %v803_v15 = vrot.slane %v688_v6, %v1425_v20  ;;  %v968_v51 = vpack.c.bf16 %v953_v50, %v952_v49  ;;  %v964_v1 = vld [vmem:[%s1719_s11 + $0x70] sm:$0xff]  ;;  %v973_v63 = vpack.c.bf16 %v963_v62, %v962_v61 }
 0x1be   :  { %v799_v7 = vsel %vm744_vm9, %v798_v5, %v794_v4  ;;  %1114 = vmatpush3.bf16.msra.mxu1 %v968_v51 }
 0x1bf   :  { %v702_v8 = vpop.xlane.xlu0 %701  ;;  %v856_v39 = vsel %vm855_vm15, %v799_v7, %v854_v59  ;;  %v704_v17 = vpop.xlane.xlu1 %703  ;;  %1115 = vmatprep.subr.bf16.mxu1 %v1145_v0  ;;  %v961_v59 = vld [vmem:[%s1719_s11 + $0x58] sm:$0xff] }
 0x1c0   :  { %v834_v11 = vrot.slane %v702_v8, %v1427_v22  ;;  %v839_v31 = vrot.slane %v704_v17, %v1425_v20  ;;  %v972_v60 = vpack.c.bf16 %v961_v59, %v960_v46 }
 0x1c2   :  { %v835_v12 = vsel %vm744_vm9, %v834_v11, %v830_v9  ;;  %1116 = vmatpush3.bf16.msra.mxu1 %v969_v53  ;;  %v1034_v9 = vld [vmem:[%s1720_s10] ss:$0 sm:$0xff] }
 0x1c3   :  { %v690_v3 = vpop.xlane.xlu0 %689  ;;  %v860_v13 = vsel %vm847_vm11, %v835_v12, %v859_v2  ;;  %1117 = vmatprep.subr.bf16.mxu1 %v1145_v0  ;;  %v965_v2 = vld [vmem:[%s1719_s11 + $0x78] sm:$0xff] }
 0x1c4   :  { %v807_v16 = vrot.slane %v690_v3, %v1427_v22  ;;  %v974_v4 = vpack.c.bf16 %v965_v2, %v964_v1 }
 0x1c6   :  { %v808_v19 = vsel %vm744_vm9, %v807_v16, %v803_v15  ;;  %1118 = vmatpush3.bf16.msra.mxu1 %v970_v23 }
 0x1c7   :  { %v706_v28 = vpop.xlane.xlu0 %705  ;;  %v858_v30 = vsel %vm857_vm0, %v808_v19, %v856_v39  ;;  %1119 = vmatprep.subr.bf16.mxu1 %v1145_v0 }
 0x1c8   :  { %v843_v32 = vrot.slane %v706_v28, %v1427_v22  ;;  %v864_v18 = vsel %vm707_vm1, %v858_v30, -1e+30  ;;  %v1035_v30 = vld [vmem:[%s1721_s12] ss:$0 sm:$0xff] }
 0x1c9   :  { %v867_v33 = vsel %vm866_vm2, %v864_v18, -inf }
 0x1ca   :  { %868 = vmax.xlane.f32.xlu1 %v867_v33  ;;  %v844_v48 = vsel %vm744_vm9, %v843_v32, %v839_v31  ;;  %1120 = vmatpush3.bf16.msra.mxu1 %v971_v57 }
 0x1cb   :  { %v861_v26 = vsel %vm849_vm12, %v844_v48, %v860_v13  ;;  %1121 = vmatprep.subr.bf16.mxu1 %v1145_v0 }
 0x1cc   :  { %v865_v34 = vsel %vm708_vm3, %v861_v26, -1e+30 }
 0x1cd   :  { %v871_v36 = vsel %vm870_vm4, %v865_v34, -inf }
 0x1ce   :  { %872 = vmax.xlane.f32.xlu0 %v871_v36  ;;  %1122 = vmatpush3.bf16.msra.mxu1 %v972_v60 }
 0x1cf   :  { %1123 = vmatprep.subr.bf16.mxu1 %v1145_v0 }
 0x1d2   :  { %1124 = vmatpush3.bf16.msra.mxu1 %v973_v63 }
 0x1d3   :  { %1125 = vmatprep.subr.bf16.mxu1 %v1145_v0 }
 0x1d6   :  { %1126 = vmatpush3.bf16.msra.mxu1 %v974_v4 }
 0x257   :  { %v869_v38 = vpop.xlane.xlu1 %868 }
 0x258   :  { %v874_v20 = vsub.f32 %v864_v18, %v869_v38 }
 0x25a   :  { %v876_v40 = vmul.f32 1.442695, %v874_v20 }
 0x25b   :  { %v873_v22 = vpop.xlane.xlu0 %872 }
 0x25c   :  { %1137 = vpow2.f32 %v876_v40  ;;  %v875_v25 = vsub.f32 %v865_v34, %v873_v22 }
 0x25e   :  { %v878_v14 = vmul.f32 1.442695, %v875_v25 }
 0x260   :  { %1139 = vpow2.f32 %v878_v14 }
 0x266   :  { %v1138_v37 = vpop.eup %1137 }
 0x267   :  { %v880_v41 = vsel %vm707_vm1, %v1138_v37, 0.0 }
 0x268   :  { %v882_v42 = vsel %vm866_vm2, %v880_v41, 0.0 }
 0x269   :  { %883 = vadd.xlane.f32.xlu1 %v882_v42 }
 0x26a   :  { %v1140_v10 = vpop.eup %1139 }
 0x26b   :  { %v881_v27 = vsel %vm708_vm3, %v1140_v10, 0.0 }
 0x26c   :  { %v885_v54 = vsel %vm870_vm4, %v881_v27, 0.0  ;;  %v888_v43 = vpack.c.bf16 %v881_v27, %v880_v41 }
 0x26d   :  { %886 = vadd.xlane.f32.xlu0 %v885_v54 }
 0x26e   :  { %1108 = vmatmul.mubr.msk.bf16.vlgmr.msra.gmra.mrb[4].mxu0 %vm866_vm2, %v888_v43 }
 0x2f6   :  { %v884_v5 = vpop.xlane.xlu1 %883 }
 0x2f7   :  { %v934_v6 = vmax.f32 %v884_v5, 1e-12 }
 0x2f9   :  { %1141 = vrcp.f32 %v934_v6 }
 0x2fa   :  { %v887_v7 = vpop.xlane.xlu0 %886 }
 0x2fb   :  { %v935_v8 = vmax.f32 %v887_v7, 1e-12 }
 0x2fd   :  { %1143 = vrcp.f32 %v935_v8 }
 0x303   :  { %v1142_v39 = vpop.eup %1141 }
 0x307   :  { %v1144_v3 = vpop.eup %1143 }
 0x341   :  { %v927_v11 = vpop.f32.mrb[4].mxu0 }
 0x342   :  { %v938_v12 = vmul.f32 %v1142_v39, %v927_v11  ;;  %v1109_v47 = vpop.f32.mrb[5].mxu0 }
 0x343   :  { %v930_v13 = vpop.f32.mrb[6].mxu0 }
 0x344   :  { %v946_v15 = vadd.f32 %v1034_v9, %v938_v12  ;;  %v939_v16 = vmul.f32 %v1144_v3, %v930_v13  ;;  %v1110_v0 = vpop.f32.mrb[7].mxu0 }
 0x346   :  { %v947_v17 = vadd.f32 %v1034_v9, %v939_v16  ;;  %v948_v19 = vmax.f32 %v946_v15, 0.0 }
 0x348   :  { %v949_v21 = vmax.f32 %v947_v17, 0.0 }
 0x34a   :  { %v966_v28 = vpack.c.bf16 %v949_v21, %v948_v19 }
 0x34c   :  { %1128 = vmatmul.mubr.bf16.vlgmr.msra.gmra.mrb[4].mxu1 %v966_v28 }
 0x41f   :  { %v1016_v31 = vpop.f32.mrb[4].mxu1 }
 0x420   :  { %v1017_v32 = vadd.f32 %v1035_v30, %v1016_v31  ;;  %v1129_v18 = vpop.f32.mrb[5].mxu1 }
 0x421   :  { %v1019_v33 = vpop.f32.mrb[6].mxu1 }
 0x422   :  { %1023 = vst [vmem:[%s1722_s13] sm:$0xff] %v1017_v32  ;;  %v1020_v48 = vadd.f32 %v1035_v30, %v1019_v33  ;;  %v1130_v26 = vpop.f32.mrb[7].mxu1 }
 0x424   :  { %1024 = vst [vmem:[%s1722_s13 + $0x8] sm:$0xf] %v1020_v48 }

</bundles_post_ra>
